<compile_context>
chip_gen: v7x
topology: tpu7x:2x2x1
jax: 0.10.0
libtpu: 0.0.40
codegen_flags: <defaults>
</compile_context>

<pallas_src>
import jax
import jax.numpy as jnp
from jax.experimental import pallas as pl
from jax.experimental.pallas import tpu as pltpu


def lstm_fc_kernel(x_ref, w1x_ref, b1_ref, w1h_ref, w2x_ref, w2h_ref,
                   b2_ref, wfc_ref, bfc_ref, out_ref, xp_ref):
    """x: (B, T, D) batch-major.
    w1x: (D, 4GP), w1h/w2x/w2h: (GP, 4GP), b1/b2: (1, 4GP),
    wfc: (GP, OP), bfc: (1, OP), out: (B, OP),
    xp (scratch): (B*T, 4GP) precomputed layer-1 input projection.
    Gate columns ordered [i | f | o | g], each padded to GP (=128-aligned)."""
    B, T, D = x_ref.shape
    GP = w1h_ref.shape[0]
    G4 = 4 * GP

    # ---- One-time prologue (off the serial recurrence path) ---------------
    # Layer-1 input projection for every time step in a single MXU matmul,
    # with b1 folded in.  Rows are batch-major: row index = b*T + t.
    x_flat = x_ref[...].reshape(B * T, D)
    xp_ref[...] = (jnp.dot(x_flat, w1x_ref[...],
                           preferred_element_type=jnp.float32)
                   + b1_ref[...])

    # Hoist loop-invariant weight loads / bias broadcast out of the recurrence.
    w1h = w1h_ref[...]
    w2x = w2x_ref[...]
    w2h = w2h_ref[...]
    b2b = jnp.broadcast_to(b2_ref[...], (B, G4))   # one broadcast, not T

    def gate_math(gates, c):
        # [i | f | o | g] each GP wide -> all slices are 128-lane aligned.
        sig = jax.nn.sigmoid(gates[:, :3 * GP])     # one EUP pass for i,f,o
        g = jnp.tanh(gates[:, 3 * GP:])
        i = sig[:, :GP]
        f = sig[:, GP:2 * GP]
        o = sig[:, 2 * GP:]
        c_new = f * c + i * g
        h_new = o * jnp.tanh(c_new)
        return h_new, c_new

    def step(t, carry):
        h1, c1, h2, c2 = carry
        # Precomputed layer-1 input projection for step t.  These loads do not
        # depend on h/c, so they are off the serial dependence chain.
        rows = [xp_ref[pl.ds(b * T + t, 1), :] for b in range(B)]
        x1 = rows[0] if B == 1 else jnp.concatenate(rows, axis=0)   # (B, 4GP)
        # Layer 1: a single small matmul on the serial path.
        g1 = x1 + jnp.dot(h1, w1h, preferred_element_type=jnp.float32)
        h1, c1 = gate_math(g1, c1)
        # Layer 2: two accumulating dots (no concat), pre-broadcast bias.
        g2 = (jnp.dot(h1, w2x, preferred_element_type=jnp.float32)
              + jnp.dot(h2, w2h, preferred_element_type=jnp.float32)
              + b2b)
        h2, c2 = gate_math(g2, c2)
        return (h1, c1, h2, c2)

    z = jnp.zeros((B, GP), jnp.float32)
    unroll = True if T <= 32 else 8      # cap unroll for long sequences
    _, _, h2_last, _ = jax.lax.fori_loop(0, T, step, (z, z, z, z),
                                         unroll=unroll)

    # FC head on the last step's layer-2 hidden state (lane-dense OP=128 cols).
    out_ref[...] = (jnp.dot(h2_last, wfc_ref[...],
                            preferred_element_type=jnp.float32)
                    + bfc_ref[...])


def uav_lstm_classifier(x, packed, output_dim):
    """x: (B, T, D) float32 (batch_first, like the PyTorch module).
    Returns (B, output_dim) float32."""
    B, T, D = x.shape
    GP = packed["w1h"].shape[0]
    OP = packed["wfc"].shape[1]

    vmem = pl.BlockSpec(memory_space=pltpu.MemorySpace.VMEM)
    out_padded = pl.pallas_call(
        lstm_fc_kernel,
        out_shape=jax.ShapeDtypeStruct((B, OP), jnp.float32),
        in_specs=[vmem] * 9,
        out_specs=vmem,
        scratch_shapes=[pltpu.VMEM((B * T, 4 * GP), jnp.float32)],
    )(x, packed["w1x"], packed["b1"], packed["w1h"], packed["w2x"],
      packed["w2h"], packed["b2"], packed["wfc"], packed["bfc"])
    return out_padded[:, :output_dim]


def init_torch_params(key, input_dim, hidden_dim, output_dim):
    """PyTorch-layout parameters (nn.LSTM / nn.Linear style), gate order
    [i, f, g, o], uniform(-1/sqrt(H), 1/sqrt(H)) init."""
    H, D, O = hidden_dim, input_dim, output_dim
    k = 1.0 / (H ** 0.5)
    keys = jax.random.split(key, 10)
    u = lambda kk, shape: jax.random.uniform(kk, shape, jnp.float32, -k, k)
    return {
        "w_ih_l0": u(keys[0], (4 * H, D)),
        "w_hh_l0": u(keys[1], (4 * H, H)),
        "b_ih_l0": u(keys[2], (4 * H,)),
        "b_hh_l0": u(keys[3], (4 * H,)),
        "w_ih_l1": u(keys[4], (4 * H, H)),
        "w_hh_l1": u(keys[5], (4 * H, H)),
        "b_ih_l1": u(keys[6], (4 * H,)),
        "b_hh_l1": u(keys[7], (4 * H,)),
        "fc_w":    u(keys[8], (O, H)),
        "fc_b":    u(keys[9], (O,)),
    }


def pack_params(p):
    """Repack PyTorch-layout params for the kernel:
      - gate order [i,f,g,o] -> [i,f,o,g]
      - each gate's columns padded to GP (128-aligned) so gate slices are free
      - recurrent/hidden-input weight rows padded H -> GP (padding rows zero)
      - b_ih + b_hh fused; FC weight/bias padded to (GP, OP=128)."""
    H = p["w_hh_l0"].shape[1]
    O = p["fc_w"].shape[0]
    GP = ((H + 127) // 128) * 128
    OP = ((O + 127) // 128) * 128

    def place_gates(w_t):                       # w_t: (rows, 4H), torch order
        rows = w_t.shape[0]
        out = jnp.zeros((rows, 4 * GP), jnp.float32)
        # kernel slot k <- torch gate j : [i,f,o,g] <- [i,f,g,o]
        for k, j in enumerate((0, 1, 3, 2)):
            out = out.at[:, k * GP:k * GP + H].set(w_t[:, j * H:(j + 1) * H])
        return out

    def pad_rows(w):                            # pad input rows H -> GP
        return jnp.zeros((GP, w.shape[1]), jnp.float32).at[:w.shape[0]].set(w)

    w1x = place_gates(p["w_ih_l0"].T.astype(jnp.float32))        # (D,  4GP)
    w1h = pad_rows(place_gates(p["w_hh_l0"].T))                  # (GP, 4GP)
    b1 = place_gates((p["b_ih_l0"] + p["b_hh_l0"])[None, :])     # (1,  4GP)
    w2x = pad_rows(place_gates(p["w_ih_l1"].T))                  # (GP, 4GP)
    w2h = pad_rows(place_gates(p["w_hh_l1"].T))                  # (GP, 4GP)
    b2 = place_gates((p["b_ih_l1"] + p["b_hh_l1"])[None, :])     # (1,  4GP)

    wfc = jnp.zeros((GP, OP), jnp.float32).at[:H, :O].set(p["fc_w"].T)
    bfc = jnp.zeros((1, OP), jnp.float32).at[0, :O].set(p["fc_b"])
    return {"w1x": w1x, "b1": b1, "w1h": w1h, "w2x": w2x, "w2h": w2h,
            "b2": b2, "wfc": wfc, "bfc": bfc}


def reference_forward(x, p):
    """Pure-JAX reference (lax.scan) mirroring torch.nn.LSTM + Linear,
    using the raw PyTorch-layout parameters and gate order."""
    B, T, D = x.shape
    H = p["w_hh_l0"].shape[1]

    def cell(x_t, h, c, w_ih, w_hh, b_ih, b_hh):
        gates = x_t @ w_ih.T + h @ w_hh.T + b_ih + b_hh
        i, f, g, o = jnp.split(gates, 4, axis=-1)
        c_new = jax.nn.sigmoid(f) * c + jax.nn.sigmoid(i) * jnp.tanh(g)
        h_new = jax.nn.sigmoid(o) * jnp.tanh(c_new)
        return h_new, c_new

    def scan_step(carry, x_t):
        h1, c1, h2, c2 = carry
        h1, c1 = cell(x_t, h1, c1, p["w_ih_l0"], p["w_hh_l0"],
                      p["b_ih_l0"], p["b_hh_l0"])
        h2, c2 = cell(h1, h2, c2, p["w_ih_l1"], p["w_hh_l1"],
                      p["b_ih_l1"], p["b_hh_l1"])
        return (h1, c1, h2, c2), None

    init = tuple(jnp.zeros((B, H), jnp.float32) for _ in range(4))
    (_, _, h2, _), _ = jax.lax.scan(scan_step, init,
                                    jnp.transpose(x, (1, 0, 2)))
    return h2 @ p["fc_w"].T + p["fc_b"]


if __name__ == "__main__":
    B, T, D = 2, 8, 16        # batch, seq, input_dim
    H, O = 32, 5              # hidden_dim, output_dim

    key = jax.random.PRNGKey(0)
    kx, kp = jax.random.split(key)
    x = jax.random.normal(kx, (B, T, D), jnp.float32)
    raw_params = init_torch_params(kp, D, H, O)
    packed = pack_params(raw_params)

    out = uav_lstm_classifier(x, packed, O)
    out = jax.block_until_ready(out)

    ref = reference_forward(x, raw_params)
    assert out.shape == (B, O)
    assert jnp.allclose(out, ref, atol=1e-4, rtol=1e-4), "mismatch vs JAX reference"

    print("KERNEL_OK")
</pallas_src>

<mosaic_0001>
module attributes {stable_mosaic.version = 11 : i64} {
  func.func @lstm_fc_kernel(%arg0: memref<2x8x16xf32, #tpu.memory_space<vmem>>, %arg1: memref<16x512xf32, #tpu.memory_space<vmem>>, %arg2: memref<1x512xf32, #tpu.memory_space<vmem>>, %arg3: memref<128x512xf32, #tpu.memory_space<vmem>>, %arg4: memref<128x512xf32, #tpu.memory_space<vmem>>, %arg5: memref<128x512xf32, #tpu.memory_space<vmem>>, %arg6: memref<1x512xf32, #tpu.memory_space<vmem>>, %arg7: memref<128x128xf32, #tpu.memory_space<vmem>>, %arg8: memref<1x128xf32, #tpu.memory_space<vmem>>, %arg9: memref<2x128xf32, #tpu.memory_space<vmem>>, %arg10: memref<16x512xf32, #tpu.memory_space<vmem>>) attributes {dimension_semantics = [], scalar_prefetch = 0 : i64, scratch_operands = 1 : i64, tpu.core_type = #tpu.core_type<tc>} {
    %c0 = arith.constant 0 : index
    %c0_0 = arith.constant 0 : index
    %c0_1 = arith.constant 0 : index
    %0 = vector.load %arg0[%c0, %c0_0, %c0_1] : memref<2x8x16xf32, #tpu.memory_space<vmem>>, vector<2x8x16xf32>
    %1 = vector.shape_cast %0 : vector<2x8x16xf32> to vector<16x16xf32>
    %c0_2 = arith.constant 0 : index
    %c0_3 = arith.constant 0 : index
    %2 = vector.load %arg1[%c0_2, %c0_3] : memref<16x512xf32, #tpu.memory_space<vmem>>, vector<16x512xf32>
    %cst = arith.constant dense<0.000000e+00> : vector<16x512xf32>
    %3 = tpu.matmul %1, %2, %cst {dimension_numbers = #tpu.dot_dimension_numbers<[1], [0], [0], [1], [0, 0, 1, 1], [], []>} : vector<16x16xf32>, vector<16x512xf32>, vector<16x512xf32> -> vector<16x512xf32>
    %c0_4 = arith.constant 0 : index
    %c0_5 = arith.constant 0 : index
    %4 = vector.load %arg2[%c0_4, %c0_5] : memref<1x512xf32, #tpu.memory_space<vmem>>, vector<1x512xf32>
    %5 = vector.broadcast %4 : vector<1x512xf32> to vector<16x512xf32>
    %6 = arith.addf %3, %5 : vector<16x512xf32>
    %c0_6 = arith.constant 0 : index
    %c0_7 = arith.constant 0 : index
    %7 = vector.load %arg10[%c0_6, %c0_7] : memref<16x512xf32, #tpu.memory_space<vmem>>, vector<16x512xf32>
    tpu.vector_store %arg10[%c0_6, %c0_7], %6 {strides = array<i32>} : memref<16x512xf32, #tpu.memory_space<vmem>>, vector<16x512xf32>,
    %c0_8 = arith.constant 0 : index
    %c0_9 = arith.constant 0 : index
    %8 = vector.load %arg3[%c0_8, %c0_9] : memref<128x512xf32, #tpu.memory_space<vmem>>, vector<128x512xf32>
    %c0_10 = arith.constant 0 : index
    %c0_11 = arith.constant 0 : index
    %9 = vector.load %arg4[%c0_10, %c0_11] : memref<128x512xf32, #tpu.memory_space<vmem>>, vector<128x512xf32>
    %c0_12 = arith.constant 0 : index
    %c0_13 = arith.constant 0 : index
    %10 = vector.load %arg5[%c0_12, %c0_13] : memref<128x512xf32, #tpu.memory_space<vmem>>, vector<128x512xf32>
    %c0_14 = arith.constant 0 : index
    %c0_15 = arith.constant 0 : index
    %11 = vector.load %arg6[%c0_14, %c0_15] : memref<1x512xf32, #tpu.memory_space<vmem>>, vector<1x512xf32>
    %12 = vector.shape_cast %11 : vector<1x512xf32> to vector<1x512xf32>
    %13 = vector.broadcast %12 : vector<1x512xf32> to vector<2x512xf32>
    %cst_16 = arith.constant 0.000000e+00 : f32
    %14 = vector.broadcast %cst_16 : f32 to vector<2x128xf32>
    %c0_i32 = arith.constant 0 : i32
    %c0_i32_17 = arith.constant 0 : i32
    %15 = arith.addi %c0_i32_17, %c0_i32 : i32
    %16 = arith.index_cast %15 : i32 to index
    %c0_18 = arith.constant 0 : index
    %17 = vector.load %arg10[%16, %c0_18] : memref<16x512xf32, #tpu.memory_space<vmem>>, vector<1x512xf32>
    %c8_i32 = arith.constant 8 : i32
    %18 = arith.addi %c8_i32, %c0_i32 : i32
    %19 = arith.index_cast %18 : i32 to index
    %c0_19 = arith.constant 0 : index
    %20 = vector.load %arg10[%19, %c0_19] : memref<16x512xf32, #tpu.memory_space<vmem>>, vector<1x512xf32>
    %21 = tpu.concatenate %17, %20 in 0 : vector<1x512xf32>, vector<1x512xf32> -> vector<2x512xf32>
    %cst_20 = arith.constant dense<0.000000e+00> : vector<2x512xf32>
    %22 = tpu.matmul %14, %8, %cst_20 {dimension_numbers = #tpu.dot_dimension_numbers<[1], [0], [0], [1], [0, 0, 1, 1], [], []>} : vector<2x128xf32>, vector<128x512xf32>, vector<2x512xf32> -> vector<2x512xf32>
    %23 = arith.addf %21, %22 : vector<2x512xf32>
    %24 = vector.extract_strided_slice %23 {offsets = [0, 0], sizes = [2, 384], strides = [1, 1]} : vector<2x512xf32> to vector<2x384xf32>
    %25 = arith.negf %24 : vector<2x384xf32>
    %26 = math.exp %25 : vector<2x384xf32>
    %cst_21 = arith.constant 1.000000e+00 : f32
    %27 = vector.broadcast %cst_21 : f32 to vector<2x384xf32>
    %28 = arith.addf %27, %26 : vector<2x384xf32>
    %29 = arith.divf %27, %28 : vector<2x384xf32>
    %30 = vector.extract_strided_slice %23 {offsets = [0, 384], sizes = [2, 128], strides = [1, 1]} : vector<2x512xf32> to vector<2x128xf32>
    %31 = math.tanh %30 : vector<2x128xf32>
    %32 = vector.extract_strided_slice %29 {offsets = [0, 0], sizes = [2, 128], strides = [1, 1]} : vector<2x384xf32> to vector<2x128xf32>
    %33 = vector.extract_strided_slice %29 {offsets = [0, 128], sizes = [2, 128], strides = [1, 1]} : vector<2x384xf32> to vector<2x128xf32>
    %34 = vector.extract_strided_slice %29 {offsets = [0, 256], sizes = [2, 128], strides = [1, 1]} : vector<2x384xf32> to vector<2x128xf32>
    %35 = arith.mulf %33, %14 : vector<2x128xf32>
    %36 = arith.mulf %32, %31 : vector<2x128xf32>
    %37 = arith.addf %35, %36 : vector<2x128xf32>
    %38 = math.tanh %37 : vector<2x128xf32>
    %39 = arith.mulf %34, %38 : vector<2x128xf32>
    %cst_22 = arith.constant dense<0.000000e+00> : vector<2x512xf32>
    %40 = tpu.matmul %39, %9, %cst_22 {dimension_numbers = #tpu.dot_dimension_numbers<[1], [0], [0], [1], [0, 0, 1, 1], [], []>} : vector<2x128xf32>, vector<128x512xf32>, vector<2x512xf32> -> vector<2x512xf32>
    %cst_23 = arith.constant dense<0.000000e+00> : vector<2x512xf32>
    %41 = tpu.matmul %14, %10, %cst_23 {dimension_numbers = #tpu.dot_dimension_numbers<[1], [0], [0], [1], [0, 0, 1, 1], [], []>} : vector<2x128xf32>, vector<128x512xf32>, vector<2x512xf32> -> vector<2x512xf32>
    %42 = arith.addf %40, %41 : vector<2x512xf32>
    %43 = arith.addf %42, %13 : vector<2x512xf32>
    %44 = vector.extract_strided_slice %43 {offsets = [0, 0], sizes = [2, 384], strides = [1, 1]} : vector<2x512xf32> to vector<2x384xf32>
    %45 = arith.negf %44 : vector<2x384xf32>
    %46 = math.exp %45 : vector<2x384xf32>
    %cst_24 = arith.constant 1.000000e+00 : f32
    %47 = vector.broadcast %cst_24 : f32 to vector<2x384xf32>
    %48 = arith.addf %47, %46 : vector<2x384xf32>
    %49 = arith.divf %47, %48 : vector<2x384xf32>
    %50 = vector.extract_strided_slice %43 {offsets = [0, 384], sizes = [2, 128], strides = [1, 1]} : vector<2x512xf32> to vector<2x128xf32>
    %51 = math.tanh %50 : vector<2x128xf32>
    %52 = vector.extract_strided_slice %49 {offsets = [0, 0], sizes = [2, 128], strides = [1, 1]} : vector<2x384xf32> to vector<2x128xf32>
    %53 = vector.extract_strided_slice %49 {offsets = [0, 128], sizes = [2, 128], strides = [1, 1]} : vector<2x384xf32> to vector<2x128xf32>
    %54 = vector.extract_strided_slice %49 {offsets = [0, 256], sizes = [2, 128], strides = [1, 1]} : vector<2x384xf32> to vector<2x128xf32>
    %55 = arith.mulf %53, %14 : vector<2x128xf32>
    %56 = arith.mulf %52, %51 : vector<2x128xf32>
    %57 = arith.addf %55, %56 : vector<2x128xf32>
    %58 = math.tanh %57 : vector<2x128xf32>
    %59 = arith.mulf %54, %58 : vector<2x128xf32>
    %c1_i32 = arith.constant 1 : i32
    %c0_i32_25 = arith.constant 0 : i32
    %60 = arith.addi %c0_i32_25, %c1_i32 : i32
    %61 = arith.index_cast %60 : i32 to index
    %c0_26 = arith.constant 0 : index
    %62 = vector.load %arg10[%61, %c0_26] : memref<16x512xf32, #tpu.memory_space<vmem>>, vector<1x512xf32>
    %c8_i32_27 = arith.constant 8 : i32
    %63 = arith.addi %c8_i32_27, %c1_i32 : i32
    %64 = arith.index_cast %63 : i32 to index
    %c0_28 = arith.constant 0 : index
    %65 = vector.load %arg10[%64, %c0_28] : memref<16x512xf32, #tpu.memory_space<vmem>>, vector<1x512xf32>
    %66 = tpu.concatenate %62, %65 in 0 : vector<1x512xf32>, vector<1x512xf32> -> vector<2x512xf32>
    %cst_29 = arith.constant dense<0.000000e+00> : vector<2x512xf32>
    %67 = tpu.matmul %39, %8, %cst_29 {dimension_numbers = #tpu.dot_dimension_numbers<[1], [0], [0], [1], [0, 0, 1, 1], [], []>} : vector<2x128xf32>, vector<128x512xf32>, vector<2x512xf32> -> vector<2x512xf32>
    %68 = arith.addf %66, %67 : vector<2x512xf32>
    %69 = vector.extract_strided_slice %68 {offsets = [0, 0], sizes = [2, 384], strides = [1, 1]} : vector<2x512xf32> to vector<2x384xf32>
    %70 = arith.negf %69 : vector<2x384xf32>
    %71 = math.exp %70 : vector<2x384xf32>
    %cst_30 = arith.constant 1.000000e+00 : f32
    %72 = vector.broadcast %cst_30 : f32 to vector<2x384xf32>
    %73 = arith.addf %72, %71 : vector<2x384xf32>
    %74 = arith.divf %72, %73 : vector<2x384xf32>
    %75 = vector.extract_strided_slice %68 {offsets = [0, 384], sizes = [2, 128], strides = [1, 1]} : vector<2x512xf32> to vector<2x128xf32>
    %76 = math.tanh %75 : vector<2x128xf32>
    %77 = vector.extract_strided_slice %74 {offsets = [0, 0], sizes = [2, 128], strides = [1, 1]} : vector<2x384xf32> to vector<2x128xf32>
    %78 = vector.extract_strided_slice %74 {offsets = [0, 128], sizes = [2, 128], strides = [1, 1]} : vector<2x384xf32> to vector<2x128xf32>
    %79 = vector.extract_strided_slice %74 {offsets = [0, 256], sizes = [2, 128], strides = [1, 1]} : vector<2x384xf32> to vector<2x128xf32>
    %80 = arith.mulf %78, %37 : vector<2x128xf32>
    %81 = arith.mulf %77, %76 : vector<2x128xf32>
    %82 = arith.addf %80, %81 : vector<2x128xf32>
    %83 = math.tanh %82 : vector<2x128xf32>
    %84 = arith.mulf %79, %83 : vector<2x128xf32>
    %cst_31 = arith.constant dense<0.000000e+00> : vector<2x512xf32>
    %85 = tpu.matmul %84, %9, %cst_31 {dimension_numbers = #tpu.dot_dimension_numbers<[1], [0], [0], [1], [0, 0, 1, 1], [], []>} : vector<2x128xf32>, vector<128x512xf32>, vector<2x512xf32> -> vector<2x512xf32>
    %cst_32 = arith.constant dense<0.000000e+00> : vector<2x512xf32>
    %86 = tpu.matmul %59, %10, %cst_32 {dimension_numbers = #tpu.dot_dimension_numbers<[1], [0], [0], [1], [0, 0, 1, 1], [], []>} : vector<2x128xf32>, vector<128x512xf32>, vector<2x512xf32> -> vector<2x512xf32>
    %87 = arith.addf %85, %86 : vector<2x512xf32>
    %88 = arith.addf %87, %13 : vector<2x512xf32>
    %89 = vector.extract_strided_slice %88 {offsets = [0, 0], sizes = [2, 384], strides = [1, 1]} : vector<2x512xf32> to vector<2x384xf32>
    %90 = arith.negf %89 : vector<2x384xf32>
    %91 = math.exp %90 : vector<2x384xf32>
    %cst_33 = arith.constant 1.000000e+00 : f32
    %92 = vector.broadcast %cst_33 : f32 to vector<2x384xf32>
    %93 = arith.addf %92, %91 : vector<2x384xf32>
    %94 = arith.divf %92, %93 : vector<2x384xf32>
    %95 = vector.extract_strided_slice %88 {offsets = [0, 384], sizes = [2, 128], strides = [1, 1]} : vector<2x512xf32> to vector<2x128xf32>
    %96 = math.tanh %95 : vector<2x128xf32>
    %97 = vector.extract_strided_slice %94 {offsets = [0, 0], sizes = [2, 128], strides = [1, 1]} : vector<2x384xf32> to vector<2x128xf32>
    %98 = vector.extract_strided_slice %94 {offsets = [0, 128], sizes = [2, 128], strides = [1, 1]} : vector<2x384xf32> to vector<2x128xf32>
    %99 = vector.extract_strided_slice %94 {offsets = [0, 256], sizes = [2, 128], strides = [1, 1]} : vector<2x384xf32> to vector<2x128xf32>
    %100 = arith.mulf %98, %57 : vector<2x128xf32>
    %101 = arith.mulf %97, %96 : vector<2x128xf32>
    %102 = arith.addf %100, %101 : vector<2x128xf32>
    %103 = math.tanh %102 : vector<2x128xf32>
    %104 = arith.mulf %99, %103 : vector<2x128xf32>
    %c2_i32 = arith.constant 2 : i32
    %c0_i32_34 = arith.constant 0 : i32
    %105 = arith.addi %c0_i32_34, %c2_i32 : i32
    %106 = arith.index_cast %105 : i32 to index
    %c0_35 = arith.constant 0 : index
    %107 = vector.load %arg10[%106, %c0_35] : memref<16x512xf32, #tpu.memory_space<vmem>>, vector<1x512xf32>
    %c8_i32_36 = arith.constant 8 : i32
    %108 = arith.addi %c8_i32_36, %c2_i32 : i32
    %109 = arith.index_cast %108 : i32 to index
    %c0_37 = arith.constant 0 : index
    %110 = vector.load %arg10[%109, %c0_37] : memref<16x512xf32, #tpu.memory_space<vmem>>, vector<1x512xf32>
    %111 = tpu.concatenate %107, %110 in 0 : vector<1x512xf32>, vector<1x512xf32> -> vector<2x512xf32>
    %cst_38 = arith.constant dense<0.000000e+00> : vector<2x512xf32>
    %112 = tpu.matmul %84, %8, %cst_38 {dimension_numbers = #tpu.dot_dimension_numbers<[1], [0], [0], [1], [0, 0, 1, 1], [], []>} : vector<2x128xf32>, vector<128x512xf32>, vector<2x512xf32> -> vector<2x512xf32>
    %113 = arith.addf %111, %112 : vector<2x512xf32>
    %114 = vector.extract_strided_slice %113 {offsets = [0, 0], sizes = [2, 384], strides = [1, 1]} : vector<2x512xf32> to vector<2x384xf32>
    %115 = arith.negf %114 : vector<2x384xf32>
    %116 = math.exp %115 : vector<2x384xf32>
    %cst_39 = arith.constant 1.000000e+00 : f32
    %117 = vector.broadcast %cst_39 : f32 to vector<2x384xf32>
    %118 = arith.addf %117, %116 : vector<2x384xf32>
    %119 = arith.divf %117, %118 : vector<2x384xf32>
    %120 = vector.extract_strided_slice %113 {offsets = [0, 384], sizes = [2, 128], strides = [1, 1]} : vector<2x512xf32> to vector<2x128xf32>
    %121 = math.tanh %120 : vector<2x128xf32>
    %122 = vector.extract_strided_slice %119 {offsets = [0, 0], sizes = [2, 128], strides = [1, 1]} : vector<2x384xf32> to vector<2x128xf32>
    %123 = vector.extract_strided_slice %119 {offsets = [0, 128], sizes = [2, 128], strides = [1, 1]} : vector<2x384xf32> to vector<2x128xf32>
    %124 = vector.extract_strided_slice %119 {offsets = [0, 256], sizes = [2, 128], strides = [1, 1]} : vector<2x384xf32> to vector<2x128xf32>
    %125 = arith.mulf %123, %82 : vector<2x128xf32>
    %126 = arith.mulf %122, %121 : vector<2x128xf32>
    %127 = arith.addf %125, %126 : vector<2x128xf32>
    %128 = math.tanh %127 : vector<2x128xf32>
    %129 = arith.mulf %124, %128 : vector<2x128xf32>
    %cst_40 = arith.constant dense<0.000000e+00> : vector<2x512xf32>
    %130 = tpu.matmul %129, %9, %cst_40 {dimension_numbers = #tpu.dot_dimension_numbers<[1], [0], [0], [1], [0, 0, 1, 1], [], []>} : vector<2x128xf32>, vector<128x512xf32>, vector<2x512xf32> -> vector<2x512xf32>
    %cst_41 = arith.constant dense<0.000000e+00> : vector<2x512xf32>
    %131 = tpu.matmul %104, %10, %cst_41 {dimension_numbers = #tpu.dot_dimension_numbers<[1], [0], [0], [1], [0, 0, 1, 1], [], []>} : vector<2x128xf32>, vector<128x512xf32>, vector<2x512xf32> -> vector<2x512xf32>
    %132 = arith.addf %130, %131 : vector<2x512xf32>
    %133 = arith.addf %132, %13 : vector<2x512xf32>
    %134 = vector.extract_strided_slice %133 {offsets = [0, 0], sizes = [2, 384], strides = [1, 1]} : vector<2x512xf32> to vector<2x384xf32>
    %135 = arith.negf %134 : vector<2x384xf32>
    %136 = math.exp %135 : vector<2x384xf32>
    %cst_42 = arith.constant 1.000000e+00 : f32
    %137 = vector.broadcast %cst_42 : f32 to vector<2x384xf32>
    %138 = arith.addf %137, %136 : vector<2x384xf32>
    %139 = arith.divf %137, %138 : vector<2x384xf32>
    %140 = vector.extract_strided_slice %133 {offsets = [0, 384], sizes = [2, 128], strides = [1, 1]} : vector<2x512xf32> to vector<2x128xf32>
    %141 = math.tanh %140 : vector<2x128xf32>
    %142 = vector.extract_strided_slice %139 {offsets = [0, 0], sizes = [2, 128], strides = [1, 1]} : vector<2x384xf32> to vector<2x128xf32>
    %143 = vector.extract_strided_slice %139 {offsets = [0, 128], sizes = [2, 128], strides = [1, 1]} : vector<2x384xf32> to vector<2x128xf32>
    %144 = vector.extract_strided_slice %139 {offsets = [0, 256], sizes = [2, 128], strides = [1, 1]} : vector<2x384xf32> to vector<2x128xf32>
    %145 = arith.mulf %143, %102 : vector<2x128xf32>
    %146 = arith.mulf %142, %141 : vector<2x128xf32>
    %147 = arith.addf %145, %146 : vector<2x128xf32>
    %148 = math.tanh %147 : vector<2x128xf32>
    %149 = arith.mulf %144, %148 : vector<2x128xf32>
    %c3_i32 = arith.constant 3 : i32
    %c0_i32_43 = arith.constant 0 : i32
    %150 = arith.addi %c0_i32_43, %c3_i32 : i32
    %151 = arith.index_cast %150 : i32 to index
    %c0_44 = arith.constant 0 : index
    %152 = vector.load %arg10[%151, %c0_44] : memref<16x512xf32, #tpu.memory_space<vmem>>, vector<1x512xf32>
    %c8_i32_45 = arith.constant 8 : i32
    %153 = arith.addi %c8_i32_45, %c3_i32 : i32
    %154 = arith.index_cast %153 : i32 to index
    %c0_46 = arith.constant 0 : index
    %155 = vector.load %arg10[%154, %c0_46] : memref<16x512xf32, #tpu.memory_space<vmem>>, vector<1x512xf32>
    %156 = tpu.concatenate %152, %155 in 0 : vector<1x512xf32>, vector<1x512xf32> -> vector<2x512xf32>
    %cst_47 = arith.constant dense<0.000000e+00> : vector<2x512xf32>
    %157 = tpu.matmul %129, %8, %cst_47 {dimension_numbers = #tpu.dot_dimension_numbers<[1], [0], [0], [1], [0, 0, 1, 1], [], []>} : vector<2x128xf32>, vector<128x512xf32>, vector<2x512xf32> -> vector<2x512xf32>
    %158 = arith.addf %156, %157 : vector<2x512xf32>
    %159 = vector.extract_strided_slice %158 {offsets = [0, 0], sizes = [2, 384], strides = [1, 1]} : vector<2x512xf32> to vector<2x384xf32>
    %160 = arith.negf %159 : vector<2x384xf32>
    %161 = math.exp %160 : vector<2x384xf32>
    %cst_48 = arith.constant 1.000000e+00 : f32
    %162 = vector.broadcast %cst_48 : f32 to vector<2x384xf32>
    %163 = arith.addf %162, %161 : vector<2x384xf32>
    %164 = arith.divf %162, %163 : vector<2x384xf32>
    %165 = vector.extract_strided_slice %158 {offsets = [0, 384], sizes = [2, 128], strides = [1, 1]} : vector<2x512xf32> to vector<2x128xf32>
    %166 = math.tanh %165 : vector<2x128xf32>
    %167 = vector.extract_strided_slice %164 {offsets = [0, 0], sizes = [2, 128], strides = [1, 1]} : vector<2x384xf32> to vector<2x128xf32>
    %168 = vector.extract_strided_slice %164 {offsets = [0, 128], sizes = [2, 128], strides = [1, 1]} : vector<2x384xf32> to vector<2x128xf32>
    %169 = vector.extract_strided_slice %164 {offsets = [0, 256], sizes = [2, 128], strides = [1, 1]} : vector<2x384xf32> to vector<2x128xf32>
    %170 = arith.mulf %168, %127 : vector<2x128xf32>
    %171 = arith.mulf %167, %166 : vector<2x128xf32>
    %172 = arith.addf %170, %171 : vector<2x128xf32>
    %173 = math.tanh %172 : vector<2x128xf32>
    %174 = arith.mulf %169, %173 : vector<2x128xf32>
    %cst_49 = arith.constant dense<0.000000e+00> : vector<2x512xf32>
    %175 = tpu.matmul %174, %9, %cst_49 {dimension_numbers = #tpu.dot_dimension_numbers<[1], [0], [0], [1], [0, 0, 1, 1], [], []>} : vector<2x128xf32>, vector<128x512xf32>, vector<2x512xf32> -> vector<2x512xf32>
    %cst_50 = arith.constant dense<0.000000e+00> : vector<2x512xf32>
    %176 = tpu.matmul %149, %10, %cst_50 {dimension_numbers = #tpu.dot_dimension_numbers<[1], [0], [0], [1], [0, 0, 1, 1], [], []>} : vector<2x128xf32>, vector<128x512xf32>, vector<2x512xf32> -> vector<2x512xf32>
    %177 = arith.addf %175, %176 : vector<2x512xf32>
    %178 = arith.addf %177, %13 : vector<2x512xf32>
    %179 = vector.extract_strided_slice %178 {offsets = [0, 0], sizes = [2, 384], strides = [1, 1]} : vector<2x512xf32> to vector<2x384xf32>
    %180 = arith.negf %179 : vector<2x384xf32>
    %181 = math.exp %180 : vector<2x384xf32>
    %cst_51 = arith.constant 1.000000e+00 : f32
    %182 = vector.broadcast %cst_51 : f32 to vector<2x384xf32>
    %183 = arith.addf %182, %181 : vector<2x384xf32>
    %184 = arith.divf %182, %183 : vector<2x384xf32>
    %185 = vector.extract_strided_slice %178 {offsets = [0, 384], sizes = [2, 128], strides = [1, 1]} : vector<2x512xf32> to vector<2x128xf32>
    %186 = math.tanh %185 : vector<2x128xf32>
    %187 = vector.extract_strided_slice %184 {offsets = [0, 0], sizes = [2, 128], strides = [1, 1]} : vector<2x384xf32> to vector<2x128xf32>
    %188 = vector.extract_strided_slice %184 {offsets = [0, 128], sizes = [2, 128], strides = [1, 1]} : vector<2x384xf32> to vector<2x128xf32>
    %189 = vector.extract_strided_slice %184 {offsets = [0, 256], sizes = [2, 128], strides = [1, 1]} : vector<2x384xf32> to vector<2x128xf32>
    %190 = arith.mulf %188, %147 : vector<2x128xf32>
    %191 = arith.mulf %187, %186 : vector<2x128xf32>
    %192 = arith.addf %190, %191 : vector<2x128xf32>
    %193 = math.tanh %192 : vector<2x128xf32>
    %194 = arith.mulf %189, %193 : vector<2x128xf32>
    %c4_i32 = arith.constant 4 : i32
    %c0_i32_52 = arith.constant 0 : i32
    %195 = arith.addi %c0_i32_52, %c4_i32 : i32
    %196 = arith.index_cast %195 : i32 to index
    %c0_53 = arith.constant 0 : index
    %197 = vector.load %arg10[%196, %c0_53] : memref<16x512xf32, #tpu.memory_space<vmem>>, vector<1x512xf32>
    %c8_i32_54 = arith.constant 8 : i32
    %198 = arith.addi %c8_i32_54, %c4_i32 : i32
    %199 = arith.index_cast %198 : i32 to index
    %c0_55 = arith.constant 0 : index
    %200 = vector.load %arg10[%199, %c0_55] : memref<16x512xf32, #tpu.memory_space<vmem>>, vector<1x512xf32>
    %201 = tpu.concatenate %197, %200 in 0 : vector<1x512xf32>, vector<1x512xf32> -> vector<2x512xf32>
    %cst_56 = arith.constant dense<0.000000e+00> : vector<2x512xf32>
    %202 = tpu.matmul %174, %8, %cst_56 {dimension_numbers = #tpu.dot_dimension_numbers<[1], [0], [0], [1], [0, 0, 1, 1], [], []>} : vector<2x128xf32>, vector<128x512xf32>, vector<2x512xf32> -> vector<2x512xf32>
    %203 = arith.addf %201, %202 : vector<2x512xf32>
    %204 = vector.extract_strided_slice %203 {offsets = [0, 0], sizes = [2, 384], strides = [1, 1]} : vector<2x512xf32> to vector<2x384xf32>
    %205 = arith.negf %204 : vector<2x384xf32>
    %206 = math.exp %205 : vector<2x384xf32>
    %cst_57 = arith.constant 1.000000e+00 : f32
    %207 = vector.broadcast %cst_57 : f32 to vector<2x384xf32>
    %208 = arith.addf %207, %206 : vector<2x384xf32>
    %209 = arith.divf %207, %208 : vector<2x384xf32>
    %210 = vector.extract_strided_slice %203 {offsets = [0, 384], sizes = [2, 128], strides = [1, 1]} : vector<2x512xf32> to vector<2x128xf32>
    %211 = math.tanh %210 : vector<2x128xf32>
    %212 = vector.extract_strided_slice %209 {offsets = [0, 0], sizes = [2, 128], strides = [1, 1]} : vector<2x384xf32> to vector<2x128xf32>
    %213 = vector.extract_strided_slice %209 {offsets = [0, 128], sizes = [2, 128], strides = [1, 1]} : vector<2x384xf32> to vector<2x128xf32>
    %214 = vector.extract_strided_slice %209 {offsets = [0, 256], sizes = [2, 128], strides = [1, 1]} : vector<2x384xf32> to vector<2x128xf32>
    %215 = arith.mulf %213, %172 : vector<2x128xf32>
    %216 = arith.mulf %212, %211 : vector<2x128xf32>
    %217 = arith.addf %215, %216 : vector<2x128xf32>
    %218 = math.tanh %217 : vector<2x128xf32>
    %219 = arith.mulf %214, %218 : vector<2x128xf32>
    %cst_58 = arith.constant dense<0.000000e+00> : vector<2x512xf32>
    %220 = tpu.matmul %219, %9, %cst_58 {dimension_numbers = #tpu.dot_dimension_numbers<[1], [0], [0], [1], [0, 0, 1, 1], [], []>} : vector<2x128xf32>, vector<128x512xf32>, vector<2x512xf32> -> vector<2x512xf32>
    %cst_59 = arith.constant dense<0.000000e+00> : vector<2x512xf32>
    %221 = tpu.matmul %194, %10, %cst_59 {dimension_numbers = #tpu.dot_dimension_numbers<[1], [0], [0], [1], [0, 0, 1, 1], [], []>} : vector<2x128xf32>, vector<128x512xf32>, vector<2x512xf32> -> vector<2x512xf32>
    %222 = arith.addf %220, %221 : vector<2x512xf32>
    %223 = arith.addf %222, %13 : vector<2x512xf32>
    %224 = vector.extract_strided_slice %223 {offsets = [0, 0], sizes = [2, 384], strides = [1, 1]} : vector<2x512xf32> to vector<2x384xf32>
    %225 = arith.negf %224 : vector<2x384xf32>
    %226 = math.exp %225 : vector<2x384xf32>
    %cst_60 = arith.constant 1.000000e+00 : f32
    %227 = vector.broadcast %cst_60 : f32 to vector<2x384xf32>
    %228 = arith.addf %227, %226 : vector<2x384xf32>
    %229 = arith.divf %227, %228 : vector<2x384xf32>
    %230 = vector.extract_strided_slice %223 {offsets = [0, 384], sizes = [2, 128], strides = [1, 1]} : vector<2x512xf32> to vector<2x128xf32>
    %231 = math.tanh %230 : vector<2x128xf32>
    %232 = vector.extract_strided_slice %229 {offsets = [0, 0], sizes = [2, 128], strides = [1, 1]} : vector<2x384xf32> to vector<2x128xf32>
    %233 = vector.extract_strided_slice %229 {offsets = [0, 128], sizes = [2, 128], strides = [1, 1]} : vector<2x384xf32> to vector<2x128xf32>
    %234 = vector.extract_strided_slice %229 {offsets = [0, 256], sizes = [2, 128], strides = [1, 1]} : vector<2x384xf32> to vector<2x128xf32>
    %235 = arith.mulf %233, %192 : vector<2x128xf32>
    %236 = arith.mulf %232, %231 : vector<2x128xf32>
    %237 = arith.addf %235, %236 : vector<2x128xf32>
    %238 = math.tanh %237 : vector<2x128xf32>
    %239 = arith.mulf %234, %238 : vector<2x128xf32>
    %c5_i32 = arith.constant 5 : i32
    %c0_i32_61 = arith.constant 0 : i32
    %240 = arith.addi %c0_i32_61, %c5_i32 : i32
    %241 = arith.index_cast %240 : i32 to index
    %c0_62 = arith.constant 0 : index
    %242 = vector.load %arg10[%241, %c0_62] : memref<16x512xf32, #tpu.memory_space<vmem>>, vector<1x512xf32>
    %c8_i32_63 = arith.constant 8 : i32
    %243 = arith.addi %c8_i32_63, %c5_i32 : i32
    %244 = arith.index_cast %243 : i32 to index
    %c0_64 = arith.constant 0 : index
    %245 = vector.load %arg10[%244, %c0_64] : memref<16x512xf32, #tpu.memory_space<vmem>>, vector<1x512xf32>
    %246 = tpu.concatenate %242, %245 in 0 : vector<1x512xf32>, vector<1x512xf32> -> vector<2x512xf32>
    %cst_65 = arith.constant dense<0.000000e+00> : vector<2x512xf32>
    %247 = tpu.matmul %219, %8, %cst_65 {dimension_numbers = #tpu.dot_dimension_numbers<[1], [0], [0], [1], [0, 0, 1, 1], [], []>} : vector<2x128xf32>, vector<128x512xf32>, vector<2x512xf32> -> vector<2x512xf32>
    %248 = arith.addf %246, %247 : vector<2x512xf32>
    %249 = vector.extract_strided_slice %248 {offsets = [0, 0], sizes = [2, 384], strides = [1, 1]} : vector<2x512xf32> to vector<2x384xf32>
    %250 = arith.negf %249 : vector<2x384xf32>
    %251 = math.exp %250 : vector<2x384xf32>
    %cst_66 = arith.constant 1.000000e+00 : f32
    %252 = vector.broadcast %cst_66 : f32 to vector<2x384xf32>
    %253 = arith.addf %252, %251 : vector<2x384xf32>
    %254 = arith.divf %252, %253 : vector<2x384xf32>
    %255 = vector.extract_strided_slice %248 {offsets = [0, 384], sizes = [2, 128], strides = [1, 1]} : vector<2x512xf32> to vector<2x128xf32>
    %256 = math.tanh %255 : vector<2x128xf32>
    %257 = vector.extract_strided_slice %254 {offsets = [0, 0], sizes = [2, 128], strides = [1, 1]} : vector<2x384xf32> to vector<2x128xf32>
    %258 = vector.extract_strided_slice %254 {offsets = [0, 128], sizes = [2, 128], strides = [1, 1]} : vector<2x384xf32> to vector<2x128xf32>
    %259 = vector.extract_strided_slice %254 {offsets = [0, 256], sizes = [2, 128], strides = [1, 1]} : vector<2x384xf32> to vector<2x128xf32>
    %260 = arith.mulf %258, %217 : vector<2x128xf32>
    %261 = arith.mulf %257, %256 : vector<2x128xf32>
    %262 = arith.addf %260, %261 : vector<2x128xf32>
    %263 = math.tanh %262 : vector<2x128xf32>
    %264 = arith.mulf %259, %263 : vector<2x128xf32>
    %cst_67 = arith.constant dense<0.000000e+00> : vector<2x512xf32>
    %265 = tpu.matmul %264, %9, %cst_67 {dimension_numbers = #tpu.dot_dimension_numbers<[1], [0], [0], [1], [0, 0, 1, 1], [], []>} : vector<2x128xf32>, vector<128x512xf32>, vector<2x512xf32> -> vector<2x512xf32>
    %cst_68 = arith.constant dense<0.000000e+00> : vector<2x512xf32>
    %266 = tpu.matmul %239, %10, %cst_68 {dimension_numbers = #tpu.dot_dimension_numbers<[1], [0], [0], [1], [0, 0, 1, 1], [], []>} : vector<2x128xf32>, vector<128x512xf32>, vector<2x512xf32> -> vector<2x512xf32>
    %267 = arith.addf %265, %266 : vector<2x512xf32>
    %268 = arith.addf %267, %13 : vector<2x512xf32>
    %269 = vector.extract_strided_slice %268 {offsets = [0, 0], sizes = [2, 384], strides = [1, 1]} : vector<2x512xf32> to vector<2x384xf32>
    %270 = arith.negf %269 : vector<2x384xf32>
    %271 = math.exp %270 : vector<2x384xf32>
    %cst_69 = arith.constant 1.000000e+00 : f32
    %272 = vector.broadcast %cst_69 : f32 to vector<2x384xf32>
    %273 = arith.addf %272, %271 : vector<2x384xf32>
    %274 = arith.divf %272, %273 : vector<2x384xf32>
    %275 = vector.extract_strided_slice %268 {offsets = [0, 384], sizes = [2, 128], strides = [1, 1]} : vector<2x512xf32> to vector<2x128xf32>
    %276 = math.tanh %275 : vector<2x128xf32>
    %277 = vector.extract_strided_slice %274 {offsets = [0, 0], sizes = [2, 128], strides = [1, 1]} : vector<2x384xf32> to vector<2x128xf32>
    %278 = vector.extract_strided_slice %274 {offsets = [0, 128], sizes = [2, 128], strides = [1, 1]} : vector<2x384xf32> to vector<2x128xf32>
    %279 = vector.extract_strided_slice %274 {offsets = [0, 256], sizes = [2, 128], strides = [1, 1]} : vector<2x384xf32> to vector<2x128xf32>
    %280 = arith.mulf %278, %237 : vector<2x128xf32>
    %281 = arith.mulf %277, %276 : vector<2x128xf32>
    %282 = arith.addf %280, %281 : vector<2x128xf32>
    %283 = math.tanh %282 : vector<2x128xf32>
    %284 = arith.mulf %279, %283 : vector<2x128xf32>
    %c6_i32 = arith.constant 6 : i32
    %c0_i32_70 = arith.constant 0 : i32
    %285 = arith.addi %c0_i32_70, %c6_i32 : i32
    %286 = arith.index_cast %285 : i32 to index
    %c0_71 = arith.constant 0 : index
    %287 = vector.load %arg10[%286, %c0_71] : memref<16x512xf32, #tpu.memory_space<vmem>>, vector<1x512xf32>
    %c8_i32_72 = arith.constant 8 : i32
    %288 = arith.addi %c8_i32_72, %c6_i32 : i32
    %289 = arith.index_cast %288 : i32 to index
    %c0_73 = arith.constant 0 : index
    %290 = vector.load %arg10[%289, %c0_73] : memref<16x512xf32, #tpu.memory_space<vmem>>, vector<1x512xf32>
    %291 = tpu.concatenate %287, %290 in 0 : vector<1x512xf32>, vector<1x512xf32> -> vector<2x512xf32>
    %cst_74 = arith.constant dense<0.000000e+00> : vector<2x512xf32>
    %292 = tpu.matmul %264, %8, %cst_74 {dimension_numbers = #tpu.dot_dimension_numbers<[1], [0], [0], [1], [0, 0, 1, 1], [], []>} : vector<2x128xf32>, vector<128x512xf32>, vector<2x512xf32> -> vector<2x512xf32>
    %293 = arith.addf %291, %292 : vector<2x512xf32>
    %294 = vector.extract_strided_slice %293 {offsets = [0, 0], sizes = [2, 384], strides = [1, 1]} : vector<2x512xf32> to vector<2x384xf32>
    %295 = arith.negf %294 : vector<2x384xf32>
    %296 = math.exp %295 : vector<2x384xf32>
    %cst_75 = arith.constant 1.000000e+00 : f32
    %297 = vector.broadcast %cst_75 : f32 to vector<2x384xf32>
    %298 = arith.addf %297, %296 : vector<2x384xf32>
    %299 = arith.divf %297, %298 : vector<2x384xf32>
    %300 = vector.extract_strided_slice %293 {offsets = [0, 384], sizes = [2, 128], strides = [1, 1]} : vector<2x512xf32> to vector<2x128xf32>
    %301 = math.tanh %300 : vector<2x128xf32>
    %302 = vector.extract_strided_slice %299 {offsets = [0, 0], sizes = [2, 128], strides = [1, 1]} : vector<2x384xf32> to vector<2x128xf32>
    %303 = vector.extract_strided_slice %299 {offsets = [0, 128], sizes = [2, 128], strides = [1, 1]} : vector<2x384xf32> to vector<2x128xf32>
    %304 = vector.extract_strided_slice %299 {offsets = [0, 256], sizes = [2, 128], strides = [1, 1]} : vector<2x384xf32> to vector<2x128xf32>
    %305 = arith.mulf %303, %262 : vector<2x128xf32>
    %306 = arith.mulf %302, %301 : vector<2x128xf32>
    %307 = arith.addf %305, %306 : vector<2x128xf32>
    %308 = math.tanh %307 : vector<2x128xf32>
    %309 = arith.mulf %304, %308 : vector<2x128xf32>
    %cst_76 = arith.constant dense<0.000000e+00> : vector<2x512xf32>
    %310 = tpu.matmul %309, %9, %cst_76 {dimension_numbers = #tpu.dot_dimension_numbers<[1], [0], [0], [1], [0, 0, 1, 1], [], []>} : vector<2x128xf32>, vector<128x512xf32>, vector<2x512xf32> -> vector<2x512xf32>
    %cst_77 = arith.constant dense<0.000000e+00> : vector<2x512xf32>
    %311 = tpu.matmul %284, %10, %cst_77 {dimension_numbers = #tpu.dot_dimension_numbers<[1], [0], [0], [1], [0, 0, 1, 1], [], []>} : vector<2x128xf32>, vector<128x512xf32>, vector<2x512xf32> -> vector<2x512xf32>
    %312 = arith.addf %310, %311 : vector<2x512xf32>
    %313 = arith.addf %312, %13 : vector<2x512xf32>
    %314 = vector.extract_strided_slice %313 {offsets = [0, 0], sizes = [2, 384], strides = [1, 1]} : vector<2x512xf32> to vector<2x384xf32>
    %315 = arith.negf %314 : vector<2x384xf32>
    %316 = math.exp %315 : vector<2x384xf32>
    %cst_78 = arith.constant 1.000000e+00 : f32
    %317 = vector.broadcast %cst_78 : f32 to vector<2x384xf32>
    %318 = arith.addf %317, %316 : vector<2x384xf32>
    %319 = arith.divf %317, %318 : vector<2x384xf32>
    %320 = vector.extract_strided_slice %313 {offsets = [0, 384], sizes = [2, 128], strides = [1, 1]} : vector<2x512xf32> to vector<2x128xf32>
    %321 = math.tanh %320 : vector<2x128xf32>
    %322 = vector.extract_strided_slice %319 {offsets = [0, 0], sizes = [2, 128], strides = [1, 1]} : vector<2x384xf32> to vector<2x128xf32>
    %323 = vector.extract_strided_slice %319 {offsets = [0, 128], sizes = [2, 128], strides = [1, 1]} : vector<2x384xf32> to vector<2x128xf32>
    %324 = vector.extract_strided_slice %319 {offsets = [0, 256], sizes = [2, 128], strides = [1, 1]} : vector<2x384xf32> to vector<2x128xf32>
    %325 = arith.mulf %323, %282 : vector<2x128xf32>
    %326 = arith.mulf %322, %321 : vector<2x128xf32>
    %327 = arith.addf %325, %326 : vector<2x128xf32>
    %328 = math.tanh %327 : vector<2x128xf32>
    %329 = arith.mulf %324, %328 : vector<2x128xf32>
    %c7_i32 = arith.constant 7 : i32
    %c0_i32_79 = arith.constant 0 : i32
    %330 = arith.addi %c0_i32_79, %c7_i32 : i32
    %331 = arith.index_cast %330 : i32 to index
    %c0_80 = arith.constant 0 : index
    %332 = vector.load %arg10[%331, %c0_80] : memref<16x512xf32, #tpu.memory_space<vmem>>, vector<1x512xf32>
    %c8_i32_81 = arith.constant 8 : i32
    %333 = arith.addi %c8_i32_81, %c7_i32 : i32
    %334 = arith.index_cast %333 : i32 to index
    %c0_82 = arith.constant 0 : index
    %335 = vector.load %arg10[%334, %c0_82] : memref<16x512xf32, #tpu.memory_space<vmem>>, vector<1x512xf32>
    %336 = tpu.concatenate %332, %335 in 0 : vector<1x512xf32>, vector<1x512xf32> -> vector<2x512xf32>
    %cst_83 = arith.constant dense<0.000000e+00> : vector<2x512xf32>
    %337 = tpu.matmul %309, %8, %cst_83 {dimension_numbers = #tpu.dot_dimension_numbers<[1], [0], [0], [1], [0, 0, 1, 1], [], []>} : vector<2x128xf32>, vector<128x512xf32>, vector<2x512xf32> -> vector<2x512xf32>
    %338 = arith.addf %336, %337 : vector<2x512xf32>
    %339 = vector.extract_strided_slice %338 {offsets = [0, 0], sizes = [2, 384], strides = [1, 1]} : vector<2x512xf32> to vector<2x384xf32>
    %340 = arith.negf %339 : vector<2x384xf32>
    %341 = math.exp %340 : vector<2x384xf32>
    %cst_84 = arith.constant 1.000000e+00 : f32
    %342 = vector.broadcast %cst_84 : f32 to vector<2x384xf32>
    %343 = arith.addf %342, %341 : vector<2x384xf32>
    %344 = arith.divf %342, %343 : vector<2x384xf32>
    %345 = vector.extract_strided_slice %338 {offsets = [0, 384], sizes = [2, 128], strides = [1, 1]} : vector<2x512xf32> to vector<2x128xf32>
    %346 = math.tanh %345 : vector<2x128xf32>
    %347 = vector.extract_strided_slice %344 {offsets = [0, 0], sizes = [2, 128], strides = [1, 1]} : vector<2x384xf32> to vector<2x128xf32>
    %348 = vector.extract_strided_slice %344 {offsets = [0, 128], sizes = [2, 128], strides = [1, 1]} : vector<2x384xf32> to vector<2x128xf32>
    %349 = vector.extract_strided_slice %344 {offsets = [0, 256], sizes = [2, 128], strides = [1, 1]} : vector<2x384xf32> to vector<2x128xf32>
    %350 = arith.mulf %348, %307 : vector<2x128xf32>
    %351 = arith.mulf %347, %346 : vector<2x128xf32>
    %352 = arith.addf %350, %351 : vector<2x128xf32>
    %353 = math.tanh %352 : vector<2x128xf32>
    %354 = arith.mulf %349, %353 : vector<2x128xf32>
    %cst_85 = arith.constant dense<0.000000e+00> : vector<2x512xf32>
    %355 = tpu.matmul %354, %9, %cst_85 {dimension_numbers = #tpu.dot_dimension_numbers<[1], [0], [0], [1], [0, 0, 1, 1], [], []>} : vector<2x128xf32>, vector<128x512xf32>, vector<2x512xf32> -> vector<2x512xf32>
    %cst_86 = arith.constant dense<0.000000e+00> : vector<2x512xf32>
    %356 = tpu.matmul %329, %10, %cst_86 {dimension_numbers = #tpu.dot_dimension_numbers<[1], [0], [0], [1], [0, 0, 1, 1], [], []>} : vector<2x128xf32>, vector<128x512xf32>, vector<2x512xf32> -> vector<2x512xf32>
    %357 = arith.addf %355, %356 : vector<2x512xf32>
    %358 = arith.addf %357, %13 : vector<2x512xf32>
    %359 = vector.extract_strided_slice %358 {offsets = [0, 0], sizes = [2, 384], strides = [1, 1]} : vector<2x512xf32> to vector<2x384xf32>
    %360 = arith.negf %359 : vector<2x384xf32>
    %361 = math.exp %360 : vector<2x384xf32>
    %cst_87 = arith.constant 1.000000e+00 : f32
    %362 = vector.broadcast %cst_87 : f32 to vector<2x384xf32>
    %363 = arith.addf %362, %361 : vector<2x384xf32>
    %364 = arith.divf %362, %363 : vector<2x384xf32>
    %365 = vector.extract_strided_slice %358 {offsets = [0, 384], sizes = [2, 128], strides = [1, 1]} : vector<2x512xf32> to vector<2x128xf32>
    %366 = math.tanh %365 : vector<2x128xf32>
    %367 = vector.extract_strided_slice %364 {offsets = [0, 0], sizes = [2, 128], strides = [1, 1]} : vector<2x384xf32> to vector<2x128xf32>
    %368 = vector.extract_strided_slice %364 {offsets = [0, 128], sizes = [2, 128], strides = [1, 1]} : vector<2x384xf32> to vector<2x128xf32>
    %369 = vector.extract_strided_slice %364 {offsets = [0, 256], sizes = [2, 128], strides = [1, 1]} : vector<2x384xf32> to vector<2x128xf32>
    %370 = arith.mulf %368, %327 : vector<2x128xf32>
    %371 = arith.mulf %367, %366 : vector<2x128xf32>
    %372 = arith.addf %370, %371 : vector<2x128xf32>
    %373 = math.tanh %372 : vector<2x128xf32>
    %374 = arith.mulf %369, %373 : vector<2x128xf32>
    %c8_i32_88 = arith.constant 8 : i32
    %c0_89 = arith.constant 0 : index
    %c0_90 = arith.constant 0 : index
    %375 = vector.load %arg7[%c0_89, %c0_90] : memref<128x128xf32, #tpu.memory_space<vmem>>, vector<128x128xf32>
    %cst_91 = arith.constant dense<0.000000e+00> : vector<2x128xf32>
    %376 = tpu.matmul %374, %375, %cst_91 {dimension_numbers = #tpu.dot_dimension_numbers<[1], [0], [0], [1], [0, 0, 1, 1], [], []>} : vector<2x128xf32>, vector<128x128xf32>, vector<2x128xf32> -> vector<2x128xf32>
    %c0_92 = arith.constant 0 : index
    %c0_93 = arith.constant 0 : index
    %377 = vector.load %arg8[%c0_92, %c0_93] : memref<1x128xf32, #tpu.memory_space<vmem>>, vector<1x128xf32>
    %378 = vector.broadcast %377 : vector<1x128xf32> to vector<2x128xf32>
    %379 = arith.addf %376, %378 : vector<2x128xf32>
    %c0_94 = arith.constant 0 : index
    %c0_95 = arith.constant 0 : index
    %380 = vector.load %arg9[%c0_94, %c0_95] : memref<2x128xf32, #tpu.memory_space<vmem>>, vector<2x128xf32>
    tpu.vector_store %arg9[%c0_94, %c0_95], %379 {strides = array<i32>} : memref<2x128xf32, #tpu.memory_space<vmem>>, vector<2x128xf32>,
    return
  }
}

</mosaic_0001>

<bundles_post_ra>
// kernel: tpu_custom_call.1
= control target key start
LH: loop header
LB: loop body
LE: loop exit
PB: predicated region body
PF: predicated region fallthrough
CT: control target
= control target key end

     0   :  { %14 = vsyncpa [#allocation4], 0  ;;  %s8441_s0 = inlined_call_operand.hbm [shape: f32[2,8,16], index: 0, kind: input, shape index: {}]   ;;  %s8442_s1 = inlined_call_operand.hbm [shape: f32[16,512], index: 1, kind: input, shape index: {}]   ;;  %s8443_s2 = inlined_call_operand.vmem [shape: f32[1,512], index: 2, kind: input, shape index: {}]   ;;  %s8444_s3 = inlined_call_operand.hbm [shape: f32[128,512], index: 3, kind: input, shape index: {}]   ;;  %s8445_s4 = inlined_call_operand.hbm [shape: f32[128,512], index: 4, kind: input, shape index: {}]   ;;  %s8446_s5 = inlined_call_operand.hbm [shape: f32[128,512], index: 5, kind: input, shape index: {}]   ;;  %s8447_s6 = inlined_call_operand.vmem [shape: f32[1,512], index: 6, kind: input, shape index: {}]   ;;  %s8448_s7 = inlined_call_operand.hbm [shape: f32[128,128], index: 7, kind: input, shape index: {}]   ;;  %s8449_s8 = inlined_call_operand.vmem [shape: f32[1,128], index: 8, kind: input, shape index: {}]   ;;  %s8450_s9 = inlined_call_operand.hbm [shape: f32[2,128], index: 9, kind: output, shape index: {}]  }
   0x1   :  { %15 = vsyncpa [#allocation7], 0 }
   0x2   :  { %16 = vsyncpa [#allocation10], 0 }
   0x3   :  { %17 = vsyncpa [#allocation13], 0 }
   0x4   :  { %18 = vsyncpa [#allocation5], 0  ;;  %s7037_s30 = smov [#allocation6]   ;;  %s6873_s13 = scalar_lea.hbm %s8442_s1, 1024 }
   0x5   :  { %s36_s10 = sshll.u32 %s7037_s30, 4  ;;  %p6874_p0 = scmp.ne.s32.totalorder %s8442_s1, %s6873_s13  ;;  %s37_s10 = int_to_ptr.vmem [resolvable:$true] %s36_s10 }
   0x6   :  { %p6877_p1 = scmp.lt.u32.totalorder %s6873_s13, %s8442_s1 }
   0x8   :  { %p6879_p2 = pnand %p6877_p1, %p6874_p0 }
   0xa   :  { %6882 = shalt.err (!%p6879_p2)
}
   0xb   :  { %s6883_s18 = scalar_lea.vmem %s37_s10, 1024  ;;  %p6888_p4 = scmp.lt.s32.totalorder %s37_s10, %s37_s10 }
   0xc   :  { %p6884_p3 = scmp.ne.s32.totalorder %s37_s10, %s6883_s18  ;;  %p6889_p5 = scmp.lt.s32.totalorder %s6883_s18, %s6883_s18 }
   0xe   :  { %p6890_p6 = por %p6889_p5, %p6888_p4 }
  0x10   :  { %p6891_p7 = pnand %p6890_p6, %p6884_p3 }
  0x12   :  { %6894 = shalt.err (!%p6891_p7)
}
  0x13   :  { %s7038_s19 = smov 512   ;;  %s7039_s20 = smov 32  }
  0x14   :  { %42 = dma.hbm_to_vmem [thread:$0]  %s8442_s1, 1024, %s37_s10, [#allocation7], %s7038_s19, %s7038_s19, %s7039_s20  }
  0x15   :  { %s7040_s23 = smov [#allocation9]   ;;  %s7041_s25 = smov [#allocation3]  }
  0x16   :  { %s62_s24 = sshll.u32 %s7040_s23, 4  ;;  %s24_s26 = sshll.u32 %s7041_s25, 4  ;;  %s63_s24 = int_to_ptr.vmem [resolvable:$true] %s62_s24  ;;  %s25_s26 = int_to_ptr.vmem [resolvable:$true] %s24_s26 }
  0x17   :  { %s6895_s29 = scalar_lea.hbm %s8445_s4, 8192 }
  0x18   :  { %p6896_p8 = scmp.ne.s32.totalorder %s8445_s4, %s6895_s29  ;;  %p6899_p9 = scmp.lt.u32.totalorder %s6895_s29, %s8445_s4 }
  0x1a   :  { %p6901_p10 = pnand %p6899_p9, %p6896_p8 }
  0x1c   :  { %6904 = shalt.err (!%p6901_p10)
}
  0x1d   :  { %s6905_s1 = scalar_lea.vmem %s63_s24, 8192  ;;  %p6910_p12 = scmp.lt.s32.totalorder %s63_s24, %s63_s24 }
  0x1e   :  { %p6906_p11 = scmp.ne.s32.totalorder %s63_s24, %s6905_s1  ;;  %p6911_p13 = scmp.lt.s32.totalorder %s6905_s1, %s6905_s1 }
  0x20   :  { %p6912_p0 = por %p6911_p13, %p6910_p12 }
  0x22   :  { %p6913_p1 = pnand %p6912_p0, %p6906_p11 }
  0x24   :  { %6916 = shalt.err (!%p6913_p1)
}
  0x25   :  { %68 = dma.hbm_to_vmem [thread:$0]  %s8445_s4, 8192, %s63_s24, [#allocation10], %s7038_s19, %s7038_s19, %s7039_s20  }
  0x26   :  { %s6917_s17 = scalar_lea.hbm %s8441_s0, 256 }
  0x27   :  { %p6918_p2 = scmp.ne.s32.totalorder %s8441_s0, %s6917_s17  ;;  %p6921_p3 = scmp.lt.u32.totalorder %s6917_s17, %s8441_s0 }
  0x29   :  { %p6923_p4 = pnand %p6921_p3, %p6918_p2 }
  0x2b   :  { %6926 = shalt.err (!%p6923_p4)
}
  0x2c   :  { %s6927_s25 = scalar_lea.vmem %s25_s26, 256  ;;  %p6932_p6 = scmp.lt.s32.totalorder %s25_s26, %s25_s26 }
  0x2d   :  { %p6928_p5 = scmp.ne.s32.totalorder %s25_s26, %s6927_s25  ;;  %p6933_p7 = scmp.lt.s32.totalorder %s6927_s25, %s6927_s25 }
  0x2f   :  { %p6934_p8 = por %p6933_p7, %p6932_p6 }
  0x31   :  { %p6935_p9 = pnand %p6934_p8, %p6928_p5 }
  0x33   :  { %6938 = shalt.err (!%p6935_p9)
}
  0x34   :  { %s7042_s4 = smov 128   ;;  %s7043_s24 = smov 8  }
  0x35   :  { %30 = dma.hbm_to_vmem [thread:$0]  %s8441_s0, 256, %s25_s26, [#allocation4], %s7042_s4, %s7042_s4, %s7043_s24  }
  0x36   :  { %s7044_s29 = smov [#allocation8]   ;;  %s7045_s11 = smov [#allocation11]  }
  0x37   :  { %s50_s30 = sshll.u32 %s7044_s29, 4  ;;  %s74_s12 = sshll.u32 %s7045_s11, 4  ;;  %s51_s30 = int_to_ptr.vmem [resolvable:$true] %s50_s30  ;;  %s75_s12 = int_to_ptr.vmem [resolvable:$true] %s74_s12 }
  0x38   :  { %s6939_s10 = scalar_lea.hbm %s8444_s3, 8192 }
  0x39   :  { %p6940_p10 = scmp.ne.s32.totalorder %s8444_s3, %s6939_s10  ;;  %p6943_p11 = scmp.lt.u32.totalorder %s6939_s10, %s8444_s3 }
  0x3b   :  { %p6945_p12 = pnand %p6943_p11, %p6940_p10 }
  0x3d   :  { %6948 = shalt.err (!%p6945_p12)
}
  0x3e   :  { %s6949_s0 = scalar_lea.vmem %s51_s30, 8192  ;;  %p6954_p0 = scmp.lt.s32.totalorder %s51_s30, %s51_s30 }
  0x3f   :  { %p6950_p13 = scmp.ne.s32.totalorder %s51_s30, %s6949_s0  ;;  %p6955_p1 = scmp.lt.s32.totalorder %s6949_s0, %s6949_s0 }
  0x41   :  { %p6956_p2 = por %p6955_p1, %p6954_p0 }
  0x43   :  { %p6957_p3 = pnand %p6956_p2, %p6950_p13 }
  0x45   :  { %6960 = shalt.err (!%p6957_p3)
}
  0x46   :  { %56 = dma.hbm_to_vmem [thread:$0]  %s8444_s3, 8192, %s51_s30, [#allocation7], %s7038_s19, %s7038_s19, %s7039_s20  }
  0x47   :  { %s6961_s23 = scalar_lea.hbm %s8446_s5, 8192 }
  0x48   :  { %p6962_p4 = scmp.ne.s32.totalorder %s8446_s5, %s6961_s23  ;;  %p6965_p5 = scmp.lt.u32.totalorder %s6961_s23, %s8446_s5 }
  0x4a   :  { %p6967_p6 = pnand %p6965_p5, %p6962_p4 }
  0x4c   :  { %6970 = shalt.err (!%p6967_p6)
}
  0x4d   :  { %s6971_s11 = scalar_lea.vmem %s75_s12, 8192  ;;  %p6976_p8 = scmp.lt.s32.totalorder %s75_s12, %s75_s12 }
  0x4e   :  { %p6972_p7 = scmp.ne.s32.totalorder %s75_s12, %s6971_s11  ;;  %p6977_p9 = scmp.lt.s32.totalorder %s6971_s11, %s6971_s11 }
  0x50   :  { %p6978_p10 = por %p6977_p9, %p6976_p8 }
  0x52   :  { %p6979_p11 = pnand %p6978_p10, %p6972_p7 }
  0x54   :  { %6982 = shalt.err (!%p6979_p11)
}
  0x55   :  { %80 = dma.hbm_to_vmem [thread:$0]  %s8446_s5, 8192, %s75_s12, [#allocation10], %s7038_s19, %s7038_s19, %s7039_s20  }
  0x56   :  { %s7046_s13 = smov [#allocation12]   ;;  %s6983_s15 = scalar_lea.hbm %s8448_s7, 2048 }
  0x57   :  { %s88_s1 = sshll.u32 %s7046_s13, 4  ;;  %p6984_p12 = scmp.ne.s32.totalorder %s8448_s7, %s6983_s15  ;;  %s89_s1 = int_to_ptr.vmem [resolvable:$true] %s88_s1 }
  0x58   :  { %p6987_p13 = scmp.lt.u32.totalorder %s6983_s15, %s8448_s7 }
  0x5a   :  { %p6989_p0 = pnand %p6987_p13, %p6984_p12 }
  0x5c   :  { %6992 = shalt.err (!%p6989_p0)
}
  0x5d   :  { %s6993_s18 = scalar_lea.vmem %s89_s1, 2048  ;;  %p6998_p2 = scmp.lt.s32.totalorder %s89_s1, %s89_s1 }
  0x5e   :  { %p6994_p1 = scmp.ne.s32.totalorder %s89_s1, %s6993_s18  ;;  %p6999_p3 = scmp.lt.s32.totalorder %s6993_s18, %s6993_s18 }
  0x60   :  { %p7000_p4 = por %p6999_p3, %p6998_p2 }
  0x62   :  { %p7001_p5 = pnand %p7000_p4, %p6994_p1 }
  0x64   :  { %7004 = shalt.err (!%p7001_p5)
}
  0x65   :  { %94 = dma.hbm_to_vmem [thread:$0]  %s8448_s7, 2048, %s89_s1, [#allocation13], %s7042_s4, %s7042_s4, %s7043_s24  }
  0x66   :  { %7027 = dma.done.wait [#allocation4], 256  }
  0x67   :  { %7028 = vsyncadd [#allocation4], 4294967040 }
  0x68   :  { %7029 = dma.done.wait [#allocation7], 9216  }
  0x69   :  { %7030 = vsyncadd [#allocation7], 4294958080 }
  0x6a   :  { %7031 = dma.done.wait [#allocation10], 16384  }
  0x6b   :  { %7032 = vsyncadd [#allocation10], 4294950912 }
  0x6c   :  { %7033 = dma.done.wait [#allocation13], 2048  }
  0x6d   :  { %7034 = vsyncadd [#allocation13], 4294965248  ;;  %v8451_v0 = vmov 0.0   ;;  %v118_v1 = vld [vmem:[#allocation6 + $0x8] sm:$0xff]  ;;  %v117_v6 = vld [vmem:[#allocation6] sm:$0xff]  ;;  %vm147_vm0 = vcmask 130048  }
  0x6e   :  { %218 = vmatprep.mubr.f32.mxu1 %v8451_v0  ;;  %644 = vmatprep.mubr.f32.mxu0 %v8451_v0  ;;  %v122_v2 = vld [vmem:[#allocation6 + $0x28] sm:$0xff]  ;;  %v121_v7 = vld [vmem:[#allocation6 + $0x20] sm:$0xff]  ;;  %v115_v12 = vld [vmem:[#allocation3] sm:$0xff]  ;;  %vm575_vm1 = vcmask 1040384   ;;  %vm7049_vm2 = vmmov 0   ;;  %s7050_s12 = smov [#allocation14]  }
  0x6f   :  { %v317_v3 = vld [vmem:[#allocation8 + $0x8] sm:$0xff]  ;;  %v5003_v4 = vpack.c.bf16 %v122_v2, %v118_v1  ;;  %v5005_v9 = vpack.c.bf16 %v121_v7, %v117_v6  ;;  %v316_v10 = vld [vmem:[#allocation8] sm:$0xff]  ;;  %v120_v19 = vld [vmem:[#allocation6 + $0x18] sm:$0xff]  ;;  %s4886_s21 = sshll.u32 %s7050_s12, 4  ;;  %s4887_s21 = int_to_ptr.vmem [resolvable:$true] %s4886_s21 }
  0x70   :  { %v321_v5 = vld [vmem:[#allocation8 + $0x28] sm:$0xff]  ;;  %v320_v11 = vld [vmem:[#allocation8 + $0x20] sm:$0xff]  ;;  %v124_v20 = vld [vmem:[#allocation6 + $0x38] sm:$0xff]  ;;  %s7005_s22 = scalar_lea.vmem %s4887_s21, 32  ;;  %p7010_p7 = scmp.lt.s32.totalorder %s4887_s21, %s4887_s21 }
  0x71   :  { %v7193_v8 = vpack.c.bf16 %v321_v5, %v317_v3  ;;  %5004 = vmatprep.subr.bf16.mxu1 %v5003_v4  ;;  %v7195_v13 = vpack.c.bf16 %v320_v11, %v316_v10  ;;  %v325_v14 = vld [vmem:[#allocation8 + $0x48] sm:$0xff]  ;;  %v324_v16 = vld [vmem:[#allocation8 + $0x40] sm:$0xff]  ;;  %v5007_v22 = vpack.c.bf16 %v124_v20, %v120_v19  ;;  %v119_v23 = vld [vmem:[#allocation6 + $0x10] sm:$0xff]  ;;  %p7006_p6 = scmp.ne.s32.totalorder %s4887_s21, %s7005_s22  ;;  %p7011_p8 = scmp.lt.s32.totalorder %s7005_s22, %s7005_s22 }
  0x72   :  { %v329_v15 = vld [vmem:[#allocation8 + $0x68] sm:$0xff]  ;;  %5006 = vmatpush1.bf16.msra.mxu1 %v5005_v9  ;;  %v328_v18 = vld [vmem:[#allocation8 + $0x60] sm:$0xff]  ;;  %v123_v24 = vld [vmem:[#allocation6 + $0x30] sm:$0xff] }
  0x73   :  { %8669 = vst [vmem:[#allocation20_spill] sm:$0xff] %v7193_v8  ;;  %5012 = vmatprep.subr.bf16.mxu0 %v7193_v8  ;;  %v7198_v17 = vpack.c.bf16 %v329_v15, %v325_v14  ;;  %v7201_v21 = vpack.c.bf16 %v328_v18, %v324_v16  ;;  %v5009_v25 = vpack.c.bf16 %v123_v24, %v119_v23  ;;  %v333_v26 = vld [vmem:[#allocation8 + $0x88] sm:$0xff]  ;;  %v332_v28 = vld [vmem:[#allocation8 + $0x80] sm:$0xff]  ;;  %v319_v31 = vld [vmem:[#allocation8 + $0x18] sm:$0xff]  ;;  %p7012_p9 = por %p7011_p8, %p7010_p7 }
  0x74   :  { %5014 = vmatpush1.bf16.msra.mxu0 %v7195_v13  ;;  %v337_v27 = vld [vmem:[#allocation8 + $0xa8] sm:$0xff]  ;;  %5008 = vmatprep.subr.bf16.mxu1 %v5007_v22  ;;  %v336_v30 = vld [vmem:[#allocation8 + $0xa0] sm:$0xff]  ;;  %v323_v32 = vld [vmem:[#allocation8 + $0x38] sm:$0xff] }
  0x75   :  { %8670 = vst [vmem:[#allocation21_spill] sm:$0xff] %v7201_v21  ;;  %5016 = vmatprep.subr.bf16.mxu0 %v7198_v17  ;;  %4898 = vmatmul.mubr.msk.f32.vlgmr.msra.gmra.mrb[0].mxu1 %vm147_vm0, %v115_v12  ;;  %v7205_v29 = vpack.c.bf16 %v337_v27, %v333_v26  ;;  %v116_v33 = vld [vmem:[#allocation3 + $0x8] sm:$0xff]  ;;  %v7208_v34 = vpack.c.bf16 %v323_v32, %v319_v31  ;;  %v341_v35 = vld [vmem:[#allocation8 + $0xc8] sm:$0xff]  ;;  %v318_v38 = vld [vmem:[#allocation8 + $0x10] sm:$0xff]  ;;  %p7013_p10 = pnand %p7012_p9, %p7006_p6 }
  0x76   :  { %224 = vmatprep.mubr.f32.mxu1 %v8451_v0  ;;  %5010 = vmatpush1.bf16.msra.mxu1 %v5009_v25  ;;  %v345_v36 = vld [vmem:[#allocation8 + $0xe8] sm:$0xff]  ;;  %v7211_v37 = vpack.c.bf16 %v336_v30, %v332_v28  ;;  %v322_v39 = vld [vmem:[#allocation8 + $0x30] sm:$0xff]  ;;  %v340_v40 = vld [vmem:[#allocation8 + $0xc0] sm:$0xff] }
  0x77   :  { %8671 = vst [vmem:[#allocation22_spill] sm:$0xff] %v7205_v29  ;;  %8672 = vst [vmem:[#allocation23_spill] sm:$0xff] %v7208_v34  ;;  %5044 = vmatprep.subr.bf16.mxu1 %v7208_v34  ;;  %v7215_v41 = vpack.c.bf16 %v345_v36, %v341_v35  ;;  %v344_v42 = vld [vmem:[#allocation8 + $0xe0] sm:$0xff]  ;;  %v327_v43 = vld [vmem:[#allocation8 + $0x58] sm:$0xff]  ;;  %v7219_v47 = vpack.c.bf16 %v322_v39, %v318_v38 }
  0x78   :  { %5018 = vmatpush1.bf16.msra.mxu0 %v7201_v21  ;;  %8673 = vst [vmem:[#allocation24_spill] sm:$0xff] %v7211_v37  ;;  %v331_v44 = vld [vmem:[#allocation8 + $0x78] sm:$0xff]  ;;  %v349_v45 = vld [vmem:[#allocation8 + $0x108] sm:$0xff]  ;;  %v7222_v48 = vpack.c.bf16 %v344_v42, %v340_v40  ;;  %v326_v50 = vld [vmem:[#allocation8 + $0x50] sm:$0xff] }
  0x79   :  { %5020 = vmatprep.subr.bf16.mxu0 %v7205_v29  ;;  %8674 = vst [vmem:[#allocation25_spill] sm:$0xff] %v7215_v41  ;;  %4899 = vmatmul.mubr.msk.f32.gmra.mrb[2].mxu1 %vm147_vm0, %v116_v33  ;;  %v353_v46 = vld [vmem:[#allocation8 + $0x128] sm:$0xff]  ;;  %v7224_v49 = vpack.c.bf16 %v331_v44, %v327_v43  ;;  %v330_v51 = vld [vmem:[#allocation8 + $0x70] sm:$0xff]  ;;  %v348_v52 = vld [vmem:[#allocation8 + $0x100] sm:$0xff] }
  0x7a   :  { %295 = vmatprep.mubr.f32.mxu1 %v8451_v0  ;;  %8675 = vst [vmem:[#allocation26_spill] sm:$0xff] %v7222_v48  ;;  %v7227_v53 = vpack.c.bf16 %v353_v46, %v349_v45  ;;  %v352_v54 = vld [vmem:[#allocation8 + $0x120] sm:$0xff]  ;;  %v335_v55 = vld [vmem:[#allocation8 + $0x98] sm:$0xff]  ;;  %v357_v57 = vld [vmem:[#allocation8 + $0x148] sm:$0xff]  ;;  %v7232_v59 = vpack.c.bf16 %v330_v51, %v326_v50 }
  0x7b   :  { %v339_v56 = vld [vmem:[#allocation8 + $0xb8] sm:$0xff]  ;;  %v361_v58 = vld [vmem:[#allocation8 + $0x168] sm:$0xff]  ;;  %v7236_v60 = vpack.c.bf16 %v352_v54, %v348_v52  ;;  %v334_v62 = vld [vmem:[#allocation8 + $0x90] sm:$0xff] }
  0x7c   :  { %5022 = vmatpush1.bf16.msra.mxu0 %v7211_v37  ;;  %8676 = vst [vmem:[#allocation27_spill] sm:$0xff] %v7227_v53  ;;  %8677 = vst [vmem:[#allocation28_spill] sm:$0xff] %v7232_v59  ;;  %v7238_v61 = vpack.c.bf16 %v339_v56, %v335_v55  ;;  %v338_v63 = vld [vmem:[#allocation8 + $0xb0] sm:$0xff]  ;;  %v356_v1 = vld [vmem:[#allocation8 + $0x140] sm:$0xff]  ;;  %v7241_v2 = vpack.c.bf16 %v361_v58, %v357_v57 }
  0x7d   :  { %5024 = vmatprep.subr.bf16.mxu0 %v7215_v41  ;;  %4900 = vmatmul.mubr.msk.f32.vlgmr.msra.gmra.mrb[4].mxu1 %vm147_vm0, %v115_v12  ;;  %8678 = vst [vmem:[#allocation29_spill] sm:$0xff] %v7236_v60  ;;  %v360_v3 = vld [vmem:[#allocation8 + $0x160] sm:$0xff]  ;;  %v343_v4 = vld [vmem:[#allocation8 + $0xd8] sm:$0xff]  ;;  %v365_v6 = vld [vmem:[#allocation8 + $0x188] sm:$0xff]  ;;  %v7245_v9 = vpack.c.bf16 %v338_v63, %v334_v62 }
  0x7e   :  { %5046 = vmatpush1.bf16.msra.mxu1 %v7219_v47  ;;  %301 = vmatprep.mubr.f32.mxu1 %v8451_v0  ;;  %8679 = vst [vmem:[#allocation30_spill] sm:$0xff] %v7238_v61  ;;  %8680 = vst [vmem:[#allocation31_spill] sm:$0xff] %v7241_v2  ;;  %v347_v5 = vld [vmem:[#allocation8 + $0xf8] sm:$0xff]  ;;  %v369_v7 = vld [vmem:[#allocation8 + $0x1a8] sm:$0xff]  ;;  %v7250_v10 = vpack.c.bf16 %v360_v3, %v356_v1 }
  0x7f   :  { %5048 = vmatprep.subr.bf16.mxu1 %v7224_v49  ;;  %8681 = vst [vmem:[#allocation32_spill] sm:$0xff] %v7245_v9  ;;  %v7252_v11 = vpack.c.bf16 %v347_v5, %v343_v4  ;;  %v342_v12 = vld [vmem:[#allocation8 + $0xd0] sm:$0xff]  ;;  %v364_v15 = vld [vmem:[#allocation8 + $0x180] sm:$0xff]  ;;  %v7255_v16 = vpack.c.bf16 %v369_v7, %v365_v6  ;;  %v351_v19 = vld [vmem:[#allocation8 + $0x118] sm:$0xff] }
  0x80   :  { %5026 = vmatpush1.bf16.msra.mxu0 %v7222_v48  ;;  %8682 = vst [vmem:[#allocation33_spill] sm:$0xff] %v7250_v10  ;;  %v346_v14 = vld [vmem:[#allocation8 + $0xf0] sm:$0xff]  ;;  %v368_v18 = vld [vmem:[#allocation8 + $0x1a0] sm:$0xff]  ;;  %v355_v20 = vld [vmem:[#allocation8 + $0x138] sm:$0xff] }
  0x81   :  { %5028 = vmatprep.subr.bf16.mxu0 %v7227_v53  ;;  %4901 = vmatmul.mubr.msk.f32.gmra.mrb[6].mxu1 %vm147_vm0, %v116_v33  ;;  %8683 = vst [vmem:[#allocation34_spill] sm:$0xff] %v7252_v11  ;;  %8684 = vst [vmem:[#allocation35_spill] sm:$0xff] %v7255_v16  ;;  %v373_v22 = vld [vmem:[#allocation8 + $0x1c8] sm:$0xff]  ;;  %v7258_v24 = vpack.c.bf16 %v346_v14, %v342_v12  ;;  %v7262_v25 = vpack.c.bf16 %v368_v18, %v364_v15  ;;  %v350_v27 = vld [vmem:[#allocation8 + $0x110] sm:$0xff] }
  0x82   :  { %5050 = vmatpush1.bf16.msra.mxu1 %v7232_v59  ;;  %715 = vmatprep.mubr.f32.mxu1 %v8451_v0  ;;  %v377_v23 = vld [vmem:[#allocation8 + $0x1e8] sm:$0xff]  ;;  %v7264_v26 = vpack.c.bf16 %v355_v20, %v351_v19  ;;  %v354_v28 = vld [vmem:[#allocation8 + $0x130] sm:$0xff]  ;;  %v372_v30 = vld [vmem:[#allocation8 + $0x1c0] sm:$0xff] }
  0x83   :  { %5052 = vmatprep.subr.bf16.mxu1 %v7238_v61  ;;  %8685 = vst [vmem:[#allocation36_spill] sm:$0xff] %v7258_v24  ;;  %8686 = vst [vmem:[#allocation37_spill] sm:$0xff] %v7262_v25  ;;  %v7267_v31 = vpack.c.bf16 %v377_v23, %v373_v22  ;;  %v376_v32 = vld [vmem:[#allocation8 + $0x1e0] sm:$0xff]  ;;  %v359_v33 = vld [vmem:[#allocation8 + $0x158] sm:$0xff]  ;;  %v7270_v36 = vpack.c.bf16 %v354_v28, %v350_v27 }
  0x84   :  { %5030 = vmatpush1.bf16.msra.mxu0 %v7236_v60  ;;  %8687 = vst [vmem:[#allocation38_spill] sm:$0xff] %v7264_v26  ;;  %v363_v35 = vld [vmem:[#allocation8 + $0x178] sm:$0xff]  ;;  %v7274_v38 = vpack.c.bf16 %v376_v32, %v372_v30  ;;  %v358_v40 = vld [vmem:[#allocation8 + $0x150] sm:$0xff]  ;;  %v445_v63 = vld [vmem:[#allocation11 + $0x8] sm:$0xff] }
  0x85   :  { %5032 = vmatprep.subr.bf16.mxu0 %v7241_v2  ;;  %8688 = vst [vmem:[#allocation39_spill] sm:$0xff] %v7267_v31  ;;  %8689 = vst [vmem:[#allocation40_spill] sm:$0xff] %v7270_v36  ;;  %v7276_v39 = vpack.c.bf16 %v363_v35, %v359_v33  ;;  %v362_v42 = vld [vmem:[#allocation8 + $0x170] sm:$0xff]  ;;  %v367_v43 = vld [vmem:[#allocation8 + $0x198] sm:$0xff] }
  0x86   :  { %5054 = vmatpush1.bf16.msra.mxu1 %v7245_v9  ;;  %8690 = vst [vmem:[#allocation41_spill] sm:$0xff] %v7274_v38  ;;  %v371_v44 = vld [vmem:[#allocation8 + $0x1b8] sm:$0xff]  ;;  %v7280_v45 = vpack.c.bf16 %v362_v42, %v358_v40  ;;  %v366_v50 = vld [vmem:[#allocation8 + $0x190] sm:$0xff]  ;;  %v449_v1 = vld [vmem:[#allocation11 + $0x28] sm:$0xff] }
  0x87   :  { %5056 = vmatprep.subr.bf16.mxu1 %v7252_v11  ;;  %8691 = vst [vmem:[#allocation42_spill] sm:$0xff] %v7276_v39  ;;  %v7284_v46 = vpack.c.bf16 %v371_v44, %v367_v43  ;;  %v370_v51 = vld [vmem:[#allocation8 + $0x1b0] sm:$0xff]  ;;  %v375_v52 = vld [vmem:[#allocation8 + $0x1d8] sm:$0xff]  ;;  %v7301_v4 = vpack.c.bf16 %v449_v1, %v445_v63  ;;  %v444_v6 = vld [vmem:[#allocation11] sm:$0xff] }
  0x88   :  { %5034 = vmatpush1.bf16.msra.mxu0 %v7250_v10  ;;  %8692 = vst [vmem:[#allocation43_spill] sm:$0xff] %v7280_v45  ;;  %v379_v54 = vld [vmem:[#allocation8 + $0x1f8] sm:$0xff]  ;;  %v7288_v55 = vpack.c.bf16 %v370_v51, %v366_v50  ;;  %v374_v57 = vld [vmem:[#allocation8 + $0x1d0] sm:$0xff]  ;;  %v448_v7 = vld [vmem:[#allocation11 + $0x20] sm:$0xff] }
  0x89   :  { %5036 = vmatprep.subr.bf16.mxu0 %v7255_v16  ;;  %8693 = vst [vmem:[#allocation44_spill] sm:$0xff] %v7284_v46  ;;  %v7291_v56 = vpack.c.bf16 %v379_v54, %v375_v52  ;;  %v378_v58 = vld [vmem:[#allocation8 + $0x1f0] sm:$0xff]  ;;  %v447_v3 = vld [vmem:[#allocation11 + $0x18] sm:$0xff]  ;;  %8697 = vst [vmem:[#allocation48_spill] sm:$0xff] %v7301_v4  ;;  %v7305_v14 = vpack.c.bf16 %v448_v7, %v444_v6 }
  0x8a   :  { %5058 = vmatpush1.bf16.msra.mxu1 %v7258_v24  ;;  %8694 = vst [vmem:[#allocation45_spill] sm:$0xff] %v7288_v55  ;;  %v7295_v62 = vpack.c.bf16 %v378_v58, %v374_v57  ;;  %v451_v5 = vld [vmem:[#allocation11 + $0x38] sm:$0xff]  ;;  %v446_v15 = vld [vmem:[#allocation11 + $0x10] sm:$0xff]  ;;  %v453_v20 = vld [vmem:[#allocation11 + $0x48] sm:$0xff] }
  0x8b   :  { %5060 = vmatprep.subr.bf16.mxu1 %v7264_v26  ;;  %8695 = vst [vmem:[#allocation46_spill] sm:$0xff] %v7291_v56  ;;  %v7303_v12 = vpack.c.bf16 %v451_v5, %v447_v3  ;;  %8699 = vst [vmem:[#allocation50_spill] sm:$0xff] %v7305_v14  ;;  %v450_v18 = vld [vmem:[#allocation11 + $0x30] sm:$0xff]  ;;  %v457_v22 = vld [vmem:[#allocation11 + $0x68] sm:$0xff] }
  0x8c   :  { %5038 = vmatpush1.bf16.msra.mxu0 %v7262_v25  ;;  %8696 = vst [vmem:[#allocation47_spill] sm:$0xff] %v7295_v62  ;;  %v7308_v19 = vpack.c.bf16 %v450_v18, %v446_v15  ;;  %v455_v23 = vld [vmem:[#allocation11 + $0x58] sm:$0xff]  ;;  %v7313_v27 = vpack.c.bf16 %v457_v22, %v453_v20  ;;  %v452_v30 = vld [vmem:[#allocation11 + $0x40] sm:$0xff]  ;;  %v454_v40 = vld [vmem:[#allocation11 + $0x50] sm:$0xff] }
  0x8d   :  { %5040 = vmatprep.subr.bf16.mxu0 %v7267_v31  ;;  %8698 = vst [vmem:[#allocation49_spill] sm:$0xff] %v7303_v12  ;;  %v459_v28 = vld [vmem:[#allocation11 + $0x78] sm:$0xff]  ;;  %v456_v32 = vld [vmem:[#allocation11 + $0x60] sm:$0xff]  ;;  %v458_v42 = vld [vmem:[#allocation11 + $0x70] sm:$0xff] }
  0x8e   :  { %5062 = vmatpush1.bf16.msra.mxu1 %v7270_v36  ;;  %8700 = vst [vmem:[#allocation51_spill] sm:$0xff] %v7308_v19  ;;  %8701 = vst [vmem:[#allocation52_spill] sm:$0xff] %v7313_v27  ;;  %v7315_v33 = vpack.c.bf16 %v459_v28, %v455_v23  ;;  %v7317_v35 = vpack.c.bf16 %v456_v32, %v452_v30  ;;  %v7320_v43 = vpack.c.bf16 %v458_v42, %v454_v40  ;;  %v461_v44 = vld [vmem:[#allocation11 + $0x88] sm:$0xff]  ;;  %v463_v51 = vld [vmem:[#allocation11 + $0x98] sm:$0xff] }
  0x8f   :  { %5064 = vmatprep.subr.bf16.mxu1 %v7276_v39  ;;  %v465_v50 = vld [vmem:[#allocation11 + $0xa8] sm:$0xff]  ;;  %v467_v54 = vld [vmem:[#allocation11 + $0xb8] sm:$0xff]  ;;  %v460_v57 = vld [vmem:[#allocation11 + $0x80] sm:$0xff] }
  0x90   :  { %5042 = vmatpush1.bf16.msra.mxu0 %v7274_v38  ;;  %8702 = vst [vmem:[#allocation53_spill] sm:$0xff] %v7315_v33  ;;  %8703 = vst [vmem:[#allocation54_spill] sm:$0xff] %v7317_v35  ;;  %v7325_v52 = vpack.c.bf16 %v465_v50, %v461_v44  ;;  %v464_v58 = vld [vmem:[#allocation11 + $0xa0] sm:$0xff]  ;;  %v7327_v63 = vpack.c.bf16 %v467_v54, %v463_v51  ;;  %v462_v3 = vld [vmem:[#allocation11 + $0x90] sm:$0xff] }
  0x91   :  { %5076 = vmatprep.subr.bf16.mxu0 %v7301_v4  ;;  %8704 = vst [vmem:[#allocation55_spill] sm:$0xff] %v7320_v43  ;;  %v7329_v1 = vpack.c.bf16 %v464_v58, %v460_v57  ;;  %v466_v5 = vld [vmem:[#allocation11 + $0xb0] sm:$0xff]  ;;  %v469_v6 = vld [vmem:[#allocation11 + $0xc8] sm:$0xff]  ;;  %v471_v18 = vld [vmem:[#allocation11 + $0xd8] sm:$0xff] }
  0x92   :  { %5066 = vmatpush1.bf16.msra.mxu1 %v7280_v45  ;;  %8705 = vst [vmem:[#allocation56_spill] sm:$0xff] %v7325_v52  ;;  %8706 = vst [vmem:[#allocation57_spill] sm:$0xff] %v7327_v63  ;;  %v7332_v7 = vpack.c.bf16 %v466_v5, %v462_v3  ;;  %v473_v15 = vld [vmem:[#allocation11 + $0xe8] sm:$0xff]  ;;  %v475_v20 = vld [vmem:[#allocation11 + $0xf8] sm:$0xff] }
  0x93   :  { %645 = vmatmul.mubr.f32.vlgmr.msra.gmra.mrb[0].mxu0 %v8451_v0  ;;  %5068 = vmatprep.subr.bf16.mxu1 %v7284_v46  ;;  %8707 = vst [vmem:[#allocation58_spill] sm:$0xff] %v7329_v1  ;;  %v7336_v22 = vpack.c.bf16 %v473_v15, %v469_v6  ;;  %v7338_v23 = vpack.c.bf16 %v475_v20, %v471_v18  ;;  %v468_v28 = vld [vmem:[#allocation11 + $0xc0] sm:$0xff]  ;;  %v470_v32 = vld [vmem:[#allocation11 + $0xd0] sm:$0xff]  ;;  %v477_v44 = vld [vmem:[#allocation11 + $0x108] sm:$0xff] }
  0x94   :  { %814 = vmatprep.mubr.f32.mxu0 %v8451_v0  ;;  %5078 = vmatpush1.bf16.msra.mxu0 %v7305_v14  ;;  %8708 = vst [vmem:[#allocation59_spill] sm:$0xff] %v7332_v7  ;;  %v472_v30 = vld [vmem:[#allocation11 + $0xe0] sm:$0xff]  ;;  %v474_v42 = vld [vmem:[#allocation11 + $0xf0] sm:$0xff]  ;;  %v481_v50 = vld [vmem:[#allocation11 + $0x128] sm:$0xff] }
  0x95   :  { %5080 = vmatprep.subr.bf16.mxu0 %v7313_v27  ;;  %8709 = vst [vmem:[#allocation60_spill] sm:$0xff] %v7336_v22  ;;  %8710 = vst [vmem:[#allocation61_spill] sm:$0xff] %v7338_v23  ;;  %v7341_v40 = vpack.c.bf16 %v472_v30, %v468_v28  ;;  %v7345_v51 = vpack.c.bf16 %v474_v42, %v470_v32  ;;  %v7347_v54 = vpack.c.bf16 %v481_v50, %v477_v44  ;;  %v479_v57 = vld [vmem:[#allocation11 + $0x118] sm:$0xff]  ;;  %v476_v3 = vld [vmem:[#allocation11 + $0x100] sm:$0xff] }
  0x96   :  { %5070 = vmatpush1.bf16.msra.mxu1 %v7288_v55  ;;  %v483_v58 = vld [vmem:[#allocation11 + $0x138] sm:$0xff]  ;;  %v480_v6 = vld [vmem:[#allocation11 + $0x120] sm:$0xff]  ;;  %v478_v15 = vld [vmem:[#allocation11 + $0x110] sm:$0xff] }
  0x97   :  { %5072 = vmatprep.subr.bf16.mxu1 %v7291_v56  ;;  %8711 = vst [vmem:[#allocation62_spill] sm:$0xff] %v7341_v40  ;;  %8712 = vst [vmem:[#allocation63_spill] sm:$0xff] %v7345_v51  ;;  %v7349_v5 = vpack.c.bf16 %v483_v58, %v479_v57  ;;  %v482_v18 = vld [vmem:[#allocation11 + $0x130] sm:$0xff]  ;;  %v7352_v20 = vpack.c.bf16 %v480_v6, %v476_v3  ;;  %v485_v30 = vld [vmem:[#allocation11 + $0x148] sm:$0xff] }
  0x98   :  { %5082 = vmatpush1.bf16.msra.mxu0 %v7317_v35  ;;  %8713 = vst [vmem:[#allocation64_spill] sm:$0xff] %v7347_v54  ;;  %v7356_v28 = vpack.c.bf16 %v482_v18, %v478_v15  ;;  %v489_v32 = vld [vmem:[#allocation11 + $0x168] sm:$0xff]  ;;  %v487_v42 = vld [vmem:[#allocation11 + $0x158] sm:$0xff]  ;;  %v484_v57 = vld [vmem:[#allocation11 + $0x140] sm:$0xff] }
  0x99   :  { %5084 = vmatprep.subr.bf16.mxu0 %v7325_v52  ;;  %8714 = vst [vmem:[#allocation65_spill] sm:$0xff] %v7349_v5  ;;  %8715 = vst [vmem:[#allocation66_spill] sm:$0xff] %v7352_v20  ;;  %v7361_v44 = vpack.c.bf16 %v489_v32, %v485_v30  ;;  %v491_v50 = vld [vmem:[#allocation11 + $0x178] sm:$0xff]  ;;  %v488_v58 = vld [vmem:[#allocation11 + $0x160] sm:$0xff] }
  0x9a   :  { %5074 = vmatpush1.bf16.msra.mxu1 %v7295_v62  ;;  %8716 = vst [vmem:[#allocation67_spill] sm:$0xff] %v7356_v28  ;;  %v7363_v3 = vpack.c.bf16 %v491_v50, %v487_v42  ;;  %v7365_v6 = vpack.c.bf16 %v488_v58, %v484_v57  ;;  %v486_v15 = vld [vmem:[#allocation11 + $0x150] sm:$0xff]  ;;  %v497_v30 = vld [vmem:[#allocation11 + $0x1a8] sm:$0xff]  ;;  %v495_v32 = vld [vmem:[#allocation11 + $0x198] sm:$0xff] }
  0x9b   :  { %5108 = vmatprep.subr.bf16.mxu1 %v7303_v12  ;;  %8717 = vst [vmem:[#allocation68_spill] sm:$0xff] %v7361_v44  ;;  %v490_v18 = vld [vmem:[#allocation11 + $0x170] sm:$0xff]  ;;  %v499_v42 = vld [vmem:[#allocation11 + $0x1b8] sm:$0xff]  ;;  %v492_v50 = vld [vmem:[#allocation11 + $0x180] sm:$0xff] }
  0x9c   :  { %5086 = vmatpush1.bf16.msra.mxu0 %v7329_v1  ;;  %8718 = vst [vmem:[#allocation69_spill] sm:$0xff] %v7363_v3  ;;  %8719 = vst [vmem:[#allocation70_spill] sm:$0xff] %v7365_v6  ;;  %v496_v57 = vld [vmem:[#allocation11 + $0x1a0] sm:$0xff]  ;;  %v7375_v58 = vpack.c.bf16 %v499_v42, %v495_v32  ;;  %v507_v32 = vld [vmem:[#allocation11 + $0x1f8] sm:$0xff] }
  0x9d   :  { %716 = vmatmul.mubr.f32.vlgmr.msra.gmra.mrb[8].mxu1 %v8451_v0  ;;  %5088 = vmatprep.subr.bf16.mxu0 %v7336_v22  ;;  %v500_v42 = vld [vmem:[#allocation11 + $0x1c0] sm:$0xff] }
  0x9e   :  { %885 = vmatprep.mubr.f32.mxu1 %v8451_v0  ;;  %5110 = vmatpush1.bf16.msra.mxu1 %v7308_v19  ;;  %v7368_v0 = vpack.c.bf16 %v490_v18, %v486_v15  ;;  %8722 = vst [vmem:[#allocation73_spill] sm:$0xff] %v7375_v58  ;;  %v494_v15 = vld [vmem:[#allocation11 + $0x190] sm:$0xff] }
  0x9f   :  { %5112 = vmatprep.subr.bf16.mxu1 %v7315_v33  ;;  %v498_v18 = vld [vmem:[#allocation11 + $0x1b0] sm:$0xff] }
  0xa0   :  { %5090 = vmatpush1.bf16.msra.mxu0 %v7341_v40  ;;  %8720 = vst [vmem:[#allocation71_spill] sm:$0xff] %v7368_v0  ;;  %v432_v40 = vld [vmem:[#allocation9 + $0x1a0] sm:$0xff] }
  0xa1   :  { %5092 = vmatprep.subr.bf16.mxu0 %v7347_v54 }
  0xa2   :  { %5114 = vmatpush1.bf16.msra.mxu1 %v7320_v43 }
  0xa3   :  { %5116 = vmatprep.subr.bf16.mxu1 %v7327_v63 }
  0xa4   :  { %5094 = vmatpush1.bf16.msra.mxu0 %v7352_v20 }
  0xa5   :  { %5096 = vmatprep.subr.bf16.mxu0 %v7361_v44 }
  0xa6   :  { %5118 = vmatpush1.bf16.msra.mxu1 %v7332_v7 }
  0xa7   :  { %5120 = vmatprep.subr.bf16.mxu1 %v7338_v23 }
  0xa8   :  { %5098 = vmatpush1.bf16.msra.mxu0 %v7365_v6 }
  0xaa   :  { %5122 = vmatpush1.bf16.msra.mxu1 %v7345_v51  ;;  %v433_v51 = vld [vmem:[#allocation9 + $0x1a8] sm:$0xff] }
  0xab   :  { %5124 = vmatprep.subr.bf16.mxu1 %v7349_v5  ;;  %v7377_v5 = vpack.c.bf16 %v496_v57, %v492_v50  ;;  %v504_v50 = vld [vmem:[#allocation11 + $0x1e0] sm:$0xff] }
  0xac   :  { %v7389_v44 = vpack.c.bf16 %v504_v50, %v500_v42  ;;  %v384_v42 = vld [vmem:[#allocation9 + $0x20] sm:$0xff] }
  0xad   :  { %8723 = vst [vmem:[#allocation74_spill] sm:$0xff] %v7377_v5 }
  0xae   :  { %5126 = vmatpush1.bf16.msra.mxu1 %v7356_v28  ;;  %v493_v28 = vld [vmem:[#allocation11 + $0x188] sm:$0xff]  ;;  %8727 = vst [vmem:[#allocation78_spill] sm:$0xff] %v7389_v44 }
  0xaf   :  { %5128 = vmatprep.subr.bf16.mxu1 %v7363_v3  ;;  %v7373_v20 = vpack.c.bf16 %v497_v30, %v493_v28  ;;  %v7380_v3 = vpack.c.bf16 %v498_v18, %v494_v15  ;;  %v505_v28 = vld [vmem:[#allocation11 + $0x1e8] sm:$0xff]  ;;  %v503_v30 = vld [vmem:[#allocation11 + $0x1d8] sm:$0xff]  ;;  %v502_v15 = vld [vmem:[#allocation11 + $0x1d0] sm:$0xff] }
  0xb0   :  { %v7387_v57 = vpack.c.bf16 %v507_v32, %v503_v30  ;;  %v506_v18 = vld [vmem:[#allocation11 + $0x1f0] sm:$0xff]  ;;  %v387_v30 = vld [vmem:[#allocation9 + $0x38] sm:$0xff]  ;;  %v380_v32 = vld [vmem:[#allocation9] sm:$0xff] }
  0xb1   :  { %8721 = vst [vmem:[#allocation72_spill] sm:$0xff] %v7373_v20  ;;  %5100 = vmatprep.subr.bf16.mxu0 %v7373_v20  ;;  %8724 = vst [vmem:[#allocation75_spill] sm:$0xff] %v7380_v3  ;;  %v7401_v20 = vpack.c.bf16 %v384_v42, %v380_v32  ;;  %v388_v32 = vld [vmem:[#allocation9 + $0x40] sm:$0xff] }
  0xb2   :  { %5130 = vmatpush1.bf16.msra.mxu1 %v7368_v0  ;;  %5102 = vmatpush1.bf16.msra.mxu0 %v7377_v5  ;;  %v501_v0 = vld [vmem:[#allocation11 + $0x1c8] sm:$0xff]  ;;  %8726 = vst [vmem:[#allocation77_spill] sm:$0xff] %v7387_v57  ;;  %v392_v42 = vld [vmem:[#allocation9 + $0x60] sm:$0xff] }
  0xb3   :  { %5132 = vmatprep.subr.bf16.mxu1 %v7375_v58  ;;  %v7385_v6 = vpack.c.bf16 %v505_v28, %v501_v0  ;;  %v7392_v58 = vpack.c.bf16 %v506_v18, %v502_v15  ;;  %v385_v0 = vld [vmem:[#allocation9 + $0x28] sm:$0xff]  ;;  %v383_v28 = vld [vmem:[#allocation9 + $0x18] sm:$0xff]  ;;  %8731 = vst [vmem:[#allocation82_spill] sm:$0xff] %v7401_v20  ;;  %v382_v15 = vld [vmem:[#allocation9 + $0x10] sm:$0xff] }
  0xb4   :  { %v7399_v50 = vpack.c.bf16 %v387_v30, %v383_v28  ;;  %v386_v18 = vld [vmem:[#allocation9 + $0x30] sm:$0xff]  ;;  %v395_v30 = vld [vmem:[#allocation9 + $0x78] sm:$0xff] }
  0xb5   :  { %8725 = vst [vmem:[#allocation76_spill] sm:$0xff] %v7385_v6  ;;  %5104 = vmatprep.subr.bf16.mxu0 %v7385_v6  ;;  %8728 = vst [vmem:[#allocation79_spill] sm:$0xff] %v7392_v58 }
  0xb6   :  { %5134 = vmatpush1.bf16.msra.mxu1 %v7380_v3  ;;  %5106 = vmatpush1.bf16.msra.mxu0 %v7389_v44  ;;  %v381_v3 = vld [vmem:[#allocation9 + $0x8] sm:$0xff]  ;;  %8730 = vst [vmem:[#allocation81_spill] sm:$0xff] %v7399_v50  ;;  %v7405_v44 = vpack.c.bf16 %v386_v18, %v382_v15  ;;  %v7415_v15 = vpack.c.bf16 %v392_v42, %v388_v32  ;;  %v390_v18 = vld [vmem:[#allocation9 + $0x50] sm:$0xff]  ;;  %v396_v32 = vld [vmem:[#allocation9 + $0x80] sm:$0xff] }
  0xb7   :  { %5136 = vmatprep.subr.bf16.mxu1 %v7387_v57  ;;  %v7397_v5 = vpack.c.bf16 %v385_v0, %v381_v3  ;;  %v8732_v57 = vmov 0.0   ;;  %v389_v3 = vld [vmem:[#allocation9 + $0x48] sm:$0xff]  ;;  %v400_v42 = vld [vmem:[#allocation9 + $0xa0] sm:$0xff] }
  0xb8   :  { %8733 = vst [vmem:[#allocation83_spill] sm:$0xff] %v7405_v44  ;;  %v393_v0 = vld [vmem:[#allocation9 + $0x68] sm:$0xff]  ;;  %8736 = vst [vmem:[#allocation86_spill] sm:$0xff] %v7415_v15  ;;  %v7429_v54 = vpack.c.bf16 %v400_v42, %v396_v32 }
  0xb9   :  { %8729 = vst [vmem:[#allocation80_spill] sm:$0xff] %v7397_v5  ;;  %5140 = vmatprep.subr.bf16.mxu0 %v7397_v5  ;;  %815 = vmatmul.mubr.f32.vlgmr.msra.gmra.mrb[2].mxu0 %v8732_v57  ;;  %v7411_v28 = vpack.c.bf16 %v393_v0, %v389_v3  ;;  %v397_v3 = vld [vmem:[#allocation9 + $0x88] sm:$0xff] }
  0xba   :  { %5138 = vmatpush1.bf16.msra.mxu1 %v7392_v58  ;;  %v391_v58 = vld [vmem:[#allocation9 + $0x58] sm:$0xff]  ;;  %5142 = vmatpush1.bf16.msra.mxu0 %v7401_v20  ;;  %v401_v0 = vld [vmem:[#allocation9 + $0xa8] sm:$0xff]  ;;  %8740 = vst [vmem:[#allocation90_spill] sm:$0xff] %v7429_v54 }
  0xbb   :  { %5172 = vmatprep.subr.bf16.mxu1 %v7399_v50  ;;  %8734 = vst [vmem:[#allocation84_spill] sm:$0xff] %v7411_v28  ;;  %v7413_v5 = vpack.c.bf16 %v395_v30, %v391_v58  ;;  %v394_v50 = vld [vmem:[#allocation9 + $0x70] sm:$0xff]  ;;  %956 = vmatprep.mubr.f32.mxu0 %v8732_v57  ;;  %v7425_v58 = vpack.c.bf16 %v401_v0, %v397_v3  ;;  %v403_v30 = vld [vmem:[#allocation9 + $0xb8] sm:$0xff]  ;;  %v404_v0 = vld [vmem:[#allocation9 + $0xc0] sm:$0xff] }
  0xbc   :  { %5144 = vmatprep.subr.bf16.mxu0 %v7411_v28  ;;  %v7420_v20 = vpack.c.bf16 %v394_v50, %v390_v18  ;;  %v398_v50 = vld [vmem:[#allocation9 + $0x90] sm:$0xff]  ;;  %v409_v28 = vld [vmem:[#allocation9 + $0xe8] sm:$0xff] }
  0xbd   :  { %886 = vmatmul.mubr.f32.vlgmr.msra.gmra.mrb[10].mxu1 %v8732_v57  ;;  %8735 = vst [vmem:[#allocation85_spill] sm:$0xff] %v7413_v5  ;;  %8738 = vst [vmem:[#allocation88_spill] sm:$0xff] %v7425_v58  ;;  %v402_v18 = vld [vmem:[#allocation9 + $0xb0] sm:$0xff] }
  0xbe   :  { %5174 = vmatpush1.bf16.msra.mxu1 %v7405_v44  ;;  %1027 = vmatprep.mubr.f32.mxu1 %v8732_v57  ;;  %8737 = vst [vmem:[#allocation87_spill] sm:$0xff] %v7420_v20  ;;  %v399_v44 = vld [vmem:[#allocation9 + $0x98] sm:$0xff] }
  0xbf   :  { %5176 = vmatprep.subr.bf16.mxu1 %v7413_v5  ;;  %5146 = vmatpush1.bf16.msra.mxu0 %v7415_v15  ;;  %v7427_v6 = vpack.c.bf16 %v403_v30, %v399_v44  ;;  %v7432_v5 = vpack.c.bf16 %v402_v18, %v398_v50  ;;  %v405_v15 = vld [vmem:[#allocation9 + $0xc8] sm:$0xff]  ;;  %v411_v44 = vld [vmem:[#allocation9 + $0xf8] sm:$0xff]  ;;  %v408_v30 = vld [vmem:[#allocation9 + $0xe0] sm:$0xff] }
  0xc0   :  { %5148 = vmatprep.subr.bf16.mxu0 %v7425_v58  ;;  %v7437_v3 = vpack.c.bf16 %v409_v28, %v405_v15  ;;  %v7441_v42 = vpack.c.bf16 %v408_v30, %v404_v0  ;;  %v406_v50 = vld [vmem:[#allocation9 + $0xd0] sm:$0xff]  ;;  %v417_v58 = vld [vmem:[#allocation9 + $0x128] sm:$0xff]  ;;  %v412_v15 = vld [vmem:[#allocation9 + $0x100] sm:$0xff] }
  0xc1   :  { %8739 = vst [vmem:[#allocation89_spill] sm:$0xff] %v7427_v6  ;;  %8741 = vst [vmem:[#allocation91_spill] sm:$0xff] %v7432_v5  ;;  %v410_v18 = vld [vmem:[#allocation9 + $0xf0] sm:$0xff] }
  0xc2   :  { %5178 = vmatpush1.bf16.msra.mxu1 %v7420_v20  ;;  %v407_v20 = vld [vmem:[#allocation9 + $0xd8] sm:$0xff]  ;;  %8742 = vst [vmem:[#allocation92_spill] sm:$0xff] %v7437_v3  ;;  %8744 = vst [vmem:[#allocation94_spill] sm:$0xff] %v7441_v42 }
  0xc3   :  { %5180 = vmatprep.subr.bf16.mxu1 %v7427_v6  ;;  %5150 = vmatpush1.bf16.msra.mxu0 %v7429_v54  ;;  %v7439_v32 = vpack.c.bf16 %v411_v44, %v407_v20  ;;  %v7444_v6 = vpack.c.bf16 %v410_v18, %v406_v50  ;;  %v413_v54 = vld [vmem:[#allocation9 + $0x108] sm:$0xff]  ;;  %v419_v20 = vld [vmem:[#allocation9 + $0x138] sm:$0xff]  ;;  %v416_v44 = vld [vmem:[#allocation9 + $0x120] sm:$0xff] }
  0xc4   :  { %5152 = vmatprep.subr.bf16.mxu0 %v7437_v3  ;;  %v7449_v28 = vpack.c.bf16 %v417_v58, %v413_v54  ;;  %v7453_v30 = vpack.c.bf16 %v416_v44, %v412_v15  ;;  %v414_v50 = vld [vmem:[#allocation9 + $0x110] sm:$0xff]  ;;  %v425_v3 = vld [vmem:[#allocation9 + $0x168] sm:$0xff]  ;;  %v420_v58 = vld [vmem:[#allocation9 + $0x140] sm:$0xff] }
  0xc5   :  { %8743 = vst [vmem:[#allocation93_spill] sm:$0xff] %v7439_v32  ;;  %8745 = vst [vmem:[#allocation95_spill] sm:$0xff] %v7444_v6  ;;  %v418_v18 = vld [vmem:[#allocation9 + $0x130] sm:$0xff] }
  0xc6   :  { %5182 = vmatpush1.bf16.msra.mxu1 %v7432_v5  ;;  %v415_v5 = vld [vmem:[#allocation9 + $0x118] sm:$0xff]  ;;  %8746 = vst [vmem:[#allocation96_spill] sm:$0xff] %v7449_v28  ;;  %8748 = vst [vmem:[#allocation98_spill] sm:$0xff] %v7453_v30 }
  0xc7   :  { %5184 = vmatprep.subr.bf16.mxu1 %v7439_v32  ;;  %5154 = vmatpush1.bf16.msra.mxu0 %v7441_v42  ;;  %v7451_v0 = vpack.c.bf16 %v419_v20, %v415_v5  ;;  %v7456_v32 = vpack.c.bf16 %v418_v18, %v414_v50  ;;  %v421_v42 = vld [vmem:[#allocation9 + $0x148] sm:$0xff]  ;;  %v427_v5 = vld [vmem:[#allocation9 + $0x178] sm:$0xff]  ;;  %v424_v20 = vld [vmem:[#allocation9 + $0x160] sm:$0xff] }
  0xc8   :  { %5156 = vmatprep.subr.bf16.mxu0 %v7449_v28  ;;  %v7461_v54 = vpack.c.bf16 %v425_v3, %v421_v42  ;;  %v7465_v44 = vpack.c.bf16 %v424_v20, %v420_v58  ;;  %v422_v50 = vld [vmem:[#allocation9 + $0x150] sm:$0xff]  ;;  %v429_v28 = vld [vmem:[#allocation9 + $0x188] sm:$0xff]  ;;  %v435_v42 = vld [vmem:[#allocation9 + $0x1b8] sm:$0xff] }
  0xc9   :  { %8747 = vst [vmem:[#allocation97_spill] sm:$0xff] %v7451_v0  ;;  %8749 = vst [vmem:[#allocation99_spill] sm:$0xff] %v7456_v32  ;;  %v426_v18 = vld [vmem:[#allocation9 + $0x170] sm:$0xff]  ;;  %v7471_v3 = vpack.c.bf16 %v433_v51, %v429_v28  ;;  %v441_v51 = vld [vmem:[#allocation9 + $0x1e8] sm:$0xff] }
  0xca   :  { %5186 = vmatpush1.bf16.msra.mxu1 %v7444_v6  ;;  %v423_v6 = vld [vmem:[#allocation9 + $0x158] sm:$0xff]  ;;  %8750 = vst [vmem:[#allocation100_spill] sm:$0xff] %v7461_v54  ;;  %8752 = vst [vmem:[#allocation102_spill] sm:$0xff] %v7465_v44  ;;  %v430_v58 = vld [vmem:[#allocation9 + $0x190] sm:$0xff] }
  0xcb   :  { %5188 = vmatprep.subr.bf16.mxu1 %v7451_v0  ;;  %5158 = vmatpush1.bf16.msra.mxu0 %v7453_v30  ;;  %v7463_v15 = vpack.c.bf16 %v427_v5, %v423_v6  ;;  %v7468_v0 = vpack.c.bf16 %v426_v18, %v422_v50  ;;  %v431_v30 = vld [vmem:[#allocation9 + $0x198] sm:$0xff]  ;;  %8754 = vst [vmem:[#allocation104_spill] sm:$0xff] %v7471_v3  ;;  %v434_v20 = vld [vmem:[#allocation9 + $0x1b0] sm:$0xff]  ;;  %v437_v50 = vld [vmem:[#allocation9 + $0x1c8] sm:$0xff] }
  0xcc   :  { %5160 = vmatprep.subr.bf16.mxu0 %v7461_v54  ;;  %v7475_v6 = vpack.c.bf16 %v435_v42, %v431_v30  ;;  %v7480_v18 = vpack.c.bf16 %v434_v20, %v430_v58  ;;  %v439_v28 = vld [vmem:[#allocation9 + $0x1d8] sm:$0xff]  ;;  %v7483_v54 = vpack.c.bf16 %v441_v51, %v437_v50  ;;  %v436_v30 = vld [vmem:[#allocation9 + $0x1c0] sm:$0xff]  ;;  %v125_v51 = vld [vmem:[%s8443_s2] sm:$0xf] }
  0xcd   :  { %8751 = vst [vmem:[#allocation101_spill] sm:$0xff] %v7463_v15  ;;  %8753 = vst [vmem:[#allocation103_spill] sm:$0xff] %v7468_v0  ;;  %v440_v42 = vld [vmem:[#allocation9 + $0x1e0] sm:$0xff] }
  0xce   :  { %5190 = vmatpush1.bf16.msra.mxu1 %v7456_v32  ;;  %v428_v32 = vld [vmem:[#allocation9 + $0x180] sm:$0xff]  ;;  %8755 = vst [vmem:[#allocation105_spill] sm:$0xff] %v7475_v6  ;;  %8757 = vst [vmem:[#allocation107_spill] sm:$0xff] %v7480_v18 }
  0xcf   :  { %5192 = vmatprep.subr.bf16.mxu1 %v7463_v15  ;;  %5162 = vmatpush1.bf16.msra.mxu0 %v7465_v44  ;;  %v7477_v5 = vpack.c.bf16 %v432_v40, %v428_v32  ;;  %v443_v15 = vld [vmem:[#allocation9 + $0x1f8] sm:$0xff]  ;;  %8758 = vst [vmem:[#allocation108_spill] sm:$0xff] %v7483_v54  ;;  %v438_v40 = vld [vmem:[#allocation9 + $0x1d0] sm:$0xff] }
  0xd0   :  { %5164 = vmatprep.subr.bf16.mxu0 %v7471_v3  ;;  %v7485_v44 = vpack.c.bf16 %v443_v15, %v439_v28  ;;  %v442_v32 = vld [vmem:[#allocation9 + $0x1f0] sm:$0xff]  ;;  %v7489_v3 = vpack.c.bf16 %v440_v42, %v436_v30  ;;  %v127_v15 = vlaneseq }
  0xd1   :  { %8756 = vst [vmem:[#allocation106_spill] sm:$0xff] %v7477_v5  ;;  %v7491_v58 = vpack.c.bf16 %v442_v32, %v438_v40 }
  0xd2   :  { %5194 = vmatpush1.bf16.msra.mxu1 %v7468_v0  ;;  %8759 = vst [vmem:[#allocation109_spill] sm:$0xff] %v7485_v44  ;;  %8760 = vst [vmem:[#allocation110_spill] sm:$0xff] %v7489_v3  ;;  %v128_v20 = vshrl.u32 %v127_v15, 7 }
  0xd3   :  { %5196 = vmatprep.subr.bf16.mxu1 %v7475_v6  ;;  %5166 = vmatpush1.bf16.msra.mxu0 %v7477_v5  ;;  %8761 = vst [vmem:[#allocation111_spill] sm:$0xff] %v7491_v58 }
  0xd4   :  { %5168 = vmatprep.subr.bf16.mxu0 %v7483_v54  ;;  %v7499_v50 = vsub.s32 0, %v128_v20  ;;  %v7504_v28 = vsub.s32 1, %v128_v20 }
  0xd6   :  { %5198 = vmatpush1.bf16.msra.mxu1 %v7480_v18  ;;  %8762 = vst [vmem:[#allocation112_spill] sm:$0xff] %v7499_v50  ;;  %8763 = vst [vmem:[#allocation113_spill] sm:$0xff] %v7504_v28  ;;  %v130_v30 = vrot.slane %v125_v51, %v7499_v50  ;;  %v134_v42 = vrot.slane %v125_v51, %v7504_v28 }
  0xd7   :  { %5200 = vmatprep.subr.bf16.mxu1 %v7485_v44  ;;  %5170 = vmatpush1.bf16.msra.mxu0 %v7489_v3  ;;  %v7510_v3 = vsub.s32 3, %v128_v20 }
  0xd8   :  { %5204 = vmatprep.subr.bf16.mxu0 %v7193_v8  ;;  %v7508_v8 = vsub.s32 2, %v128_v20 }
  0xd9   :  { %8765 = vst [vmem:[#allocation115_spill] sm:$0xff] %v7510_v3  ;;  %v142_v6 = vrot.slane %v125_v51, %v7510_v3 }
  0xda   :  { %5202 = vmatpush1.bf16.msra.mxu1 %v7491_v58  ;;  %8764 = vst [vmem:[#allocation114_spill] sm:$0xff] %v7508_v8  ;;  %v138_v18 = vrot.slane %v125_v51, %v7508_v8 }
  0xdb   :  { %5236 = vmatprep.subr.bf16.mxu1 %v7208_v34 }
 0x148   :  { %v220_v40 = vpop.f32.mrb[0].mxu1 }
 0x149   :  { %v221_v32 = vadd.f32 %v220_v40, %v130_v30  ;;  %v222_v58 = vpop.f32.mrb[1].mxu1 }
 0x14a   :  { %v223_v34 = vadd.f32 %v222_v58, %v134_v42 }
 0x14b   :  { %308 = vst [vmem:[#allocation2] sm:$0xff] %v221_v32 }
 0x14c   :  { %309 = vst [vmem:[#allocation2 + $0x8] sm:$0xff] %v223_v34  ;;  %v226_v15 = vpop.f32.mrb[2].mxu1 }
 0x14d   :  { %v227_v44 = vadd.f32 %v226_v15, %v130_v30  ;;  %v228_v54 = vpop.f32.mrb[3].mxu1 }
 0x14e   :  { %v229_v5 = vadd.f32 %v228_v54, %v134_v42 }
 0x14f   :  { %312 = vst [vmem:[#allocation2 + $0x20] sm:$0xff] %v227_v44 }
 0x150   :  { %313 = vst [vmem:[#allocation2 + $0x28] sm:$0xff] %v229_v5  ;;  %v297_v0 = vpop.f32.mrb[4].mxu1 }
 0x151   :  { %v298_v40 = vadd.f32 %v297_v0, %v138_v18  ;;  %v299_v23 = vpop.f32.mrb[5].mxu1 }
 0x152   :  { %v300_v22 = vadd.f32 %v299_v23, %v142_v6 }
 0x153   :  { %310 = vst [vmem:[#allocation2 + $0x10] sm:$0xff] %v298_v40 }
 0x154   :  { %311 = vst [vmem:[#allocation2 + $0x18] sm:$0xff] %v300_v22  ;;  %v303_v58 = vpop.f32.mrb[6].mxu1 }
 0x155   :  { %v304_v20 = vadd.f32 %v303_v58, %v138_v18  ;;  %v305_v32 = vpop.f32.mrb[7].mxu1 }
 0x156   :  { %v306_v34 = vadd.f32 %v305_v32, %v142_v6 }
 0x157   :  { %314 = vst [vmem:[#allocation2 + $0x30] sm:$0xff] %v304_v20 }
 0x158   :  { %315 = vst [vmem:[#allocation2 + $0x38] sm:$0xff] %v306_v34 }
 0x15b   :  { %v530_v15 = vld [vmem:[#allocation2] ss:$8 sm:$0xf] }
 0x15c   :  { %v537_v5 = vrot.slane %v530_v15, %v7499_v50  ;;  %v541_v0 = vrot.slane %v530_v15, %v7504_v28  ;;  %v545_v34 = vrot.slane %v530_v15, %v7508_v8 }
 0x15f   :  { %v532_v30 = vld [vmem:[#allocation2 + $0x20] ss:$8 sm:$0xf] }
 0x160   :  { %v558_v54 = vrot.slane %v532_v30, %v7499_v50  ;;  %v562_v44 = vrot.slane %v532_v30, %v7504_v28  ;;  %v566_v20 = vrot.slane %v532_v30, %v7508_v8  ;;  %v570_v32 = vrot.slane %v532_v30, %v7510_v3 }
 0x161   :  { %v549_v28 = vrot.slane %v530_v15, %v7510_v3 }
 0x162   :  { %v576_v23 = vsel %vm575_vm1, %v537_v5, %v558_v54  ;;  %v577_v18 = vsel %vm575_vm1, %v541_v0, %v562_v44  ;;  %v578_v54 = vsel %vm575_vm1, %v545_v34, %v566_v20 }
 0x163   :  { %v579_v44 = vsel %vm575_vm1, %v549_v28, %v570_v32 }
 0x166   :  { %v646_v22 = vpop.f32.mrb[0].mxu0 }
 0x167   :  { %v722_v51 = vadd.f32 %v646_v22, %v576_v23  ;;  %v648_v6 = vpop.f32.mrb[1].mxu0 }
 0x168   :  { %v723_v42 = vadd.f32 %v648_v6, %v577_v18 }
 0x169   :  { %v4902_v40 = vmul.f32 -1.442695, %v722_v51 }
 0x16a   :  { %v4903_v58 = vmul.f32 -1.442695, %v723_v42 }
 0x16b   :  { %6617 = vpow2.f32 %v4902_v40 }
 0x16c   :  { %6619 = vpow2.f32 %v4903_v58 }
 0x170   :  { %v717_v5 = vpop.f32.mrb[8].mxu1 }
 0x171   :  { %v724_v23 = vadd.f32 %v717_v5, %v578_v54  ;;  %v719_v0 = vpop.f32.mrb[9].mxu1 }
 0x172   :  { %v725_v22 = vadd.f32 %v719_v0, %v579_v44  ;;  %v8767_v44 = vld [vmem:[#allocation61_spill] sm:$0xff]  ;;  %v8768_v0 = vld [vmem:[#allocation62_spill] sm:$0xff] }
 0x173   :  { %v4904_v51 = vmul.f32 -1.442695, %v724_v23 }
 0x175   :  { %v6618_v18 = vpop.eup %6617  ;;  %6621 = vpow2.f32 %v4904_v51  ;;  %v8770_v51 = vld [vmem:[#allocation64_spill] sm:$0xff] }
 0x176   :  { %v6620_v6 = vpop.eup %6619  ;;  %v735_v42 = vadd.f32 1.0, %v6618_v18  ;;  %6623 = vtanh.f32 %v725_v22  ;;  %v8769_v22 = vld [vmem:[#allocation63_spill] sm:$0xff]  ;;  %v8771_v18 = vld [vmem:[#allocation65_spill] sm:$0xff] }
 0x177   :  { %v736_v40 = vadd.f32 1.0, %v6620_v6  ;;  %v8772_v6 = vld [vmem:[#allocation66_spill] sm:$0xff] }
 0x178   :  { %6625 = vrcp.f32 %v735_v42  ;;  %v8773_v42 = vld [vmem:[#allocation67_spill] sm:$0xff] }
 0x179   :  { %6627 = vrcp.f32 %v736_v40  ;;  %v8774_v40 = vld [vmem:[#allocation68_spill] sm:$0xff] }
 0x17f   :  { %v6622_v30 = vpop.eup %6621 }
 0x180   :  { %v6624_v58 = vpop.eup %6623  ;;  %v737_v20 = vadd.f32 1.0, %v6622_v30  ;;  %v8775_v30 = vld [vmem:[#allocation69_spill] sm:$0xff] }
 0x182   :  { %v6626_v15 = vpop.eup %6625  ;;  %6629 = vrcp.f32 %v737_v20  ;;  %v8778_v20 = vld [vmem:[#allocation72_spill] sm:$0xff] }
 0x183   :  { %v6628_v3 = vpop.eup %6627  ;;  %v746_v34 = vmul.f32 %v6626_v15, %v6624_v58  ;;  %v8776_v58 = vld [vmem:[#allocation70_spill] sm:$0xff]  ;;  %v8777_v15 = vld [vmem:[#allocation71_spill] sm:$0xff] }
 0x184   :  { %v745_v54 = vmul.f32 0.0, %v6628_v3  ;;  %v8766_v3 = vld [vmem:[#allocation60_spill] sm:$0xff] }
 0x186   :  { %v7526_v5 = vadd.f32 %v746_v34, %v745_v54  ;;  %v8779_v34 = vld [vmem:[#allocation73_spill] sm:$0xff]  ;;  %v8780_v54 = vld [vmem:[#allocation74_spill] sm:$0xff] }
 0x188   :  { %6631 = vtanh.f32 %v7526_v5 }
 0x18c   :  { %v6630_v28 = vpop.eup %6629 }
 0x192   :  { %v6632_v32 = vpop.eup %6631 }
 0x193   :  { %v749_v23 = vmul.f32 %v6632_v32, %v6630_v28  ;;  %v8781_v28 = vld [vmem:[#allocation75_spill] sm:$0xff]  ;;  %v8782_v32 = vld [vmem:[#allocation76_spill] sm:$0xff] }
 0x195   :  { %957 = vmatmul.mubr.f32.vlgmr.msra.gmra.mrb[2].mxu0 %v749_v23  ;;  %1028 = vmatmul.mubr.f32.vlgmr.msra.gmra.mrb[10].mxu1 %v749_v23 }
 0x196   :  { %5206 = vmatpush1.bf16.msra.mxu0 %v7195_v13  ;;  %5238 = vmatpush1.bf16.msra.mxu1 %v7219_v47 }
 0x197   :  { %5208 = vmatprep.subr.bf16.mxu0 %v7198_v17  ;;  %5240 = vmatprep.subr.bf16.mxu1 %v7224_v49 }
 0x198   :  { %1176 = vmatprep.mubr.f32.mxu0 %v8732_v57  ;;  %1247 = vmatprep.mubr.f32.mxu1 %v8732_v57 }
 0x19a   :  { %5210 = vmatpush1.bf16.msra.mxu0 %v7201_v21  ;;  %5242 = vmatpush1.bf16.msra.mxu1 %v7232_v59 }
 0x19b   :  { %5212 = vmatprep.subr.bf16.mxu0 %v7205_v29  ;;  %5244 = vmatprep.subr.bf16.mxu1 %v7238_v61 }
 0x19e   :  { %5214 = vmatpush1.bf16.msra.mxu0 %v7211_v37  ;;  %5246 = vmatpush1.bf16.msra.mxu1 %v7245_v9 }
 0x19f   :  { %5216 = vmatprep.subr.bf16.mxu0 %v7215_v41  ;;  %5248 = vmatprep.subr.bf16.mxu1 %v7252_v11 }
 0x1a2   :  { %5218 = vmatpush1.bf16.msra.mxu0 %v7222_v48  ;;  %5250 = vmatpush1.bf16.msra.mxu1 %v7258_v24 }
 0x1a3   :  { %5220 = vmatprep.subr.bf16.mxu0 %v7227_v53  ;;  %5252 = vmatprep.subr.bf16.mxu1 %v7264_v26 }
 0x1a6   :  { %5222 = vmatpush1.bf16.msra.mxu0 %v7236_v60  ;;  %5254 = vmatpush1.bf16.msra.mxu1 %v7270_v36 }
 0x1a7   :  { %5224 = vmatprep.subr.bf16.mxu0 %v7241_v2  ;;  %5256 = vmatprep.subr.bf16.mxu1 %v7276_v39 }
 0x1aa   :  { %5226 = vmatpush1.bf16.msra.mxu0 %v7250_v10  ;;  %5258 = vmatpush1.bf16.msra.mxu1 %v7280_v45 }
 0x1ab   :  { %5228 = vmatprep.subr.bf16.mxu0 %v7255_v16  ;;  %5260 = vmatprep.subr.bf16.mxu1 %v7284_v46 }
 0x1ae   :  { %5230 = vmatpush1.bf16.msra.mxu0 %v7262_v25  ;;  %5262 = vmatpush1.bf16.msra.mxu1 %v7288_v55 }
 0x1af   :  { %5232 = vmatprep.subr.bf16.mxu0 %v7267_v31  ;;  %5264 = vmatprep.subr.bf16.mxu1 %v7291_v56 }
 0x1b2   :  { %5234 = vmatpush1.bf16.msra.mxu0 %v7274_v38  ;;  %5266 = vmatpush1.bf16.msra.mxu1 %v7295_v62 }
 0x1b3   :  { %5268 = vmatprep.subr.bf16.mxu0 %v7301_v4  ;;  %5300 = vmatprep.subr.bf16.mxu1 %v7303_v12 }
 0x1b5   :  { %1177 = vmatmul.mubr.f32.vlgmr.msra.gmra.mrb[4].mxu0 %v749_v23  ;;  %1248 = vmatmul.mubr.f32.vlgmr.msra.gmra.mrb[12].mxu1 %v749_v23  ;;  %v8783_v23 = vld [vmem:[#allocation77_spill] sm:$0xff] }
 0x1b6   :  { %5270 = vmatpush1.bf16.msra.mxu0 %v7305_v14  ;;  %5302 = vmatpush1.bf16.msra.mxu1 %v7308_v19 }
 0x1b7   :  { %5272 = vmatprep.subr.bf16.mxu0 %v7313_v27  ;;  %5304 = vmatprep.subr.bf16.mxu1 %v7315_v33 }
 0x1b8   :  { %1346 = vmatprep.mubr.f32.mxu0 %v8732_v57  ;;  %1417 = vmatprep.mubr.f32.mxu1 %v8732_v57 }
 0x1ba   :  { %5274 = vmatpush1.bf16.msra.mxu0 %v7317_v35  ;;  %5306 = vmatpush1.bf16.msra.mxu1 %v7320_v43 }
 0x1bb   :  { %5276 = vmatprep.subr.bf16.mxu0 %v7325_v52  ;;  %5308 = vmatprep.subr.bf16.mxu1 %v7327_v63 }
 0x1be   :  { %5278 = vmatpush1.bf16.msra.mxu0 %v7329_v1  ;;  %5310 = vmatpush1.bf16.msra.mxu1 %v7332_v7 }
 0x1bf   :  { %5280 = vmatprep.subr.bf16.mxu0 %v8766_v3  ;;  %5312 = vmatprep.subr.bf16.mxu1 %v8767_v44 }
 0x1c2   :  { %5282 = vmatpush1.bf16.msra.mxu0 %v8768_v0  ;;  %5314 = vmatpush1.bf16.msra.mxu1 %v8769_v22 }
 0x1c3   :  { %5284 = vmatprep.subr.bf16.mxu0 %v8770_v51  ;;  %5316 = vmatprep.subr.bf16.mxu1 %v8771_v18  ;;  %v8792_v51 = vld [vmem:[#allocation115_spill] sm:$0xff] }
 0x1c6   :  { %5286 = vmatpush1.bf16.msra.mxu0 %v8772_v6  ;;  %5318 = vmatpush1.bf16.msra.mxu1 %v8773_v42  ;;  %v8784_v42 = vld [vmem:[#allocation78_spill] sm:$0xff] }
 0x1c7   :  { %5288 = vmatprep.subr.bf16.mxu0 %v8774_v40  ;;  %5320 = vmatprep.subr.bf16.mxu1 %v8775_v30  ;;  %v8785_v40 = vld [vmem:[#allocation79_spill] sm:$0xff]  ;;  %v8786_v30 = vld [vmem:[#allocation80_spill] sm:$0xff] }
 0x1ca   :  { %5290 = vmatpush1.bf16.msra.mxu0 %v8776_v58  ;;  %5322 = vmatpush1.bf16.msra.mxu1 %v8777_v15  ;;  %v8787_v58 = vld [vmem:[#allocation81_spill] sm:$0xff] }
 0x1cb   :  { %5292 = vmatprep.subr.bf16.mxu0 %v8778_v20  ;;  %5324 = vmatprep.subr.bf16.mxu1 %v8779_v34  ;;  %v508_v34 = vld [vmem:[%s8447_s6] sm:$0xf] }
 0x1cc   :  { %v7609_v18 = vrot.slane %v508_v34, %v7508_v8  ;;  %v7612_v22 = vrot.slane %v508_v34, %v8792_v51 }
 0x1ce   :  { %5294 = vmatpush1.bf16.msra.mxu0 %v8780_v54  ;;  %5326 = vmatpush1.bf16.msra.mxu1 %v8781_v28  ;;  %v7601_v54 = vrot.slane %v508_v34, %v7499_v50  ;;  %v8789_v28 = vld [vmem:[#allocation113_spill] sm:$0xff]  ;;  %8791 = vst [vmem:[#allocation118_spill] sm:$0xff] %v7609_v18  ;;  %8793 = vst [vmem:[#allocation115_spill] sm:$0xff] %v7612_v22 }
 0x1cf   :  { %5296 = vmatprep.subr.bf16.mxu0 %v8782_v32  ;;  %5328 = vmatprep.subr.bf16.mxu1 %v8783_v23  ;;  %v7604_v20 = vrot.slane %v508_v34, %v8789_v28 }
 0x1d0   :  { %8788 = vst [vmem:[#allocation116_spill] sm:$0xff] %v7601_v54 }
 0x1d1   :  { %8790 = vst [vmem:[#allocation117_spill] sm:$0xff] %v7604_v20 }
 0x1d2   :  { %5298 = vmatpush1.bf16.msra.mxu0 %v8784_v42  ;;  %5330 = vmatpush1.bf16.msra.mxu1 %v8785_v40 }
 0x1d3   :  { %5332 = vmatprep.subr.bf16.mxu0 %v8786_v30  ;;  %5364 = vmatprep.subr.bf16.mxu1 %v8787_v58 }
 0x268   :  { %v958_v32 = vpop.f32.mrb[2].mxu0  ;;  %v1029_v23 = vpop.f32.mrb[10].mxu1 }
 0x269   :  { %v1034_v42 = vadd.f32 %v958_v32, %v7601_v54  ;;  %v960_v15 = vpop.f32.mrb[3].mxu0  ;;  %v1031_v40 = vpop.f32.mrb[11].mxu1  ;;  %v1036_v0 = vadd.f32 %v1029_v23, %v7609_v18 }
 0x26a   :  { %v1035_v30 = vadd.f32 %v960_v15, %v7604_v20  ;;  %v1037_v44 = vadd.f32 %v1031_v40, %v7612_v22 }
 0x26b   :  { %v4905_v6 = vmul.f32 -1.442695, %v1034_v42  ;;  %v4907_v3 = vmul.f32 -1.442695, %v1036_v0 }
 0x26c   :  { %v4906_v58 = vmul.f32 -1.442695, %v1035_v30 }
 0x26d   :  { %6633 = vpow2.f32 %v4905_v6  ;;  %v1065_v6 = vld [vmem:[#allocation2 + $0x21] ss:$8 sm:$0xf] }
 0x26e   :  { %6635 = vpow2.f32 %v4906_v58  ;;  %v1063_v58 = vld [vmem:[#allocation2 + $0x1] ss:$8 sm:$0xf]  ;;  %v1091_v34 = vrot.slane %v1065_v6, %v7499_v50  ;;  %v1099_v23 = vrot.slane %v1065_v6, %v7508_v8  ;;  %v1095_v40 = vrot.slane %v1065_v6, %v8789_v28 }
 0x26f   :  { %6637 = vtanh.f32 %v1037_v44  ;;  %v1082_v18 = vrot.slane %v1063_v58, %v8792_v51 }
 0x270   :  { %6639 = vpow2.f32 %v4907_v3  ;;  %v1070_v3 = vrot.slane %v1063_v58, %v7499_v50 }
 0x272   :  { %v1108_v1 = vsel %vm575_vm1, %v1070_v3, %v1091_v34 }
 0x277   :  { %v6634_v32 = vpop.eup %6633 }
 0x278   :  { %v1047_v54 = vadd.f32 1.0, %v6634_v32  ;;  %v6636_v7 = vpop.eup %6635  ;;  %v1103_v32 = vrot.slane %v1065_v6, %v8792_v51 }
 0x279   :  { %v1048_v42 = vadd.f32 1.0, %v6636_v7  ;;  %v6638_v30 = vpop.eup %6637  ;;  %v1078_v7 = vrot.slane %v1063_v58, %v7508_v8 }
 0x27a   :  { %6641 = vrcp.f32 %v1047_v54  ;;  %v6640_v15 = vpop.eup %6639  ;;  %v1074_v54 = vrot.slane %v1063_v58, %v8789_v28  ;;  %v1111_v8 = vsel %vm575_vm1, %v1082_v18, %v1103_v32  ;;  %v8799_v18 = vld [vmem:[#allocation87_spill] sm:$0xff]  ;;  %v8801_v32 = vld [vmem:[#allocation89_spill] sm:$0xff] }
 0x27b   :  { %6643 = vrcp.f32 %v1048_v42  ;;  %v1049_v22 = vadd.f32 1.0, %v6640_v15  ;;  %v1110_v52 = vsel %vm575_vm1, %v1078_v7, %v1099_v23 }
 0x27d   :  { %6645 = vrcp.f32 %v1049_v22  ;;  %v8798_v22 = vld [vmem:[#allocation86_spill] sm:$0xff] }
 0x284   :  { %v6642_v20 = vpop.eup %6641 }
 0x285   :  { %v1058_v0 = vmul.f32 %v6642_v20, %v6638_v30  ;;  %v6644_v44 = vpop.eup %6643  ;;  %v1109_v20 = vsel %vm575_vm1, %v1074_v54, %v1095_v40  ;;  %v8802_v54 = vld [vmem:[#allocation90_spill] sm:$0xff] }
 0x286   :  { %v1057_v42 = vmul.f32 0.0, %v6644_v44 }
 0x287   :  { %v6646_v23 = vpop.eup %6645 }
 0x288   :  { %v1178_v63 = vpop.f32.mrb[4].mxu0  ;;  %v1249_v43 = vpop.f32.mrb[12].mxu1  ;;  %v7627_v6 = vadd.f32 %v1058_v0, %v1057_v42  ;;  %v8803_v42 = vld [vmem:[#allocation91_spill] sm:$0xff] }
 0x289   :  { %v1254_v30 = vadd.f32 %v1178_v63, %v1108_v1  ;;  %v1256_v15 = vadd.f32 %v1249_v43, %v1110_v52  ;;  %v1180_v50 = vpop.f32.mrb[5].mxu0  ;;  %v1251_v35 = vpop.f32.mrb[13].mxu1  ;;  %v8794_v52 = vld [vmem:[#allocation82_spill] sm:$0xff]  ;;  %v8796_v1 = vld [vmem:[#allocation84_spill] sm:$0xff] }
 0x28a   :  { %v1255_v44 = vadd.f32 %v1180_v50, %v1109_v20  ;;  %v1257_v28 = vadd.f32 %v1251_v35, %v1111_v8  ;;  %6647 = vtanh.f32 %v7627_v6  ;;  %v8795_v8 = vld [vmem:[#allocation83_spill] sm:$0xff]  ;;  %v8797_v50 = vld [vmem:[#allocation85_spill] sm:$0xff] }
 0x28b   :  { %v4908_v58 = vmul.f32 -1.442695, %v1254_v30  ;;  %v4910_v40 = vmul.f32 -1.442695, %v1256_v15  ;;  %v8804_v30 = vld [vmem:[#allocation92_spill] sm:$0xff]  ;;  %v8805_v15 = vld [vmem:[#allocation93_spill] sm:$0xff] }
 0x28c   :  { %v4909_v34 = vmul.f32 -1.442695, %v1255_v44 }
 0x28d   :  { %6649 = vpow2.f32 %v4908_v58 }
 0x28e   :  { %6651 = vpow2.f32 %v4909_v34 }
 0x28f   :  { %6653 = vtanh.f32 %v1257_v28  ;;  %v8800_v28 = vld [vmem:[#allocation88_spill] sm:$0xff] }
 0x290   :  { %6655 = vpow2.f32 %v4910_v40 }
 0x294   :  { %v6648_v3 = vpop.eup %6647 }
 0x295   :  { %v1061_v0 = vmul.f32 %v6648_v3, %v6646_v23  ;;  %v8806_v23 = vld [vmem:[#allocation94_spill] sm:$0xff]  ;;  %v8807_v3 = vld [vmem:[#allocation95_spill] sm:$0xff] }
 0x297   :  { %v6650_v7 = vpop.eup %6649  ;;  %1347 = vmatmul.mubr.f32.vlgmr.msra.gmra.mrb[6].mxu0 %v1061_v0  ;;  %1418 = vmatmul.mubr.f32.vlgmr.msra.gmra.mrb[14].mxu1 %v1061_v0 }
 0x298   :  { %v1267_v63 = vadd.f32 1.0, %v6650_v7  ;;  %v6652_v43 = vpop.eup %6651  ;;  %5334 = vmatpush1.bf16.msra.mxu0 %v8794_v52  ;;  %5366 = vmatpush1.bf16.msra.mxu1 %v8795_v8  ;;  %v8808_v7 = vld [vmem:[#allocation96_spill] sm:$0xff] }
 0x299   :  { %v1268_v35 = vadd.f32 1.0, %v6652_v43  ;;  %5336 = vmatprep.subr.bf16.mxu0 %v8796_v1  ;;  %5368 = vmatprep.subr.bf16.mxu1 %v8797_v50  ;;  %v6654_v20 = vpop.eup %6653 }
 0x29a   :  { %6657 = vrcp.f32 %v1267_v63  ;;  %1488 = vmatprep.mubr.f32.mxu0 %v8732_v57  ;;  %1559 = vmatprep.mubr.f32.mxu1 %v8732_v57  ;;  %v6656_v44 = vpop.eup %6655  ;;  %v8809_v63 = vld [vmem:[#allocation97_spill] sm:$0xff] }
 0x29b   :  { %6659 = vrcp.f32 %v1268_v35  ;;  %v1269_v0 = vadd.f32 1.0, %v6656_v44  ;;  %v8814_v44 = vld [vmem:[#allocation102_spill] sm:$0xff] }
 0x29c   :  { %5338 = vmatpush1.bf16.msra.mxu0 %v8798_v22  ;;  %5370 = vmatpush1.bf16.msra.mxu1 %v8799_v18 }
 0x29d   :  { %5340 = vmatprep.subr.bf16.mxu0 %v8800_v28  ;;  %5372 = vmatprep.subr.bf16.mxu1 %v8801_v32  ;;  %6661 = vrcp.f32 %v1269_v0  ;;  %v8821_v0 = vld [vmem:[#allocation109_spill] sm:$0xff] }
 0x2a0   :  { %5342 = vmatpush1.bf16.msra.mxu0 %v8802_v54  ;;  %5374 = vmatpush1.bf16.msra.mxu1 %v8803_v42 }
 0x2a1   :  { %5344 = vmatprep.subr.bf16.mxu0 %v8804_v30  ;;  %5376 = vmatprep.subr.bf16.mxu1 %v8805_v15  ;;  %v8810_v30 = vld [vmem:[#allocation98_spill] sm:$0xff]  ;;  %v8811_v15 = vld [vmem:[#allocation99_spill] sm:$0xff] }
 0x2a4   :  { %v6658_v58 = vpop.eup %6657  ;;  %5346 = vmatpush1.bf16.msra.mxu0 %v8806_v23  ;;  %5378 = vmatpush1.bf16.msra.mxu1 %v8807_v3 }
 0x2a5   :  { %v1278_v34 = vmul.f32 %v6658_v58, %v6654_v20  ;;  %v6660_v40 = vpop.eup %6659  ;;  %5348 = vmatprep.subr.bf16.mxu0 %v8808_v7  ;;  %5380 = vmatprep.subr.bf16.mxu1 %v8809_v63  ;;  %v8812_v20 = vld [vmem:[#allocation100_spill] sm:$0xff]  ;;  %v8813_v58 = vld [vmem:[#allocation101_spill] sm:$0xff]  ;;  %v8815_v7 = vld [vmem:[#allocation103_spill] sm:$0xff] }
 0x2a6   :  { %v1277_v43 = vmul.f32 %v6660_v40, %v7526_v5  ;;  %v8816_v63 = vld [vmem:[#allocation104_spill] sm:$0xff]  ;;  %v8817_v5 = vld [vmem:[#allocation105_spill] sm:$0xff]  ;;  %v8819_v40 = vld [vmem:[#allocation107_spill] sm:$0xff] }
 0x2a8   :  { %v7650_v35 = vadd.f32 %v1278_v34, %v1277_v43  ;;  %5350 = vmatpush1.bf16.msra.mxu0 %v8810_v30  ;;  %5382 = vmatpush1.bf16.msra.mxu1 %v8811_v15  ;;  %v8818_v34 = vld [vmem:[#allocation106_spill] sm:$0xff]  ;;  %v8820_v43 = vld [vmem:[#allocation108_spill] sm:$0xff]  ;;  %v8823_v30 = vld [vmem:[#allocation111_spill] sm:$0xff] }
 0x2a9   :  { %5352 = vmatprep.subr.bf16.mxu0 %v8812_v20  ;;  %5384 = vmatprep.subr.bf16.mxu1 %v8813_v58  ;;  %v6662_v20 = vpop.eup %6661  ;;  %v8822_v15 = vld [vmem:[#allocation110_spill] sm:$0xff] }
 0x2aa   :  { %6663 = vtanh.f32 %v7650_v35 }
 0x2ac   :  { %5354 = vmatpush1.bf16.msra.mxu0 %v8814_v44  ;;  %5386 = vmatpush1.bf16.msra.mxu1 %v8815_v7  ;;  %v8824_v7 = vld [vmem:[#allocation20_spill] sm:$0xff] }
 0x2ad   :  { %5356 = vmatprep.subr.bf16.mxu0 %v8816_v63  ;;  %5388 = vmatprep.subr.bf16.mxu1 %v8817_v5  ;;  %v8825_v63 = vld [vmem:[#allocation23_spill] sm:$0xff] }
 0x2b0   :  { %5358 = vmatpush1.bf16.msra.mxu0 %v8818_v34  ;;  %5390 = vmatpush1.bf16.msra.mxu1 %v8819_v40 }
 0x2b1   :  { %5360 = vmatprep.subr.bf16.mxu0 %v8820_v43  ;;  %5392 = vmatprep.subr.bf16.mxu1 %v8821_v0 }
 0x2b4   :  { %v6664_v58 = vpop.eup %6663  ;;  %5362 = vmatpush1.bf16.msra.mxu0 %v8822_v15  ;;  %5394 = vmatpush1.bf16.msra.mxu1 %v8823_v30 }
 0x2b5   :  { %v1281_v44 = vmul.f32 %v6664_v58, %v6662_v20  ;;  %5396 = vmatprep.subr.bf16.mxu0 %v8824_v7  ;;  %5428 = vmatprep.subr.bf16.mxu1 %v8825_v63  ;;  %v8826_v20 = vld [vmem:[#allocation54_spill] sm:$0xff]  ;;  %v8827_v58 = vld [vmem:[#allocation55_spill] sm:$0xff] }
 0x2b7   :  { %1489 = vmatmul.mubr.f32.vlgmr.msra.gmra.mrb[6].mxu0 %v1281_v44  ;;  %1560 = vmatmul.mubr.f32.vlgmr.msra.gmra.mrb[14].mxu1 %v1281_v44 }
 0x2b8   :  { %5398 = vmatpush1.bf16.msra.mxu0 %v7195_v13  ;;  %5430 = vmatpush1.bf16.msra.mxu1 %v7219_v47 }
 0x2b9   :  { %5400 = vmatprep.subr.bf16.mxu0 %v7198_v17  ;;  %5432 = vmatprep.subr.bf16.mxu1 %v7224_v49 }
 0x2ba   :  { %1708 = vmatprep.mubr.f32.mxu0 %v8732_v57  ;;  %1779 = vmatprep.mubr.f32.mxu1 %v8732_v57 }
 0x2bc   :  { %5402 = vmatpush1.bf16.msra.mxu0 %v7201_v21  ;;  %5434 = vmatpush1.bf16.msra.mxu1 %v7232_v59 }
 0x2bd   :  { %5404 = vmatprep.subr.bf16.mxu0 %v7205_v29  ;;  %5436 = vmatprep.subr.bf16.mxu1 %v7238_v61 }
 0x2c0   :  { %5406 = vmatpush1.bf16.msra.mxu0 %v7211_v37  ;;  %5438 = vmatpush1.bf16.msra.mxu1 %v7245_v9 }
 0x2c1   :  { %5408 = vmatprep.subr.bf16.mxu0 %v7215_v41  ;;  %5440 = vmatprep.subr.bf16.mxu1 %v7252_v11 }
 0x2c4   :  { %5410 = vmatpush1.bf16.msra.mxu0 %v7222_v48  ;;  %5442 = vmatpush1.bf16.msra.mxu1 %v7258_v24 }
 0x2c5   :  { %5412 = vmatprep.subr.bf16.mxu0 %v7227_v53  ;;  %5444 = vmatprep.subr.bf16.mxu1 %v7264_v26 }
 0x2c8   :  { %5414 = vmatpush1.bf16.msra.mxu0 %v7236_v60  ;;  %5446 = vmatpush1.bf16.msra.mxu1 %v7270_v36 }
 0x2c9   :  { %5416 = vmatprep.subr.bf16.mxu0 %v7241_v2  ;;  %5448 = vmatprep.subr.bf16.mxu1 %v7276_v39 }
 0x2cc   :  { %5418 = vmatpush1.bf16.msra.mxu0 %v7250_v10  ;;  %5450 = vmatpush1.bf16.msra.mxu1 %v7280_v45 }
 0x2cd   :  { %5420 = vmatprep.subr.bf16.mxu0 %v7255_v16  ;;  %5452 = vmatprep.subr.bf16.mxu1 %v7284_v46  ;;  %v8857_v46 = vld [vmem:[#allocation115_spill] sm:$0xff] }
 0x2d0   :  { %5422 = vmatpush1.bf16.msra.mxu0 %v7262_v25  ;;  %5454 = vmatpush1.bf16.msra.mxu1 %v7288_v55  ;;  %v8855_v55 = vld [vmem:[#allocation117_spill] sm:$0xff] }
 0x2d1   :  { %5424 = vmatprep.subr.bf16.mxu0 %v7267_v31  ;;  %5456 = vmatprep.subr.bf16.mxu1 %v7291_v56  ;;  %v8854_v56 = vld [vmem:[#allocation116_spill] sm:$0xff] }
 0x2d4   :  { %5426 = vmatpush1.bf16.msra.mxu0 %v7274_v38  ;;  %5458 = vmatpush1.bf16.msra.mxu1 %v7295_v62  ;;  %v8835_v62 = vld [vmem:[#allocation63_spill] sm:$0xff]  ;;  %v8836_v38 = vld [vmem:[#allocation64_spill] sm:$0xff] }
 0x2d5   :  { %5460 = vmatprep.subr.bf16.mxu0 %v7301_v4  ;;  %5492 = vmatprep.subr.bf16.mxu1 %v7303_v12  ;;  %v8828_v4 = vld [vmem:[#allocation56_spill] sm:$0xff]  ;;  %v8829_v12 = vld [vmem:[#allocation57_spill] sm:$0xff] }
 0x2d7   :  { %1709 = vmatmul.mubr.f32.vlgmr.msra.gmra.mrb[8].mxu0 %v1281_v44  ;;  %1780 = vmatmul.mubr.f32.vlgmr.msra.gmra.mrb[16].mxu1 %v1281_v44  ;;  %v8830_v44 = vld [vmem:[#allocation58_spill] sm:$0xff] }
 0x2d8   :  { %5462 = vmatpush1.bf16.msra.mxu0 %v7305_v14  ;;  %5494 = vmatpush1.bf16.msra.mxu1 %v7308_v19  ;;  %v8831_v14 = vld [vmem:[#allocation59_spill] sm:$0xff]  ;;  %v8832_v19 = vld [vmem:[#allocation60_spill] sm:$0xff] }
 0x2d9   :  { %5464 = vmatprep.subr.bf16.mxu0 %v7313_v27  ;;  %5496 = vmatprep.subr.bf16.mxu1 %v7315_v33  ;;  %v8833_v27 = vld [vmem:[#allocation61_spill] sm:$0xff]  ;;  %v8834_v33 = vld [vmem:[#allocation62_spill] sm:$0xff] }
 0x2da   :  { %1878 = vmatprep.mubr.f32.mxu0 %v8732_v57  ;;  %1949 = vmatprep.mubr.f32.mxu1 %v8732_v57 }
 0x2dc   :  { %5466 = vmatpush1.bf16.msra.mxu0 %v8826_v20  ;;  %5498 = vmatpush1.bf16.msra.mxu1 %v8827_v58  ;;  %v8837_v20 = vld [vmem:[#allocation65_spill] sm:$0xff]  ;;  %v8838_v58 = vld [vmem:[#allocation66_spill] sm:$0xff] }
 0x2dd   :  { %5468 = vmatprep.subr.bf16.mxu0 %v8828_v4  ;;  %5500 = vmatprep.subr.bf16.mxu1 %v8829_v12  ;;  %v8839_v4 = vld [vmem:[#allocation67_spill] sm:$0xff]  ;;  %v8840_v12 = vld [vmem:[#allocation68_spill] sm:$0xff] }
 0x2e0   :  { %5470 = vmatpush1.bf16.msra.mxu0 %v8830_v44  ;;  %5502 = vmatpush1.bf16.msra.mxu1 %v8831_v14  ;;  %v8841_v44 = vld [vmem:[#allocation69_spill] sm:$0xff]  ;;  %v8842_v14 = vld [vmem:[#allocation70_spill] sm:$0xff] }
 0x2e1   :  { %5472 = vmatprep.subr.bf16.mxu0 %v8832_v19  ;;  %5504 = vmatprep.subr.bf16.mxu1 %v8833_v27  ;;  %v8843_v19 = vld [vmem:[#allocation71_spill] sm:$0xff]  ;;  %v8844_v27 = vld [vmem:[#allocation72_spill] sm:$0xff] }
 0x2e4   :  { %5474 = vmatpush1.bf16.msra.mxu0 %v8834_v33  ;;  %5506 = vmatpush1.bf16.msra.mxu1 %v8835_v62  ;;  %v8845_v33 = vld [vmem:[#allocation73_spill] sm:$0xff]  ;;  %v8846_v62 = vld [vmem:[#allocation74_spill] sm:$0xff] }
 0x2e5   :  { %5476 = vmatprep.subr.bf16.mxu0 %v8836_v38  ;;  %5508 = vmatprep.subr.bf16.mxu1 %v8837_v20  ;;  %v8847_v38 = vld [vmem:[#allocation75_spill] sm:$0xff]  ;;  %v8848_v20 = vld [vmem:[#allocation76_spill] sm:$0xff] }
 0x2e8   :  { %5478 = vmatpush1.bf16.msra.mxu0 %v8838_v58  ;;  %5510 = vmatpush1.bf16.msra.mxu1 %v8839_v4  ;;  %v8849_v58 = vld [vmem:[#allocation77_spill] sm:$0xff]  ;;  %v8850_v4 = vld [vmem:[#allocation78_spill] sm:$0xff] }
 0x2e9   :  { %5480 = vmatprep.subr.bf16.mxu0 %v8840_v12  ;;  %5512 = vmatprep.subr.bf16.mxu1 %v8841_v44  ;;  %v8851_v12 = vld [vmem:[#allocation79_spill] sm:$0xff]  ;;  %v8852_v44 = vld [vmem:[#allocation80_spill] sm:$0xff] }
 0x2ec   :  { %5482 = vmatpush1.bf16.msra.mxu0 %v8842_v14  ;;  %5514 = vmatpush1.bf16.msra.mxu1 %v8843_v19  ;;  %v8853_v14 = vld [vmem:[#allocation81_spill] sm:$0xff] }
 0x2ed   :  { %5484 = vmatprep.subr.bf16.mxu0 %v8844_v27  ;;  %5516 = vmatprep.subr.bf16.mxu1 %v8845_v33 }
 0x2f0   :  { %5486 = vmatpush1.bf16.msra.mxu0 %v8846_v62  ;;  %5518 = vmatpush1.bf16.msra.mxu1 %v8847_v38 }
 0x2f1   :  { %5488 = vmatprep.subr.bf16.mxu0 %v8848_v20  ;;  %5520 = vmatprep.subr.bf16.mxu1 %v8849_v58  ;;  %v8856_v58 = vld [vmem:[#allocation118_spill] sm:$0xff] }
 0x2f4   :  { %5490 = vmatpush1.bf16.msra.mxu0 %v8850_v4  ;;  %5522 = vmatpush1.bf16.msra.mxu1 %v8851_v12 }
 0x2f5   :  { %5524 = vmatprep.subr.bf16.mxu0 %v8852_v44  ;;  %5556 = vmatprep.subr.bf16.mxu1 %v8853_v14 }
 0x38a   :  { %v1490_v19 = vpop.f32.mrb[6].mxu0  ;;  %v1561_v27 = vpop.f32.mrb[14].mxu1 }
 0x38b   :  { %v1566_v33 = vadd.f32 %v1490_v19, %v8854_v56  ;;  %v1492_v31 = vpop.f32.mrb[7].mxu0  ;;  %v1563_v62 = vpop.f32.mrb[15].mxu1  ;;  %v1568_v4 = vadd.f32 %v1561_v27, %v8856_v58  ;;  %v1597_v56 = vld [vmem:[#allocation2 + $0x22] ss:$8 sm:$0xf] }
 0x38c   :  { %v1567_v38 = vadd.f32 %v1492_v31, %v8855_v55  ;;  %v1569_v12 = vadd.f32 %v1563_v62, %v8857_v46  ;;  %v8859_v55 = vld [vmem:[#allocation114_spill] sm:$0xff]  ;;  %v8860_v58 = vld [vmem:[#allocation113_spill] sm:$0xff] }
 0x38d   :  { %v4911_v25 = vmul.f32 -1.442695, %v1566_v33  ;;  %v4913_v16 = vmul.f32 -1.442695, %v1568_v4  ;;  %v1631_v27 = vrot.slane %v1597_v56, %v8859_v55  ;;  %v1627_v62 = vrot.slane %v1597_v56, %v8860_v58 }
 0x38e   :  { %v4912_v20 = vmul.f32 -1.442695, %v1567_v38  ;;  %v1595_v33 = vld [vmem:[#allocation2 + $0x2] ss:$8 sm:$0xf] }
 0x38f   :  { %6665 = vpow2.f32 %v4911_v25  ;;  %v8858_v25 = vld [vmem:[#allocation112_spill] sm:$0xff]  ;;  %v1614_v39 = vrot.slane %v1595_v33, %v8792_v51 }
 0x390   :  { %6667 = vpow2.f32 %v4912_v20  ;;  %v1623_v20 = vrot.slane %v1597_v56, %v8858_v25 }
 0x391   :  { %6669 = vtanh.f32 %v1569_v12 }
 0x392   :  { %6671 = vpow2.f32 %v4913_v16  ;;  %v1602_v16 = vrot.slane %v1595_v33, %v8858_v25 }
 0x394   :  { %v1640_v2 = vsel %vm575_vm1, %v1602_v16, %v1623_v20 }
 0x399   :  { %v6666_v44 = vpop.eup %6665 }
 0x39a   :  { %v1579_v45 = vadd.f32 1.0, %v6666_v44  ;;  %v6668_v14 = vpop.eup %6667  ;;  %v1635_v44 = vrot.slane %v1597_v56, %v8792_v51 }
 0x39b   :  { %v1580_v19 = vadd.f32 1.0, %v6668_v14  ;;  %v6670_v10 = vpop.eup %6669  ;;  %v1606_v14 = vrot.slane %v1595_v33, %v8860_v58 }
 0x39c   :  { %6673 = vrcp.f32 %v1579_v45  ;;  %v6672_v31 = vpop.eup %6671  ;;  %v1610_v45 = vrot.slane %v1595_v33, %v8859_v55  ;;  %v1643_v55 = vsel %vm575_vm1, %v1614_v39, %v1635_v44  ;;  %v8861_v39 = vld [vmem:[#allocation92_spill] sm:$0xff] }
 0x39d   :  { %6675 = vrcp.f32 %v1580_v19  ;;  %v1581_v46 = vadd.f32 1.0, %v6672_v31  ;;  %v1641_v56 = vsel %vm575_vm1, %v1606_v14, %v1627_v62 }
 0x39e   :  { %v1642_v60 = vsel %vm575_vm1, %v1610_v45, %v1631_v27 }
 0x39f   :  { %6677 = vrcp.f32 %v1581_v46  ;;  %v8862_v46 = vld [vmem:[#allocation93_spill] sm:$0xff] }
 0x3a6   :  { %v6674_v38 = vpop.eup %6673 }
 0x3a7   :  { %v1590_v4 = vmul.f32 %v6674_v38, %v6670_v10  ;;  %v6676_v12 = vpop.eup %6675 }
 0x3a8   :  { %v1589_v19 = vmul.f32 %v6676_v12, %v7627_v6 }
 0x3a9   :  { %v6678_v27 = vpop.eup %6677 }
 0x3aa   :  { %v1710_v36 = vpop.f32.mrb[8].mxu0  ;;  %v1781_v10 = vpop.f32.mrb[16].mxu1  ;;  %v7753_v38 = vadd.f32 %v1590_v4, %v1589_v19  ;;  %v8863_v19 = vld [vmem:[#allocation96_spill] sm:$0xff] }
 0x3ab   :  { %v1786_v31 = vadd.f32 %v1710_v36, %v1640_v2  ;;  %v1788_v25 = vadd.f32 %v1781_v10, %v1642_v60  ;;  %v1712_v26 = vpop.f32.mrb[9].mxu0  ;;  %v1783_v58 = vpop.f32.mrb[17].mxu1  ;;  %v8864_v10 = vld [vmem:[#allocation97_spill] sm:$0xff] }
 0x3ac   :  { %v1787_v6 = vadd.f32 %v1712_v26, %v1641_v56  ;;  %v1789_v12 = vadd.f32 %v1783_v58, %v1643_v55  ;;  %6679 = vtanh.f32 %v7753_v38 }
 0x3ad   :  { %v4914_v33 = vmul.f32 -1.442695, %v1786_v31  ;;  %v4916_v62 = vmul.f32 -1.442695, %v1788_v25 }
 0x3ae   :  { %v4915_v20 = vmul.f32 -1.442695, %v1787_v6  ;;  %v8865_v6 = vld [vmem:[#allocation98_spill] sm:$0xff] }
 0x3af   :  { %6681 = vpow2.f32 %v4914_v33  ;;  %v8867_v33 = vld [vmem:[#allocation100_spill] sm:$0xff] }
 0x3b0   :  { %6683 = vpow2.f32 %v4915_v20  ;;  %v8868_v20 = vld [vmem:[#allocation101_spill] sm:$0xff] }
 0x3b1   :  { %6685 = vtanh.f32 %v1789_v12  ;;  %v8866_v12 = vld [vmem:[#allocation99_spill] sm:$0xff] }
 0x3b2   :  { %6687 = vpow2.f32 %v4916_v62  ;;  %v8871_v62 = vld [vmem:[#allocation104_spill] sm:$0xff] }
 0x3b6   :  { %v6680_v16 = vpop.eup %6679 }
 0x3b7   :  { %v1593_v4 = vmul.f32 %v6680_v16, %v6678_v27  ;;  %v8869_v27 = vld [vmem:[#allocation102_spill] sm:$0xff]  ;;  %v8870_v16 = vld [vmem:[#allocation103_spill] sm:$0xff] }
 0x3b9   :  { %v6682_v45 = vpop.eup %6681  ;;  %1879 = vmatmul.mubr.f32.vlgmr.msra.gmra.mrb[10].mxu0 %v1593_v4  ;;  %1950 = vmatmul.mubr.f32.vlgmr.msra.gmra.mrb[18].mxu1 %v1593_v4 }
 0x3ba   :  { %v1799_v2 = vadd.f32 1.0, %v6682_v45  ;;  %v6684_v60 = vpop.eup %6683  ;;  %5526 = vmatpush1.bf16.msra.mxu0 %v8794_v52  ;;  %5558 = vmatpush1.bf16.msra.mxu1 %v8795_v8 }
 0x3bb   :  { %v1800_v26 = vadd.f32 1.0, %v6684_v60  ;;  %5528 = vmatprep.subr.bf16.mxu0 %v8796_v1  ;;  %5560 = vmatprep.subr.bf16.mxu1 %v8797_v50  ;;  %v6686_v36 = vpop.eup %6685  ;;  %v8873_v60 = vld [vmem:[#allocation29_spill] sm:$0xff] }
 0x3bc   :  { %6689 = vrcp.f32 %v1799_v2  ;;  %2020 = vmatprep.mubr.f32.mxu0 %v8732_v57  ;;  %2091 = vmatprep.mubr.f32.mxu1 %v8732_v57  ;;  %v6688_v55 = vpop.eup %6687  ;;  %v8872_v2 = vld [vmem:[#allocation38_spill] sm:$0xff] }
 0x3bd   :  { %6691 = vrcp.f32 %v1800_v26  ;;  %v1801_v14 = vadd.f32 1.0, %v6688_v55  ;;  %v8874_v26 = vld [vmem:[#allocation40_spill] sm:$0xff]  ;;  %v8876_v55 = vld [vmem:[#allocation42_spill] sm:$0xff] }
 0x3be   :  { %5530 = vmatpush1.bf16.msra.mxu0 %v8798_v22  ;;  %5562 = vmatpush1.bf16.msra.mxu1 %v8799_v18 }
 0x3bf   :  { %5532 = vmatprep.subr.bf16.mxu0 %v8800_v28  ;;  %5564 = vmatprep.subr.bf16.mxu1 %v8801_v32  ;;  %6693 = vrcp.f32 %v1801_v14  ;;  %v8880_v14 = vld [vmem:[#allocation44_spill] sm:$0xff] }
 0x3c2   :  { %5534 = vmatpush1.bf16.msra.mxu0 %v8802_v54  ;;  %5566 = vmatpush1.bf16.msra.mxu1 %v8803_v42 }
 0x3c3   :  { %5536 = vmatprep.subr.bf16.mxu0 %v8861_v39  ;;  %5568 = vmatprep.subr.bf16.mxu1 %v8862_v46 }
 0x3c6   :  { %v6690_v58 = vpop.eup %6689  ;;  %5538 = vmatpush1.bf16.msra.mxu0 %v8806_v23  ;;  %5570 = vmatpush1.bf16.msra.mxu1 %v8807_v3 }
 0x3c7   :  { %v1810_v25 = vmul.f32 %v6690_v58, %v6686_v36  ;;  %v6692_v44 = vpop.eup %6691  ;;  %5540 = vmatprep.subr.bf16.mxu0 %v8863_v19  ;;  %5572 = vmatprep.subr.bf16.mxu1 %v8864_v10  ;;  %v8875_v36 = vld [vmem:[#allocation31_spill] sm:$0xff]  ;;  %v8877_v58 = vld [vmem:[#allocation33_spill] sm:$0xff] }
 0x3c8   :  { %v1809_v56 = vmul.f32 %v6692_v44, %v7650_v35  ;;  %v8879_v44 = vld [vmem:[#allocation35_spill] sm:$0xff] }
 0x3c9   :  { %v6694_v35 = vpop.eup %6693 }
 0x3ca   :  { %v7776_v31 = vadd.f32 %v1810_v25, %v1809_v56  ;;  %5542 = vmatpush1.bf16.msra.mxu0 %v8865_v6  ;;  %5574 = vmatpush1.bf16.msra.mxu1 %v8866_v12  ;;  %v8878_v25 = vld [vmem:[#allocation43_spill] sm:$0xff]  ;;  %v8881_v56 = vld [vmem:[#allocation37_spill] sm:$0xff] }
 0x3cb   :  { %5544 = vmatprep.subr.bf16.mxu0 %v8867_v33  ;;  %5576 = vmatprep.subr.bf16.mxu1 %v8868_v20 }
 0x3cc   :  { %6695 = vtanh.f32 %v7776_v31 }
 0x3ce   :  { %5546 = vmatpush1.bf16.msra.mxu0 %v8869_v27  ;;  %5578 = vmatpush1.bf16.msra.mxu1 %v8870_v16 }
 0x3cf   :  { %5548 = vmatprep.subr.bf16.mxu0 %v8871_v62  ;;  %5580 = vmatprep.subr.bf16.mxu1 %v8817_v5 }
 0x3d2   :  { %5550 = vmatpush1.bf16.msra.mxu0 %v8818_v34  ;;  %5582 = vmatpush1.bf16.msra.mxu1 %v8819_v40 }
 0x3d3   :  { %5552 = vmatprep.subr.bf16.mxu0 %v8820_v43  ;;  %5584 = vmatprep.subr.bf16.mxu1 %v8821_v0 }
 0x3d6   :  { %v6696_v4 = vpop.eup %6695  ;;  %5554 = vmatpush1.bf16.msra.mxu0 %v8822_v15  ;;  %5586 = vmatpush1.bf16.msra.mxu1 %v8823_v30 }
 0x3d7   :  { %5588 = vmatprep.subr.bf16.mxu0 %v8824_v7  ;;  %5620 = vmatprep.subr.bf16.mxu1 %v8825_v63  ;;  %v1813_v45 = vmul.f32 %v6696_v4, %v6694_v35  ;;  %v8882_v35 = vld [vmem:[#allocation45_spill] sm:$0xff]  ;;  %v8883_v4 = vld [vmem:[#allocation39_spill] sm:$0xff] }
 0x3d9   :  { %2021 = vmatmul.mubr.f32.vlgmr.msra.gmra.mrb[10].mxu0 %v1813_v45  ;;  %2092 = vmatmul.mubr.f32.vlgmr.msra.gmra.mrb[18].mxu1 %v1813_v45 }
 0x3da   :  { %5590 = vmatpush1.bf16.msra.mxu0 %v7195_v13  ;;  %5622 = vmatpush1.bf16.msra.mxu1 %v7219_v47 }
 0x3db   :  { %5592 = vmatprep.subr.bf16.mxu0 %v7198_v17  ;;  %5624 = vmatprep.subr.bf16.mxu1 %v7224_v49 }
 0x3dc   :  { %2240 = vmatprep.mubr.f32.mxu0 %v8732_v57  ;;  %2311 = vmatprep.mubr.f32.mxu1 %v8732_v57 }
 0x3de   :  { %5594 = vmatpush1.bf16.msra.mxu0 %v7201_v21  ;;  %5626 = vmatpush1.bf16.msra.mxu1 %v7232_v59 }
 0x3df   :  { %5596 = vmatprep.subr.bf16.mxu0 %v7205_v29  ;;  %5628 = vmatprep.subr.bf16.mxu1 %v7238_v61 }
 0x3e2   :  { %5598 = vmatpush1.bf16.msra.mxu0 %v7211_v37  ;;  %5630 = vmatpush1.bf16.msra.mxu1 %v7245_v9 }
 0x3e3   :  { %5600 = vmatprep.subr.bf16.mxu0 %v7215_v41  ;;  %5632 = vmatprep.subr.bf16.mxu1 %v7252_v11 }
 0x3e6   :  { %5602 = vmatpush1.bf16.msra.mxu0 %v7222_v48  ;;  %5634 = vmatpush1.bf16.msra.mxu1 %v7258_v24  ;;  %v8924_v48 = vld [vmem:[#allocation115_spill] sm:$0xff] }
 0x3e7   :  { %5604 = vmatprep.subr.bf16.mxu0 %v7227_v53  ;;  %5636 = vmatprep.subr.bf16.mxu1 %v8872_v2  ;;  %v8922_v53 = vld [vmem:[#allocation117_spill] sm:$0xff] }
 0x3ea   :  { %5606 = vmatpush1.bf16.msra.mxu0 %v8873_v60  ;;  %5638 = vmatpush1.bf16.msra.mxu1 %v8874_v26  ;;  %v8884_v60 = vld [vmem:[#allocation46_spill] sm:$0xff]  ;;  %v8885_v26 = vld [vmem:[#allocation41_spill] sm:$0xff] }
 0x3eb   :  { %5608 = vmatprep.subr.bf16.mxu0 %v8875_v36  ;;  %5640 = vmatprep.subr.bf16.mxu1 %v8876_v55  ;;  %v8886_v36 = vld [vmem:[#allocation47_spill] sm:$0xff]  ;;  %v8887_v55 = vld [vmem:[#allocation48_spill] sm:$0xff] }
 0x3ee   :  { %5610 = vmatpush1.bf16.msra.mxu0 %v8877_v58  ;;  %5642 = vmatpush1.bf16.msra.mxu1 %v8878_v25  ;;  %v8888_v58 = vld [vmem:[#allocation49_spill] sm:$0xff]  ;;  %v8921_v25 = vld [vmem:[#allocation116_spill] sm:$0xff] }
 0x3ef   :  { %5612 = vmatprep.subr.bf16.mxu0 %v8879_v44  ;;  %5644 = vmatprep.subr.bf16.mxu1 %v8880_v14  ;;  %v8889_v44 = vld [vmem:[#allocation50_spill] sm:$0xff]  ;;  %v8890_v14 = vld [vmem:[#allocation51_spill] sm:$0xff] }
 0x3f2   :  { %5614 = vmatpush1.bf16.msra.mxu0 %v8881_v56  ;;  %5646 = vmatpush1.bf16.msra.mxu1 %v8882_v35  ;;  %v8891_v56 = vld [vmem:[#allocation52_spill] sm:$0xff]  ;;  %v8892_v35 = vld [vmem:[#allocation53_spill] sm:$0xff] }
 0x3f3   :  { %5616 = vmatprep.subr.bf16.mxu0 %v8883_v4  ;;  %5648 = vmatprep.subr.bf16.mxu1 %v8884_v60  ;;  %v8902_v60 = vld [vmem:[#allocation63_spill] sm:$0xff]  ;;  %v8903_v4 = vld [vmem:[#allocation64_spill] sm:$0xff] }
 0x3f6   :  { %5618 = vmatpush1.bf16.msra.mxu0 %v8885_v26  ;;  %5650 = vmatpush1.bf16.msra.mxu1 %v8886_v36  ;;  %v8893_v26 = vld [vmem:[#allocation54_spill] sm:$0xff]  ;;  %v8894_v36 = vld [vmem:[#allocation55_spill] sm:$0xff] }
 0x3f7   :  { %5652 = vmatprep.subr.bf16.mxu0 %v8887_v55  ;;  %5684 = vmatprep.subr.bf16.mxu1 %v8888_v58  ;;  %v8895_v55 = vld [vmem:[#allocation56_spill] sm:$0xff]  ;;  %v8896_v58 = vld [vmem:[#allocation57_spill] sm:$0xff] }
 0x3f9   :  { %2241 = vmatmul.mubr.f32.vlgmr.msra.gmra.mrb[12].mxu0 %v1813_v45  ;;  %2312 = vmatmul.mubr.f32.vlgmr.msra.gmra.mrb[20].mxu1 %v1813_v45  ;;  %v8897_v45 = vld [vmem:[#allocation58_spill] sm:$0xff] }
 0x3fa   :  { %5654 = vmatpush1.bf16.msra.mxu0 %v8889_v44  ;;  %5686 = vmatpush1.bf16.msra.mxu1 %v8890_v14  ;;  %v8898_v44 = vld [vmem:[#allocation59_spill] sm:$0xff]  ;;  %v8899_v14 = vld [vmem:[#allocation60_spill] sm:$0xff] }
 0x3fb   :  { %5656 = vmatprep.subr.bf16.mxu0 %v8891_v56  ;;  %5688 = vmatprep.subr.bf16.mxu1 %v8892_v35  ;;  %v8900_v56 = vld [vmem:[#allocation61_spill] sm:$0xff]  ;;  %v8901_v35 = vld [vmem:[#allocation62_spill] sm:$0xff] }
 0x3fc   :  { %2410 = vmatprep.mubr.f32.mxu0 %v8732_v57  ;;  %2481 = vmatprep.mubr.f32.mxu1 %v8732_v57 }
 0x3fe   :  { %5658 = vmatpush1.bf16.msra.mxu0 %v8893_v26  ;;  %5690 = vmatpush1.bf16.msra.mxu1 %v8894_v36  ;;  %v8904_v26 = vld [vmem:[#allocation65_spill] sm:$0xff]  ;;  %v8905_v36 = vld [vmem:[#allocation66_spill] sm:$0xff] }
 0x3ff   :  { %5660 = vmatprep.subr.bf16.mxu0 %v8895_v55  ;;  %5692 = vmatprep.subr.bf16.mxu1 %v8896_v58  ;;  %v8906_v55 = vld [vmem:[#allocation67_spill] sm:$0xff]  ;;  %v8907_v58 = vld [vmem:[#allocation68_spill] sm:$0xff] }
 0x402   :  { %5662 = vmatpush1.bf16.msra.mxu0 %v8897_v45  ;;  %5694 = vmatpush1.bf16.msra.mxu1 %v8898_v44  ;;  %v8908_v45 = vld [vmem:[#allocation69_spill] sm:$0xff]  ;;  %v8909_v44 = vld [vmem:[#allocation70_spill] sm:$0xff] }
 0x403   :  { %5664 = vmatprep.subr.bf16.mxu0 %v8899_v14  ;;  %5696 = vmatprep.subr.bf16.mxu1 %v8900_v56  ;;  %v8910_v14 = vld [vmem:[#allocation71_spill] sm:$0xff]  ;;  %v8911_v56 = vld [vmem:[#allocation72_spill] sm:$0xff] }
 0x406   :  { %5666 = vmatpush1.bf16.msra.mxu0 %v8901_v35  ;;  %5698 = vmatpush1.bf16.msra.mxu1 %v8902_v60  ;;  %v8912_v35 = vld [vmem:[#allocation73_spill] sm:$0xff]  ;;  %v8913_v60 = vld [vmem:[#allocation74_spill] sm:$0xff] }
 0x407   :  { %5668 = vmatprep.subr.bf16.mxu0 %v8903_v4  ;;  %5700 = vmatprep.subr.bf16.mxu1 %v8904_v26  ;;  %v8914_v4 = vld [vmem:[#allocation75_spill] sm:$0xff]  ;;  %v8915_v26 = vld [vmem:[#allocation76_spill] sm:$0xff] }
 0x40a   :  { %5670 = vmatpush1.bf16.msra.mxu0 %v8905_v36  ;;  %5702 = vmatpush1.bf16.msra.mxu1 %v8906_v55  ;;  %v8916_v36 = vld [vmem:[#allocation77_spill] sm:$0xff]  ;;  %v8917_v55 = vld [vmem:[#allocation78_spill] sm:$0xff] }
 0x40b   :  { %5672 = vmatprep.subr.bf16.mxu0 %v8907_v58  ;;  %5704 = vmatprep.subr.bf16.mxu1 %v8908_v45  ;;  %v8918_v58 = vld [vmem:[#allocation79_spill] sm:$0xff]  ;;  %v8919_v45 = vld [vmem:[#allocation80_spill] sm:$0xff] }
 0x40e   :  { %5674 = vmatpush1.bf16.msra.mxu0 %v8909_v44  ;;  %5706 = vmatpush1.bf16.msra.mxu1 %v8910_v14  ;;  %v8920_v44 = vld [vmem:[#allocation81_spill] sm:$0xff] }
 0x40f   :  { %5676 = vmatprep.subr.bf16.mxu0 %v8911_v56  ;;  %5708 = vmatprep.subr.bf16.mxu1 %v8912_v35 }
 0x412   :  { %5678 = vmatpush1.bf16.msra.mxu0 %v8913_v60  ;;  %5710 = vmatpush1.bf16.msra.mxu1 %v8914_v4 }
 0x413   :  { %5680 = vmatprep.subr.bf16.mxu0 %v8915_v26  ;;  %5712 = vmatprep.subr.bf16.mxu1 %v8916_v36  ;;  %v8923_v36 = vld [vmem:[#allocation118_spill] sm:$0xff] }
 0x416   :  { %5682 = vmatpush1.bf16.msra.mxu0 %v8917_v55  ;;  %5714 = vmatpush1.bf16.msra.mxu1 %v8918_v58 }
 0x417   :  { %5716 = vmatprep.subr.bf16.mxu0 %v8919_v45  ;;  %5748 = vmatprep.subr.bf16.mxu1 %v8920_v44 }
 0x4ac   :  { %v2022_v14 = vpop.f32.mrb[10].mxu0  ;;  %v2093_v56 = vpop.f32.mrb[18].mxu1 }
 0x4ad   :  { %v2098_v35 = vadd.f32 %v2022_v14, %v8921_v25  ;;  %v2024_v2 = vpop.f32.mrb[11].mxu0  ;;  %v2095_v60 = vpop.f32.mrb[19].mxu1  ;;  %v2100_v55 = vadd.f32 %v2093_v56, %v8923_v36  ;;  %v2129_v25 = vld [vmem:[#allocation2 + $0x23] ss:$8 sm:$0xf] }
 0x4ae   :  { %v2099_v4 = vadd.f32 %v2024_v2, %v8922_v53  ;;  %v2101_v58 = vadd.f32 %v2095_v60, %v8924_v48  ;;  %v8926_v53 = vld [vmem:[#allocation114_spill] sm:$0xff]  ;;  %v8927_v36 = vld [vmem:[#allocation113_spill] sm:$0xff] }
 0x4af   :  { %v4917_v24 = vmul.f32 -1.442695, %v2098_v35  ;;  %v4919_v11 = vmul.f32 -1.442695, %v2100_v55  ;;  %v2163_v56 = vrot.slane %v2129_v25, %v8926_v53  ;;  %v2159_v60 = vrot.slane %v2129_v25, %v8927_v36 }
 0x4b0   :  { %v4918_v26 = vmul.f32 -1.442695, %v2099_v4  ;;  %v2127_v35 = vld [vmem:[#allocation2 + $0x3] ss:$8 sm:$0xf] }
 0x4b1   :  { %6697 = vpow2.f32 %v4917_v24  ;;  %v8925_v24 = vld [vmem:[#allocation112_spill] sm:$0xff]  ;;  %v2146_v37 = vrot.slane %v2127_v35, %v8792_v51 }
 0x4b2   :  { %6699 = vpow2.f32 %v4918_v26  ;;  %v2155_v26 = vrot.slane %v2129_v25, %v8925_v24 }
 0x4b3   :  { %6701 = vtanh.f32 %v2101_v58 }
 0x4b4   :  { %6703 = vpow2.f32 %v4919_v11  ;;  %v2142_v11 = vrot.slane %v2127_v35, %v8926_v53 }
 0x4b6   :  { %v2174_v59 = vsel %vm575_vm1, %v2142_v11, %v2163_v56 }
 0x4bb   :  { %v6698_v45 = vpop.eup %6697 }
 0x4bc   :  { %v2111_v41 = vadd.f32 1.0, %v6698_v45  ;;  %v6700_v44 = vpop.eup %6699  ;;  %v2167_v45 = vrot.slane %v2129_v25, %v8792_v51 }
 0x4bd   :  { %v2112_v14 = vadd.f32 1.0, %v6700_v44  ;;  %v6702_v9 = vpop.eup %6701  ;;  %v2138_v44 = vrot.slane %v2127_v35, %v8927_v36 }
 0x4be   :  { %6705 = vrcp.f32 %v2111_v41  ;;  %v6704_v2 = vpop.eup %6703  ;;  %v2134_v41 = vrot.slane %v2127_v35, %v8925_v24  ;;  %v2175_v53 = vsel %vm575_vm1, %v2146_v37, %v2167_v45 }
 0x4bf   :  { %6707 = vrcp.f32 %v2112_v14  ;;  %v2113_v48 = vadd.f32 1.0, %v6704_v2  ;;  %v2173_v25 = vsel %vm575_vm1, %v2138_v44, %v2159_v60 }
 0x4c0   :  { %v2172_v61 = vsel %vm575_vm1, %v2134_v41, %v2155_v26 }
 0x4c1   :  { %6709 = vrcp.f32 %v2113_v48 }
 0x4c8   :  { %v6706_v4 = vpop.eup %6705 }
 0x4c9   :  { %v2122_v55 = vmul.f32 %v6706_v4, %v6702_v9  ;;  %v6708_v58 = vpop.eup %6707 }
 0x4ca   :  { %v2121_v14 = vmul.f32 %v6708_v58, %v7753_v38 }
 0x4cb   :  { %v6710_v56 = vpop.eup %6709 }
 0x4cc   :  { %v2242_v29 = vpop.f32.mrb[12].mxu0  ;;  %v2313_v9 = vpop.f32.mrb[20].mxu1  ;;  %v7879_v4 = vadd.f32 %v2122_v55, %v2121_v14 }
 0x4cd   :  { %v2318_v2 = vadd.f32 %v2242_v29, %v2172_v61  ;;  %v2320_v24 = vadd.f32 %v2313_v9, %v2174_v59  ;;  %v2244_v21 = vpop.f32.mrb[13].mxu0  ;;  %v2315_v36 = vpop.f32.mrb[21].mxu1 }
 0x4ce   :  { %v2319_v38 = vadd.f32 %v2244_v21, %v2173_v25  ;;  %v2321_v58 = vadd.f32 %v2315_v36, %v2175_v53  ;;  %6711 = vtanh.f32 %v7879_v4  ;;  %v8928_v25 = vld [vmem:[#allocation21_spill] sm:$0xff] }
 0x4cf   :  { %v4920_v35 = vmul.f32 -1.442695, %v2318_v2  ;;  %v4922_v60 = vmul.f32 -1.442695, %v2320_v24  ;;  %v8929_v2 = vld [vmem:[#allocation28_spill] sm:$0xff] }
 0x4d0   :  { %v4921_v26 = vmul.f32 -1.442695, %v2319_v38  ;;  %v8930_v38 = vld [vmem:[#allocation22_spill] sm:$0xff] }
 0x4d1   :  { %6713 = vpow2.f32 %v4920_v35  ;;  %v8932_v35 = vld [vmem:[#allocation24_spill] sm:$0xff] }
 0x4d2   :  { %6715 = vpow2.f32 %v4921_v26  ;;  %v8933_v26 = vld [vmem:[#allocation32_spill] sm:$0xff] }
 0x4d3   :  { %6717 = vtanh.f32 %v2321_v58  ;;  %v8931_v58 = vld [vmem:[#allocation30_spill] sm:$0xff] }
 0x4d4   :  { %6719 = vpow2.f32 %v4922_v60  ;;  %v8936_v60 = vld [vmem:[#allocation26_spill] sm:$0xff] }
 0x4d8   :  { %v6712_v41 = vpop.eup %6711 }
 0x4d9   :  { %v2125_v55 = vmul.f32 %v6712_v41, %v6710_v56  ;;  %v8934_v56 = vld [vmem:[#allocation25_spill] sm:$0xff]  ;;  %v8935_v41 = vld [vmem:[#allocation34_spill] sm:$0xff] }
 0x4db   :  { %v6714_v11 = vpop.eup %6713  ;;  %2411 = vmatmul.mubr.f32.vlgmr.msra.gmra.mrb[14].mxu0 %v2125_v55  ;;  %2482 = vmatmul.mubr.f32.vlgmr.msra.gmra.mrb[22].mxu1 %v2125_v55  ;;  %v8937_v55 = vld [vmem:[#allocation36_spill] sm:$0xff] }
 0x4dc   :  { %v2331_v29 = vadd.f32 1.0, %v6714_v11  ;;  %v6716_v37 = vpop.eup %6715  ;;  %5718 = vmatpush1.bf16.msra.mxu0 %v8794_v52  ;;  %5750 = vmatpush1.bf16.msra.mxu1 %v8795_v8  ;;  %v8938_v11 = vld [vmem:[#allocation27_spill] sm:$0xff] }
 0x4dd   :  { %v2332_v21 = vadd.f32 1.0, %v6716_v37  ;;  %5720 = vmatprep.subr.bf16.mxu0 %v8796_v1  ;;  %5752 = vmatprep.subr.bf16.mxu1 %v8797_v50  ;;  %v6718_v48 = vpop.eup %6717  ;;  %v8940_v37 = vld [vmem:[#allocation29_spill] sm:$0xff] }
 0x4de   :  { %6721 = vrcp.f32 %v2331_v29  ;;  %2552 = vmatprep.mubr.f32.mxu0 %v8732_v57  ;;  %2623 = vmatprep.mubr.f32.mxu1 %v8732_v57  ;;  %v6720_v53 = vpop.eup %6719  ;;  %v8939_v29 = vld [vmem:[#allocation38_spill] sm:$0xff] }
 0x4df   :  { %6723 = vrcp.f32 %v2332_v21  ;;  %v2333_v24 = vadd.f32 1.0, %v6720_v53  ;;  %v8941_v21 = vld [vmem:[#allocation40_spill] sm:$0xff]  ;;  %v8943_v53 = vld [vmem:[#allocation42_spill] sm:$0xff] }
 0x4e0   :  { %5722 = vmatpush1.bf16.msra.mxu0 %v8798_v22  ;;  %5754 = vmatpush1.bf16.msra.mxu1 %v8799_v18 }
 0x4e1   :  { %5724 = vmatprep.subr.bf16.mxu0 %v8800_v28  ;;  %5756 = vmatprep.subr.bf16.mxu1 %v8801_v32  ;;  %6725 = vrcp.f32 %v2333_v24  ;;  %v8947_v24 = vld [vmem:[#allocation44_spill] sm:$0xff] }
 0x4e4   :  { %5726 = vmatpush1.bf16.msra.mxu0 %v8802_v54  ;;  %5758 = vmatpush1.bf16.msra.mxu1 %v8803_v42 }
 0x4e5   :  { %5728 = vmatprep.subr.bf16.mxu0 %v8861_v39  ;;  %5760 = vmatprep.subr.bf16.mxu1 %v8862_v46 }
 0x4e8   :  { %v6722_v59 = vpop.eup %6721  ;;  %5730 = vmatpush1.bf16.msra.mxu0 %v8806_v23  ;;  %5762 = vmatpush1.bf16.msra.mxu1 %v8807_v3 }
 0x4e9   :  { %v2342_v61 = vmul.f32 %v6722_v59, %v6718_v48  ;;  %v6724_v36 = vpop.eup %6723  ;;  %5732 = vmatprep.subr.bf16.mxu0 %v8863_v19  ;;  %5764 = vmatprep.subr.bf16.mxu1 %v8864_v10  ;;  %v8942_v48 = vld [vmem:[#allocation31_spill] sm:$0xff]  ;;  %v8944_v59 = vld [vmem:[#allocation33_spill] sm:$0xff] }
 0x4ea   :  { %v2341_v45 = vmul.f32 %v6724_v36, %v7776_v31  ;;  %v8946_v36 = vld [vmem:[#allocation35_spill] sm:$0xff] }
 0x4eb   :  { %v6726_v31 = vpop.eup %6725 }
 0x4ec   :  { %v7902_v44 = vadd.f32 %v2342_v61, %v2341_v45  ;;  %5734 = vmatpush1.bf16.msra.mxu0 %v8865_v6  ;;  %5766 = vmatpush1.bf16.msra.mxu1 %v8866_v12  ;;  %v8945_v61 = vld [vmem:[#allocation43_spill] sm:$0xff]  ;;  %v8948_v45 = vld [vmem:[#allocation37_spill] sm:$0xff] }
 0x4ed   :  { %5736 = vmatprep.subr.bf16.mxu0 %v8867_v33  ;;  %5768 = vmatprep.subr.bf16.mxu1 %v8868_v20 }
 0x4ee   :  { %6727 = vtanh.f32 %v7902_v44 }
 0x4f0   :  { %5738 = vmatpush1.bf16.msra.mxu0 %v8869_v27  ;;  %5770 = vmatpush1.bf16.msra.mxu1 %v8870_v16 }
 0x4f1   :  { %5740 = vmatprep.subr.bf16.mxu0 %v8871_v62  ;;  %5772 = vmatprep.subr.bf16.mxu1 %v8817_v5 }
 0x4f4   :  { %5742 = vmatpush1.bf16.msra.mxu0 %v8818_v34  ;;  %5774 = vmatpush1.bf16.msra.mxu1 %v8819_v40 }
 0x4f5   :  { %5744 = vmatprep.subr.bf16.mxu0 %v8820_v43  ;;  %5776 = vmatprep.subr.bf16.mxu1 %v8821_v0 }
 0x4f8   :  { %v6728_v14 = vpop.eup %6727  ;;  %5746 = vmatpush1.bf16.msra.mxu0 %v8822_v15  ;;  %5778 = vmatpush1.bf16.msra.mxu1 %v8823_v30 }
 0x4f9   :  { %v2345_v9 = vmul.f32 %v6728_v14, %v6726_v31  ;;  %5780 = vmatprep.subr.bf16.mxu0 %v8824_v7  ;;  %5812 = vmatprep.subr.bf16.mxu1 %v8825_v63  ;;  %v8949_v31 = vld [vmem:[#allocation45_spill] sm:$0xff]  ;;  %v8950_v14 = vld [vmem:[#allocation39_spill] sm:$0xff] }
 0x4fb   :  { %2553 = vmatmul.mubr.f32.vlgmr.msra.gmra.mrb[14].mxu0 %v2345_v9  ;;  %2624 = vmatmul.mubr.f32.vlgmr.msra.gmra.mrb[22].mxu1 %v2345_v9 }
 0x4fc   :  { %5782 = vmatpush1.bf16.msra.mxu0 %v7195_v13  ;;  %5814 = vmatpush1.bf16.msra.mxu1 %v7219_v47 }
 0x4fd   :  { %5784 = vmatprep.subr.bf16.mxu0 %v7198_v17  ;;  %5816 = vmatprep.subr.bf16.mxu1 %v7224_v49 }
 0x4fe   :  { %2772 = vmatprep.mubr.f32.mxu0 %v8732_v57  ;;  %2843 = vmatprep.mubr.f32.mxu1 %v8732_v57 }
 0x500   :  { %5786 = vmatpush1.bf16.msra.mxu0 %v8928_v25  ;;  %5818 = vmatpush1.bf16.msra.mxu1 %v8929_v2 }
 0x501   :  { %5788 = vmatprep.subr.bf16.mxu0 %v8930_v38  ;;  %5820 = vmatprep.subr.bf16.mxu1 %v8931_v58 }
 0x504   :  { %5790 = vmatpush1.bf16.msra.mxu0 %v8932_v35  ;;  %5822 = vmatpush1.bf16.msra.mxu1 %v8933_v26 }
 0x505   :  { %5792 = vmatprep.subr.bf16.mxu0 %v8934_v56  ;;  %5824 = vmatprep.subr.bf16.mxu1 %v8935_v41 }
 0x508   :  { %5794 = vmatpush1.bf16.msra.mxu0 %v8936_v60  ;;  %5826 = vmatpush1.bf16.msra.mxu1 %v8937_v55  ;;  %v8991_v60 = vld [vmem:[#allocation115_spill] sm:$0xff] }
 0x509   :  { %5796 = vmatprep.subr.bf16.mxu0 %v8938_v11  ;;  %5828 = vmatprep.subr.bf16.mxu1 %v8939_v29  ;;  %v8989_v11 = vld [vmem:[#allocation117_spill] sm:$0xff] }
 0x50c   :  { %5798 = vmatpush1.bf16.msra.mxu0 %v8940_v37  ;;  %5830 = vmatpush1.bf16.msra.mxu1 %v8941_v21  ;;  %v8951_v37 = vld [vmem:[#allocation46_spill] sm:$0xff]  ;;  %v8952_v21 = vld [vmem:[#allocation41_spill] sm:$0xff] }
 0x50d   :  { %5800 = vmatprep.subr.bf16.mxu0 %v8942_v48  ;;  %5832 = vmatprep.subr.bf16.mxu1 %v8943_v53  ;;  %v8953_v48 = vld [vmem:[#allocation47_spill] sm:$0xff]  ;;  %v8954_v53 = vld [vmem:[#allocation48_spill] sm:$0xff] }
 0x510   :  { %5802 = vmatpush1.bf16.msra.mxu0 %v8944_v59  ;;  %5834 = vmatpush1.bf16.msra.mxu1 %v8945_v61  ;;  %v8955_v59 = vld [vmem:[#allocation49_spill] sm:$0xff]  ;;  %v8988_v61 = vld [vmem:[#allocation116_spill] sm:$0xff] }
 0x511   :  { %5804 = vmatprep.subr.bf16.mxu0 %v8946_v36  ;;  %5836 = vmatprep.subr.bf16.mxu1 %v8947_v24  ;;  %v8956_v36 = vld [vmem:[#allocation50_spill] sm:$0xff]  ;;  %v8957_v24 = vld [vmem:[#allocation51_spill] sm:$0xff] }
 0x514   :  { %5806 = vmatpush1.bf16.msra.mxu0 %v8948_v45  ;;  %5838 = vmatpush1.bf16.msra.mxu1 %v8949_v31  ;;  %v8958_v45 = vld [vmem:[#allocation52_spill] sm:$0xff]  ;;  %v8959_v31 = vld [vmem:[#allocation53_spill] sm:$0xff] }
 0x515   :  { %5808 = vmatprep.subr.bf16.mxu0 %v8950_v14  ;;  %5840 = vmatprep.subr.bf16.mxu1 %v8951_v37  ;;  %v8969_v37 = vld [vmem:[#allocation63_spill] sm:$0xff]  ;;  %v8970_v14 = vld [vmem:[#allocation64_spill] sm:$0xff] }
 0x518   :  { %5810 = vmatpush1.bf16.msra.mxu0 %v8952_v21  ;;  %5842 = vmatpush1.bf16.msra.mxu1 %v8953_v48  ;;  %v8960_v21 = vld [vmem:[#allocation54_spill] sm:$0xff]  ;;  %v8961_v48 = vld [vmem:[#allocation55_spill] sm:$0xff] }
 0x519   :  { %5844 = vmatprep.subr.bf16.mxu0 %v8954_v53  ;;  %5876 = vmatprep.subr.bf16.mxu1 %v8955_v59  ;;  %v8962_v53 = vld [vmem:[#allocation56_spill] sm:$0xff]  ;;  %v8963_v59 = vld [vmem:[#allocation57_spill] sm:$0xff] }
 0x51b   :  { %2773 = vmatmul.mubr.f32.vlgmr.msra.gmra.mrb[16].mxu0 %v2345_v9  ;;  %2844 = vmatmul.mubr.f32.vlgmr.msra.gmra.mrb[24].mxu1 %v2345_v9  ;;  %v8964_v9 = vld [vmem:[#allocation58_spill] sm:$0xff] }
 0x51c   :  { %5846 = vmatpush1.bf16.msra.mxu0 %v8956_v36  ;;  %5878 = vmatpush1.bf16.msra.mxu1 %v8957_v24  ;;  %v8965_v36 = vld [vmem:[#allocation59_spill] sm:$0xff]  ;;  %v8966_v24 = vld [vmem:[#allocation60_spill] sm:$0xff] }
 0x51d   :  { %5848 = vmatprep.subr.bf16.mxu0 %v8958_v45  ;;  %5880 = vmatprep.subr.bf16.mxu1 %v8959_v31  ;;  %v8967_v45 = vld [vmem:[#allocation61_spill] sm:$0xff]  ;;  %v8968_v31 = vld [vmem:[#allocation62_spill] sm:$0xff] }
 0x51e   :  { %2942 = vmatprep.mubr.f32.mxu0 %v8732_v57  ;;  %3013 = vmatprep.mubr.f32.mxu1 %v8732_v57 }
 0x520   :  { %5850 = vmatpush1.bf16.msra.mxu0 %v8960_v21  ;;  %5882 = vmatpush1.bf16.msra.mxu1 %v8961_v48  ;;  %v8971_v21 = vld [vmem:[#allocation65_spill] sm:$0xff]  ;;  %v8972_v48 = vld [vmem:[#allocation66_spill] sm:$0xff] }
 0x521   :  { %5852 = vmatprep.subr.bf16.mxu0 %v8962_v53  ;;  %5884 = vmatprep.subr.bf16.mxu1 %v8963_v59  ;;  %v8973_v53 = vld [vmem:[#allocation67_spill] sm:$0xff]  ;;  %v8974_v59 = vld [vmem:[#allocation68_spill] sm:$0xff] }
 0x524   :  { %5854 = vmatpush1.bf16.msra.mxu0 %v8964_v9  ;;  %5886 = vmatpush1.bf16.msra.mxu1 %v8965_v36  ;;  %v8975_v9 = vld [vmem:[#allocation69_spill] sm:$0xff]  ;;  %v8976_v36 = vld [vmem:[#allocation70_spill] sm:$0xff] }
 0x525   :  { %5856 = vmatprep.subr.bf16.mxu0 %v8966_v24  ;;  %5888 = vmatprep.subr.bf16.mxu1 %v8967_v45  ;;  %v8977_v24 = vld [vmem:[#allocation71_spill] sm:$0xff]  ;;  %v8978_v45 = vld [vmem:[#allocation72_spill] sm:$0xff] }
 0x528   :  { %5858 = vmatpush1.bf16.msra.mxu0 %v8968_v31  ;;  %5890 = vmatpush1.bf16.msra.mxu1 %v8969_v37  ;;  %v8979_v31 = vld [vmem:[#allocation73_spill] sm:$0xff]  ;;  %v8980_v37 = vld [vmem:[#allocation74_spill] sm:$0xff] }
 0x529   :  { %5860 = vmatprep.subr.bf16.mxu0 %v8970_v14  ;;  %5892 = vmatprep.subr.bf16.mxu1 %v8971_v21  ;;  %v8981_v14 = vld [vmem:[#allocation75_spill] sm:$0xff]  ;;  %v8982_v21 = vld [vmem:[#allocation76_spill] sm:$0xff] }
 0x52c   :  { %5862 = vmatpush1.bf16.msra.mxu0 %v8972_v48  ;;  %5894 = vmatpush1.bf16.msra.mxu1 %v8973_v53  ;;  %v8983_v48 = vld [vmem:[#allocation77_spill] sm:$0xff]  ;;  %v8984_v53 = vld [vmem:[#allocation78_spill] sm:$0xff] }
 0x52d   :  { %5864 = vmatprep.subr.bf16.mxu0 %v8974_v59  ;;  %5896 = vmatprep.subr.bf16.mxu1 %v8975_v9  ;;  %v8985_v59 = vld [vmem:[#allocation79_spill] sm:$0xff]  ;;  %v8986_v9 = vld [vmem:[#allocation80_spill] sm:$0xff] }
 0x530   :  { %5866 = vmatpush1.bf16.msra.mxu0 %v8976_v36  ;;  %5898 = vmatpush1.bf16.msra.mxu1 %v8977_v24  ;;  %v8987_v36 = vld [vmem:[#allocation81_spill] sm:$0xff] }
 0x531   :  { %5868 = vmatprep.subr.bf16.mxu0 %v8978_v45  ;;  %5900 = vmatprep.subr.bf16.mxu1 %v8979_v31 }
 0x534   :  { %5870 = vmatpush1.bf16.msra.mxu0 %v8980_v37  ;;  %5902 = vmatpush1.bf16.msra.mxu1 %v8981_v14 }
 0x535   :  { %5872 = vmatprep.subr.bf16.mxu0 %v8982_v21  ;;  %5904 = vmatprep.subr.bf16.mxu1 %v8983_v48  ;;  %v8990_v48 = vld [vmem:[#allocation118_spill] sm:$0xff] }
 0x538   :  { %5874 = vmatpush1.bf16.msra.mxu0 %v8984_v53  ;;  %5906 = vmatpush1.bf16.msra.mxu1 %v8985_v59 }
 0x539   :  { %5908 = vmatprep.subr.bf16.mxu0 %v8986_v9  ;;  %5940 = vmatprep.subr.bf16.mxu1 %v8987_v36 }
 0x5ce   :  { %v2554_v24 = vpop.f32.mrb[14].mxu0  ;;  %v2625_v45 = vpop.f32.mrb[22].mxu1 }
 0x5cf   :  { %v2630_v31 = vadd.f32 %v2554_v24, %v8988_v61  ;;  %v2556_v29 = vpop.f32.mrb[15].mxu0  ;;  %v2627_v37 = vpop.f32.mrb[23].mxu1  ;;  %v2632_v53 = vadd.f32 %v2625_v45, %v8990_v48  ;;  %v2661_v61 = vld [vmem:[#allocation2 + $0x24] ss:$8 sm:$0xf] }
 0x5d0   :  { %v2631_v14 = vadd.f32 %v2556_v29, %v8989_v11  ;;  %v2633_v59 = vadd.f32 %v2627_v37, %v8991_v60  ;;  %v8993_v11 = vld [vmem:[#allocation114_spill] sm:$0xff]  ;;  %v8994_v48 = vld [vmem:[#allocation113_spill] sm:$0xff] }
 0x5d1   :  { %v4923_v55 = vmul.f32 -1.442695, %v2630_v31  ;;  %v4925_v41 = vmul.f32 -1.442695, %v2632_v53  ;;  %v2695_v45 = vrot.slane %v2661_v61, %v8993_v11  ;;  %v2691_v37 = vrot.slane %v2661_v61, %v8994_v48 }
 0x5d2   :  { %v4924_v21 = vmul.f32 -1.442695, %v2631_v14  ;;  %v2659_v31 = vld [vmem:[#allocation2 + $0x4] ss:$8 sm:$0xf] }
 0x5d3   :  { %6729 = vpow2.f32 %v4923_v55  ;;  %v8992_v55 = vld [vmem:[#allocation112_spill] sm:$0xff]  ;;  %v2678_v35 = vrot.slane %v2659_v31, %v8792_v51 }
 0x5d4   :  { %6731 = vpow2.f32 %v4924_v21  ;;  %v2687_v21 = vrot.slane %v2661_v61, %v8992_v55 }
 0x5d5   :  { %6733 = vtanh.f32 %v2633_v59 }
 0x5d6   :  { %6735 = vpow2.f32 %v4925_v41  ;;  %v2674_v41 = vrot.slane %v2659_v31, %v8993_v11 }
 0x5d8   :  { %v2706_v2 = vsel %vm575_vm1, %v2674_v41, %v2695_v45 }
 0x5dd   :  { %v6730_v9 = vpop.eup %6729 }
 0x5de   :  { %v2643_v56 = vadd.f32 1.0, %v6730_v9  ;;  %v6732_v36 = vpop.eup %6731  ;;  %v2699_v9 = vrot.slane %v2661_v61, %v8792_v51 }
 0x5df   :  { %v2644_v24 = vadd.f32 1.0, %v6732_v36  ;;  %v6734_v26 = vpop.eup %6733  ;;  %v2670_v36 = vrot.slane %v2659_v31, %v8994_v48 }
 0x5e0   :  { %6737 = vrcp.f32 %v2643_v56  ;;  %v6736_v29 = vpop.eup %6735  ;;  %v2666_v56 = vrot.slane %v2659_v31, %v8992_v55  ;;  %v2707_v11 = vsel %vm575_vm1, %v2678_v35, %v2699_v9 }
 0x5e1   :  { %6739 = vrcp.f32 %v2644_v24  ;;  %v2645_v60 = vadd.f32 1.0, %v6736_v29  ;;  %v2705_v61 = vsel %vm575_vm1, %v2670_v36, %v2691_v37 }
 0x5e2   :  { %v2704_v58 = vsel %vm575_vm1, %v2666_v56, %v2687_v21 }
 0x5e3   :  { %6741 = vrcp.f32 %v2645_v60 }
 0x5ea   :  { %v6738_v14 = vpop.eup %6737 }
 0x5eb   :  { %v2654_v53 = vmul.f32 %v6738_v14, %v6734_v26  ;;  %v6740_v59 = vpop.eup %6739 }
 0x5ec   :  { %v2653_v24 = vmul.f32 %v6740_v59, %v7879_v4 }
 0x5ed   :  { %v6742_v45 = vpop.eup %6741 }
 0x5ee   :  { %v2774_v38 = vpop.f32.mrb[16].mxu0  ;;  %v2845_v26 = vpop.f32.mrb[24].mxu1  ;;  %v8005_v14 = vadd.f32 %v2654_v53, %v2653_v24 }
 0x5ef   :  { %v2850_v29 = vadd.f32 %v2774_v38, %v2704_v58  ;;  %v2852_v55 = vadd.f32 %v2845_v26, %v2706_v2  ;;  %v2776_v25 = vpop.f32.mrb[17].mxu0  ;;  %v2847_v48 = vpop.f32.mrb[25].mxu1 }
 0x5f0   :  { %v2851_v4 = vadd.f32 %v2776_v25, %v2705_v61  ;;  %v2853_v59 = vadd.f32 %v2847_v48, %v2707_v11  ;;  %6743 = vtanh.f32 %v8005_v14  ;;  %v8995_v61 = vld [vmem:[#allocation21_spill] sm:$0xff] }
 0x5f1   :  { %v4926_v31 = vmul.f32 -1.442695, %v2850_v29  ;;  %v4928_v37 = vmul.f32 -1.442695, %v2852_v55  ;;  %v8996_v29 = vld [vmem:[#allocation28_spill] sm:$0xff] }
 0x5f2   :  { %v4927_v21 = vmul.f32 -1.442695, %v2851_v4  ;;  %v8997_v4 = vld [vmem:[#allocation22_spill] sm:$0xff] }
 0x5f3   :  { %6745 = vpow2.f32 %v4926_v31  ;;  %v8999_v31 = vld [vmem:[#allocation24_spill] sm:$0xff] }
 0x5f4   :  { %6747 = vpow2.f32 %v4927_v21  ;;  %v9000_v21 = vld [vmem:[#allocation32_spill] sm:$0xff] }
 0x5f5   :  { %6749 = vtanh.f32 %v2853_v59  ;;  %v8998_v59 = vld [vmem:[#allocation30_spill] sm:$0xff] }
 0x5f6   :  { %6751 = vpow2.f32 %v4928_v37  ;;  %v9003_v37 = vld [vmem:[#allocation26_spill] sm:$0xff] }
 0x5fa   :  { %v6744_v56 = vpop.eup %6743 }
 0x5fb   :  { %v2657_v53 = vmul.f32 %v6744_v56, %v6742_v45  ;;  %v9001_v45 = vld [vmem:[#allocation25_spill] sm:$0xff]  ;;  %v9002_v56 = vld [vmem:[#allocation34_spill] sm:$0xff] }
 0x5fd   :  { %v6746_v41 = vpop.eup %6745  ;;  %2943 = vmatmul.mubr.f32.vlgmr.msra.gmra.mrb[18].mxu0 %v2657_v53  ;;  %3014 = vmatmul.mubr.f32.vlgmr.msra.gmra.mrb[26].mxu1 %v2657_v53  ;;  %v9004_v53 = vld [vmem:[#allocation36_spill] sm:$0xff] }
 0x5fe   :  { %v2863_v38 = vadd.f32 1.0, %v6746_v41  ;;  %v6748_v2 = vpop.eup %6747  ;;  %5910 = vmatpush1.bf16.msra.mxu0 %v8794_v52  ;;  %5942 = vmatpush1.bf16.msra.mxu1 %v8795_v8  ;;  %v9005_v41 = vld [vmem:[#allocation27_spill] sm:$0xff] }
 0x5ff   :  { %v2864_v25 = vadd.f32 1.0, %v6748_v2  ;;  %5912 = vmatprep.subr.bf16.mxu0 %v8796_v1  ;;  %5944 = vmatprep.subr.bf16.mxu1 %v8797_v50  ;;  %v6750_v58 = vpop.eup %6749  ;;  %v9007_v2 = vld [vmem:[#allocation29_spill] sm:$0xff] }
 0x600   :  { %6753 = vrcp.f32 %v2863_v38  ;;  %3084 = vmatprep.mubr.f32.mxu0 %v8732_v57  ;;  %3155 = vmatprep.mubr.f32.mxu1 %v8732_v57  ;;  %v6752_v35 = vpop.eup %6751  ;;  %v9006_v38 = vld [vmem:[#allocation38_spill] sm:$0xff] }
 0x601   :  { %6755 = vrcp.f32 %v2864_v25  ;;  %v2865_v55 = vadd.f32 1.0, %v6752_v35  ;;  %v9008_v25 = vld [vmem:[#allocation40_spill] sm:$0xff]  ;;  %v9010_v35 = vld [vmem:[#allocation42_spill] sm:$0xff] }
 0x602   :  { %5914 = vmatpush1.bf16.msra.mxu0 %v8798_v22  ;;  %5946 = vmatpush1.bf16.msra.mxu1 %v8799_v18 }
 0x603   :  { %5916 = vmatprep.subr.bf16.mxu0 %v8800_v28  ;;  %5948 = vmatprep.subr.bf16.mxu1 %v8801_v32  ;;  %6757 = vrcp.f32 %v2865_v55  ;;  %v9014_v55 = vld [vmem:[#allocation44_spill] sm:$0xff] }
 0x606   :  { %5918 = vmatpush1.bf16.msra.mxu0 %v8802_v54  ;;  %5950 = vmatpush1.bf16.msra.mxu1 %v8803_v42 }
 0x607   :  { %5920 = vmatprep.subr.bf16.mxu0 %v8861_v39  ;;  %5952 = vmatprep.subr.bf16.mxu1 %v8862_v46 }
 0x60a   :  { %v6754_v60 = vpop.eup %6753  ;;  %5922 = vmatpush1.bf16.msra.mxu0 %v8806_v23  ;;  %5954 = vmatpush1.bf16.msra.mxu1 %v8807_v3 }
 0x60b   :  { %v2874_v11 = vmul.f32 %v6754_v60, %v6750_v58  ;;  %v6756_v48 = vpop.eup %6755  ;;  %5924 = vmatprep.subr.bf16.mxu0 %v8863_v19  ;;  %5956 = vmatprep.subr.bf16.mxu1 %v8864_v10  ;;  %v9009_v58 = vld [vmem:[#allocation31_spill] sm:$0xff]  ;;  %v9011_v60 = vld [vmem:[#allocation33_spill] sm:$0xff] }
 0x60c   :  { %v2873_v9 = vmul.f32 %v6756_v48, %v7902_v44  ;;  %v9013_v48 = vld [vmem:[#allocation35_spill] sm:$0xff] }
 0x60d   :  { %v6758_v44 = vpop.eup %6757 }
 0x60e   :  { %v8028_v36 = vadd.f32 %v2874_v11, %v2873_v9  ;;  %5926 = vmatpush1.bf16.msra.mxu0 %v8865_v6  ;;  %5958 = vmatpush1.bf16.msra.mxu1 %v8866_v12  ;;  %v9012_v11 = vld [vmem:[#allocation43_spill] sm:$0xff]  ;;  %v9015_v9 = vld [vmem:[#allocation37_spill] sm:$0xff] }
 0x60f   :  { %5928 = vmatprep.subr.bf16.mxu0 %v8867_v33  ;;  %5960 = vmatprep.subr.bf16.mxu1 %v8868_v20 }
 0x610   :  { %6759 = vtanh.f32 %v8028_v36 }
 0x612   :  { %5930 = vmatpush1.bf16.msra.mxu0 %v8869_v27  ;;  %5962 = vmatpush1.bf16.msra.mxu1 %v8870_v16 }
 0x613   :  { %5932 = vmatprep.subr.bf16.mxu0 %v8871_v62  ;;  %5964 = vmatprep.subr.bf16.mxu1 %v8817_v5 }
 0x616   :  { %5934 = vmatpush1.bf16.msra.mxu0 %v8818_v34  ;;  %5966 = vmatpush1.bf16.msra.mxu1 %v8819_v40 }
 0x617   :  { %5936 = vmatprep.subr.bf16.mxu0 %v8820_v43  ;;  %5968 = vmatprep.subr.bf16.mxu1 %v8821_v0 }
 0x61a   :  { %v6760_v24 = vpop.eup %6759  ;;  %5938 = vmatpush1.bf16.msra.mxu0 %v8822_v15  ;;  %5970 = vmatpush1.bf16.msra.mxu1 %v8823_v30 }
 0x61b   :  { %5972 = vmatprep.subr.bf16.mxu0 %v8824_v7  ;;  %6004 = vmatprep.subr.bf16.mxu1 %v8825_v63  ;;  %v2877_v26 = vmul.f32 %v6760_v24, %v6758_v44  ;;  %v9016_v44 = vld [vmem:[#allocation45_spill] sm:$0xff]  ;;  %v9017_v24 = vld [vmem:[#allocation39_spill] sm:$0xff] }
 0x61d   :  { %3085 = vmatmul.mubr.f32.vlgmr.msra.gmra.mrb[18].mxu0 %v2877_v26  ;;  %3156 = vmatmul.mubr.f32.vlgmr.msra.gmra.mrb[26].mxu1 %v2877_v26 }
 0x61e   :  { %5974 = vmatpush1.bf16.msra.mxu0 %v7195_v13  ;;  %6006 = vmatpush1.bf16.msra.mxu1 %v7219_v47 }
 0x61f   :  { %5976 = vmatprep.subr.bf16.mxu0 %v7198_v17  ;;  %6008 = vmatprep.subr.bf16.mxu1 %v7224_v49 }
 0x620   :  { %3304 = vmatprep.mubr.f32.mxu0 %v8732_v57  ;;  %3375 = vmatprep.mubr.f32.mxu1 %v8732_v57 }
 0x622   :  { %5978 = vmatpush1.bf16.msra.mxu0 %v8995_v61  ;;  %6010 = vmatpush1.bf16.msra.mxu1 %v8996_v29 }
 0x623   :  { %5980 = vmatprep.subr.bf16.mxu0 %v8997_v4  ;;  %6012 = vmatprep.subr.bf16.mxu1 %v8998_v59 }
 0x626   :  { %5982 = vmatpush1.bf16.msra.mxu0 %v8999_v31  ;;  %6014 = vmatpush1.bf16.msra.mxu1 %v9000_v21 }
 0x627   :  { %5984 = vmatprep.subr.bf16.mxu0 %v9001_v45  ;;  %6016 = vmatprep.subr.bf16.mxu1 %v9002_v56 }
 0x62a   :  { %5986 = vmatpush1.bf16.msra.mxu0 %v9003_v37  ;;  %6018 = vmatpush1.bf16.msra.mxu1 %v9004_v53  ;;  %v9058_v37 = vld [vmem:[#allocation115_spill] sm:$0xff] }
 0x62b   :  { %5988 = vmatprep.subr.bf16.mxu0 %v9005_v41  ;;  %6020 = vmatprep.subr.bf16.mxu1 %v9006_v38  ;;  %v9056_v41 = vld [vmem:[#allocation117_spill] sm:$0xff] }
 0x62e   :  { %5990 = vmatpush1.bf16.msra.mxu0 %v9007_v2  ;;  %6022 = vmatpush1.bf16.msra.mxu1 %v9008_v25  ;;  %v9018_v2 = vld [vmem:[#allocation46_spill] sm:$0xff]  ;;  %v9019_v25 = vld [vmem:[#allocation41_spill] sm:$0xff] }
 0x62f   :  { %5992 = vmatprep.subr.bf16.mxu0 %v9009_v58  ;;  %6024 = vmatprep.subr.bf16.mxu1 %v9010_v35  ;;  %v9020_v58 = vld [vmem:[#allocation47_spill] sm:$0xff]  ;;  %v9021_v35 = vld [vmem:[#allocation48_spill] sm:$0xff] }
 0x632   :  { %5994 = vmatpush1.bf16.msra.mxu0 %v9011_v60  ;;  %6026 = vmatpush1.bf16.msra.mxu1 %v9012_v11  ;;  %v9022_v60 = vld [vmem:[#allocation49_spill] sm:$0xff]  ;;  %v9055_v11 = vld [vmem:[#allocation116_spill] sm:$0xff] }
 0x633   :  { %5996 = vmatprep.subr.bf16.mxu0 %v9013_v48  ;;  %6028 = vmatprep.subr.bf16.mxu1 %v9014_v55  ;;  %v9023_v48 = vld [vmem:[#allocation50_spill] sm:$0xff]  ;;  %v9024_v55 = vld [vmem:[#allocation51_spill] sm:$0xff] }
 0x636   :  { %5998 = vmatpush1.bf16.msra.mxu0 %v9015_v9  ;;  %6030 = vmatpush1.bf16.msra.mxu1 %v9016_v44  ;;  %v9025_v9 = vld [vmem:[#allocation52_spill] sm:$0xff]  ;;  %v9026_v44 = vld [vmem:[#allocation53_spill] sm:$0xff] }
 0x637   :  { %6000 = vmatprep.subr.bf16.mxu0 %v9017_v24  ;;  %6032 = vmatprep.subr.bf16.mxu1 %v9018_v2  ;;  %v9036_v2 = vld [vmem:[#allocation63_spill] sm:$0xff]  ;;  %v9037_v24 = vld [vmem:[#allocation64_spill] sm:$0xff] }
 0x63a   :  { %6002 = vmatpush1.bf16.msra.mxu0 %v9019_v25  ;;  %6034 = vmatpush1.bf16.msra.mxu1 %v9020_v58  ;;  %v9027_v25 = vld [vmem:[#allocation54_spill] sm:$0xff]  ;;  %v9028_v58 = vld [vmem:[#allocation55_spill] sm:$0xff] }
 0x63b   :  { %6036 = vmatprep.subr.bf16.mxu0 %v9021_v35  ;;  %6068 = vmatprep.subr.bf16.mxu1 %v9022_v60  ;;  %v9029_v35 = vld [vmem:[#allocation56_spill] sm:$0xff]  ;;  %v9030_v60 = vld [vmem:[#allocation57_spill] sm:$0xff] }
 0x63d   :  { %3305 = vmatmul.mubr.f32.vlgmr.msra.gmra.mrb[20].mxu0 %v2877_v26  ;;  %3376 = vmatmul.mubr.f32.vlgmr.msra.gmra.mrb[28].mxu1 %v2877_v26  ;;  %v9031_v26 = vld [vmem:[#allocation58_spill] sm:$0xff] }
 0x63e   :  { %6038 = vmatpush1.bf16.msra.mxu0 %v9023_v48  ;;  %6070 = vmatpush1.bf16.msra.mxu1 %v9024_v55  ;;  %v9032_v48 = vld [vmem:[#allocation59_spill] sm:$0xff]  ;;  %v9033_v55 = vld [vmem:[#allocation60_spill] sm:$0xff] }
 0x63f   :  { %6040 = vmatprep.subr.bf16.mxu0 %v9025_v9  ;;  %6072 = vmatprep.subr.bf16.mxu1 %v9026_v44  ;;  %v9034_v9 = vld [vmem:[#allocation61_spill] sm:$0xff]  ;;  %v9035_v44 = vld [vmem:[#allocation62_spill] sm:$0xff] }
 0x640   :  { %3474 = vmatprep.mubr.f32.mxu0 %v8732_v57  ;;  %3545 = vmatprep.mubr.f32.mxu1 %v8732_v57 }
 0x642   :  { %6042 = vmatpush1.bf16.msra.mxu0 %v9027_v25  ;;  %6074 = vmatpush1.bf16.msra.mxu1 %v9028_v58  ;;  %v9038_v25 = vld [vmem:[#allocation65_spill] sm:$0xff]  ;;  %v9039_v58 = vld [vmem:[#allocation66_spill] sm:$0xff] }
 0x643   :  { %6044 = vmatprep.subr.bf16.mxu0 %v9029_v35  ;;  %6076 = vmatprep.subr.bf16.mxu1 %v9030_v60  ;;  %v9040_v35 = vld [vmem:[#allocation67_spill] sm:$0xff]  ;;  %v9041_v60 = vld [vmem:[#allocation68_spill] sm:$0xff] }
 0x646   :  { %6046 = vmatpush1.bf16.msra.mxu0 %v9031_v26  ;;  %6078 = vmatpush1.bf16.msra.mxu1 %v9032_v48  ;;  %v9042_v26 = vld [vmem:[#allocation69_spill] sm:$0xff]  ;;  %v9043_v48 = vld [vmem:[#allocation70_spill] sm:$0xff] }
 0x647   :  { %6048 = vmatprep.subr.bf16.mxu0 %v9033_v55  ;;  %6080 = vmatprep.subr.bf16.mxu1 %v9034_v9  ;;  %v9044_v55 = vld [vmem:[#allocation71_spill] sm:$0xff]  ;;  %v9045_v9 = vld [vmem:[#allocation72_spill] sm:$0xff] }
 0x64a   :  { %6050 = vmatpush1.bf16.msra.mxu0 %v9035_v44  ;;  %6082 = vmatpush1.bf16.msra.mxu1 %v9036_v2  ;;  %v9046_v44 = vld [vmem:[#allocation73_spill] sm:$0xff]  ;;  %v9047_v2 = vld [vmem:[#allocation74_spill] sm:$0xff] }
 0x64b   :  { %6052 = vmatprep.subr.bf16.mxu0 %v9037_v24  ;;  %6084 = vmatprep.subr.bf16.mxu1 %v9038_v25  ;;  %v9048_v24 = vld [vmem:[#allocation75_spill] sm:$0xff]  ;;  %v9049_v25 = vld [vmem:[#allocation76_spill] sm:$0xff] }
 0x64e   :  { %6054 = vmatpush1.bf16.msra.mxu0 %v9039_v58  ;;  %6086 = vmatpush1.bf16.msra.mxu1 %v9040_v35  ;;  %v9050_v58 = vld [vmem:[#allocation77_spill] sm:$0xff]  ;;  %v9051_v35 = vld [vmem:[#allocation78_spill] sm:$0xff] }
 0x64f   :  { %6056 = vmatprep.subr.bf16.mxu0 %v9041_v60  ;;  %6088 = vmatprep.subr.bf16.mxu1 %v9042_v26  ;;  %v9052_v60 = vld [vmem:[#allocation79_spill] sm:$0xff]  ;;  %v9053_v26 = vld [vmem:[#allocation80_spill] sm:$0xff] }
 0x652   :  { %6058 = vmatpush1.bf16.msra.mxu0 %v9043_v48  ;;  %6090 = vmatpush1.bf16.msra.mxu1 %v9044_v55  ;;  %v9054_v48 = vld [vmem:[#allocation81_spill] sm:$0xff] }
 0x653   :  { %6060 = vmatprep.subr.bf16.mxu0 %v9045_v9  ;;  %6092 = vmatprep.subr.bf16.mxu1 %v9046_v44 }
 0x656   :  { %6062 = vmatpush1.bf16.msra.mxu0 %v9047_v2  ;;  %6094 = vmatpush1.bf16.msra.mxu1 %v9048_v24 }
 0x657   :  { %6064 = vmatprep.subr.bf16.mxu0 %v9049_v25  ;;  %6096 = vmatprep.subr.bf16.mxu1 %v9050_v58  ;;  %v9057_v58 = vld [vmem:[#allocation118_spill] sm:$0xff] }
 0x65a   :  { %6066 = vmatpush1.bf16.msra.mxu0 %v9051_v35  ;;  %6098 = vmatpush1.bf16.msra.mxu1 %v9052_v60 }
 0x65b   :  { %6100 = vmatprep.subr.bf16.mxu0 %v9053_v26  ;;  %6132 = vmatprep.subr.bf16.mxu1 %v9054_v48 }
 0x6f0   :  { %v3086_v55 = vpop.f32.mrb[18].mxu0  ;;  %v3157_v9 = vpop.f32.mrb[26].mxu1 }
 0x6f1   :  { %v3162_v44 = vadd.f32 %v3086_v55, %v9055_v11  ;;  %v3088_v38 = vpop.f32.mrb[19].mxu0  ;;  %v3159_v2 = vpop.f32.mrb[27].mxu1  ;;  %v3164_v35 = vadd.f32 %v3157_v9, %v9057_v58  ;;  %v3193_v11 = vld [vmem:[#allocation2 + $0x25] ss:$8 sm:$0xf] }
 0x6f2   :  { %v3163_v24 = vadd.f32 %v3088_v38, %v9056_v41  ;;  %v3165_v60 = vadd.f32 %v3159_v2, %v9058_v37  ;;  %v9060_v41 = vld [vmem:[#allocation114_spill] sm:$0xff]  ;;  %v9061_v58 = vld [vmem:[#allocation113_spill] sm:$0xff] }
 0x6f3   :  { %v4929_v53 = vmul.f32 -1.442695, %v3162_v44  ;;  %v4931_v56 = vmul.f32 -1.442695, %v3164_v35  ;;  %v3227_v9 = vrot.slane %v3193_v11, %v9060_v41  ;;  %v3223_v2 = vrot.slane %v3193_v11, %v9061_v58 }
 0x6f4   :  { %v4930_v25 = vmul.f32 -1.442695, %v3163_v24  ;;  %v3191_v44 = vld [vmem:[#allocation2 + $0x5] ss:$8 sm:$0xf] }
 0x6f5   :  { %6761 = vpow2.f32 %v4929_v53  ;;  %v9059_v53 = vld [vmem:[#allocation112_spill] sm:$0xff]  ;;  %v3210_v31 = vrot.slane %v3191_v44, %v8792_v51 }
 0x6f6   :  { %6763 = vpow2.f32 %v4930_v25  ;;  %v3219_v25 = vrot.slane %v3193_v11, %v9059_v53 }
 0x6f7   :  { %6765 = vtanh.f32 %v3165_v60 }
 0x6f8   :  { %6767 = vpow2.f32 %v4931_v56  ;;  %v3206_v56 = vrot.slane %v3191_v44, %v9060_v41 }
 0x6fa   :  { %v3238_v29 = vsel %vm575_vm1, %v3206_v56, %v3227_v9 }
 0x6ff   :  { %v6762_v26 = vpop.eup %6761 }
 0x700   :  { %v3175_v45 = vadd.f32 1.0, %v6762_v26  ;;  %v6764_v48 = vpop.eup %6763  ;;  %v3231_v26 = vrot.slane %v3193_v11, %v8792_v51 }
 0x701   :  { %v3176_v55 = vadd.f32 1.0, %v6764_v48  ;;  %v6766_v21 = vpop.eup %6765  ;;  %v3202_v48 = vrot.slane %v3191_v44, %v9061_v58 }
 0x702   :  { %6769 = vrcp.f32 %v3175_v45  ;;  %v6768_v38 = vpop.eup %6767  ;;  %v3198_v45 = vrot.slane %v3191_v44, %v9059_v53  ;;  %v3239_v41 = vsel %vm575_vm1, %v3210_v31, %v3231_v26 }
 0x703   :  { %6771 = vrcp.f32 %v3176_v55  ;;  %v3177_v37 = vadd.f32 1.0, %v6768_v38  ;;  %v3237_v11 = vsel %vm575_vm1, %v3202_v48, %v3223_v2 }
 0x704   :  { %v3236_v59 = vsel %vm575_vm1, %v3198_v45, %v3219_v25 }
 0x705   :  { %6773 = vrcp.f32 %v3177_v37 }
 0x70c   :  { %v6770_v24 = vpop.eup %6769 }
 0x70d   :  { %v3186_v35 = vmul.f32 %v6770_v24, %v6766_v21  ;;  %v6772_v60 = vpop.eup %6771 }
 0x70e   :  { %v3185_v55 = vmul.f32 %v6772_v60, %v8005_v14 }
 0x70f   :  { %v6774_v9 = vpop.eup %6773 }
 0x710   :  { %v3306_v4 = vpop.f32.mrb[20].mxu0  ;;  %v3377_v21 = vpop.f32.mrb[28].mxu1  ;;  %v8131_v24 = vadd.f32 %v3186_v35, %v3185_v55 }
 0x711   :  { %v3382_v38 = vadd.f32 %v3306_v4, %v3236_v59  ;;  %v3384_v53 = vadd.f32 %v3377_v21, %v3238_v29  ;;  %v3308_v61 = vpop.f32.mrb[21].mxu0  ;;  %v3379_v58 = vpop.f32.mrb[29].mxu1 }
 0x712   :  { %v3383_v14 = vadd.f32 %v3308_v61, %v3237_v11  ;;  %v3385_v60 = vadd.f32 %v3379_v58, %v3239_v41  ;;  %6775 = vtanh.f32 %v8131_v24  ;;  %v9062_v11 = vld [vmem:[#allocation21_spill] sm:$0xff] }
 0x713   :  { %v4932_v44 = vmul.f32 -1.442695, %v3382_v38  ;;  %v4934_v2 = vmul.f32 -1.442695, %v3384_v53  ;;  %v9063_v38 = vld [vmem:[#allocation28_spill] sm:$0xff] }
 0x714   :  { %v4933_v25 = vmul.f32 -1.442695, %v3383_v14  ;;  %v9064_v14 = vld [vmem:[#allocation22_spill] sm:$0xff] }
 0x715   :  { %6777 = vpow2.f32 %v4932_v44  ;;  %v9066_v44 = vld [vmem:[#allocation24_spill] sm:$0xff] }
 0x716   :  { %6779 = vpow2.f32 %v4933_v25  ;;  %v9067_v25 = vld [vmem:[#allocation32_spill] sm:$0xff] }
 0x717   :  { %6781 = vtanh.f32 %v3385_v60  ;;  %v9065_v60 = vld [vmem:[#allocation30_spill] sm:$0xff] }
 0x718   :  { %6783 = vpow2.f32 %v4934_v2  ;;  %v9070_v2 = vld [vmem:[#allocation26_spill] sm:$0xff] }
 0x71c   :  { %v6776_v45 = vpop.eup %6775 }
 0x71d   :  { %v3189_v35 = vmul.f32 %v6776_v45, %v6774_v9  ;;  %v9068_v9 = vld [vmem:[#allocation25_spill] sm:$0xff]  ;;  %v9069_v45 = vld [vmem:[#allocation34_spill] sm:$0xff] }
 0x71f   :  { %v6778_v56 = vpop.eup %6777  ;;  %3475 = vmatmul.mubr.f32.vlgmr.msra.gmra.mrb[22].mxu0 %v3189_v35  ;;  %3546 = vmatmul.mubr.f32.vlgmr.msra.gmra.mrb[30].mxu1 %v3189_v35  ;;  %v9071_v35 = vld [vmem:[#allocation36_spill] sm:$0xff] }
 0x720   :  { %v3395_v4 = vadd.f32 1.0, %v6778_v56  ;;  %v6780_v29 = vpop.eup %6779  ;;  %6102 = vmatpush1.bf16.msra.mxu0 %v8794_v52  ;;  %6134 = vmatpush1.bf16.msra.mxu1 %v8795_v8  ;;  %v9072_v56 = vld [vmem:[#allocation27_spill] sm:$0xff] }
 0x721   :  { %v3396_v61 = vadd.f32 1.0, %v6780_v29  ;;  %6104 = vmatprep.subr.bf16.mxu0 %v8796_v1  ;;  %6136 = vmatprep.subr.bf16.mxu1 %v8797_v50  ;;  %v6782_v59 = vpop.eup %6781  ;;  %v9074_v29 = vld [vmem:[#allocation29_spill] sm:$0xff] }
 0x722   :  { %6785 = vrcp.f32 %v3395_v4  ;;  %3616 = vmatprep.mubr.f32.mxu0 %v8732_v57  ;;  %3687 = vmatprep.mubr.f32.mxu1 %v8732_v57  ;;  %v6784_v31 = vpop.eup %6783  ;;  %v9073_v4 = vld [vmem:[#allocation38_spill] sm:$0xff] }
 0x723   :  { %6787 = vrcp.f32 %v3396_v61  ;;  %v3397_v53 = vadd.f32 1.0, %v6784_v31  ;;  %v9075_v61 = vld [vmem:[#allocation40_spill] sm:$0xff]  ;;  %v9077_v31 = vld [vmem:[#allocation42_spill] sm:$0xff] }
 0x724   :  { %6106 = vmatpush1.bf16.msra.mxu0 %v8798_v22  ;;  %6138 = vmatpush1.bf16.msra.mxu1 %v8799_v18 }
 0x725   :  { %6108 = vmatprep.subr.bf16.mxu0 %v8800_v28  ;;  %6140 = vmatprep.subr.bf16.mxu1 %v8801_v32  ;;  %6789 = vrcp.f32 %v3397_v53  ;;  %v9081_v53 = vld [vmem:[#allocation44_spill] sm:$0xff] }
 0x728   :  { %6110 = vmatpush1.bf16.msra.mxu0 %v8802_v54  ;;  %6142 = vmatpush1.bf16.msra.mxu1 %v8803_v42 }
 0x729   :  { %6112 = vmatprep.subr.bf16.mxu0 %v8861_v39  ;;  %6144 = vmatprep.subr.bf16.mxu1 %v8862_v46 }
 0x72c   :  { %v6786_v37 = vpop.eup %6785  ;;  %6114 = vmatpush1.bf16.msra.mxu0 %v8806_v23  ;;  %6146 = vmatpush1.bf16.msra.mxu1 %v8807_v3 }
 0x72d   :  { %v3406_v41 = vmul.f32 %v6786_v37, %v6782_v59  ;;  %v6788_v58 = vpop.eup %6787  ;;  %6116 = vmatprep.subr.bf16.mxu0 %v8863_v19  ;;  %6148 = vmatprep.subr.bf16.mxu1 %v8864_v10  ;;  %v9076_v59 = vld [vmem:[#allocation31_spill] sm:$0xff]  ;;  %v9078_v37 = vld [vmem:[#allocation33_spill] sm:$0xff] }
 0x72e   :  { %v3405_v26 = vmul.f32 %v6788_v58, %v8028_v36  ;;  %v9080_v58 = vld [vmem:[#allocation35_spill] sm:$0xff] }
 0x72f   :  { %v6790_v36 = vpop.eup %6789 }
 0x730   :  { %v8154_v48 = vadd.f32 %v3406_v41, %v3405_v26  ;;  %6118 = vmatpush1.bf16.msra.mxu0 %v8865_v6  ;;  %6150 = vmatpush1.bf16.msra.mxu1 %v8866_v12  ;;  %v9079_v41 = vld [vmem:[#allocation43_spill] sm:$0xff]  ;;  %v9082_v26 = vld [vmem:[#allocation37_spill] sm:$0xff] }
 0x731   :  { %6120 = vmatprep.subr.bf16.mxu0 %v8867_v33  ;;  %6152 = vmatprep.subr.bf16.mxu1 %v8868_v20 }
 0x732   :  { %6791 = vtanh.f32 %v8154_v48 }
 0x734   :  { %6122 = vmatpush1.bf16.msra.mxu0 %v8869_v27  ;;  %6154 = vmatpush1.bf16.msra.mxu1 %v8870_v16 }
 0x735   :  { %6124 = vmatprep.subr.bf16.mxu0 %v8871_v62  ;;  %6156 = vmatprep.subr.bf16.mxu1 %v8817_v5 }
 0x738   :  { %6126 = vmatpush1.bf16.msra.mxu0 %v8818_v34  ;;  %6158 = vmatpush1.bf16.msra.mxu1 %v8819_v40 }
 0x739   :  { %6128 = vmatprep.subr.bf16.mxu0 %v8820_v43  ;;  %6160 = vmatprep.subr.bf16.mxu1 %v8821_v0 }
 0x73c   :  { %v6792_v55 = vpop.eup %6791  ;;  %6130 = vmatpush1.bf16.msra.mxu0 %v8822_v15  ;;  %6162 = vmatpush1.bf16.msra.mxu1 %v8823_v30 }
 0x73d   :  { %v3409_v21 = vmul.f32 %v6792_v55, %v6790_v36  ;;  %6164 = vmatprep.subr.bf16.mxu0 %v8824_v7  ;;  %6196 = vmatprep.subr.bf16.mxu1 %v8825_v63  ;;  %v9083_v36 = vld [vmem:[#allocation45_spill] sm:$0xff]  ;;  %v9084_v55 = vld [vmem:[#allocation39_spill] sm:$0xff] }
 0x73f   :  { %3617 = vmatmul.mubr.f32.vlgmr.msra.gmra.mrb[22].mxu0 %v3409_v21  ;;  %3688 = vmatmul.mubr.f32.vlgmr.msra.gmra.mrb[30].mxu1 %v3409_v21 }
 0x740   :  { %6166 = vmatpush1.bf16.msra.mxu0 %v7195_v13  ;;  %6198 = vmatpush1.bf16.msra.mxu1 %v7219_v47 }
 0x741   :  { %6168 = vmatprep.subr.bf16.mxu0 %v7198_v17  ;;  %6200 = vmatprep.subr.bf16.mxu1 %v7224_v49 }
 0x742   :  { %3836 = vmatprep.mubr.f32.mxu0 %v8732_v57  ;;  %3907 = vmatprep.mubr.f32.mxu1 %v8732_v57 }
 0x744   :  { %6170 = vmatpush1.bf16.msra.mxu0 %v9062_v11  ;;  %6202 = vmatpush1.bf16.msra.mxu1 %v9063_v38 }
 0x745   :  { %6172 = vmatprep.subr.bf16.mxu0 %v9064_v14  ;;  %6204 = vmatprep.subr.bf16.mxu1 %v9065_v60 }
 0x748   :  { %6174 = vmatpush1.bf16.msra.mxu0 %v9066_v44  ;;  %6206 = vmatpush1.bf16.msra.mxu1 %v9067_v25 }
 0x749   :  { %6176 = vmatprep.subr.bf16.mxu0 %v9068_v9  ;;  %6208 = vmatprep.subr.bf16.mxu1 %v9069_v45 }
 0x74c   :  { %6178 = vmatpush1.bf16.msra.mxu0 %v9070_v2  ;;  %6210 = vmatpush1.bf16.msra.mxu1 %v9071_v35  ;;  %v9125_v2 = vld [vmem:[#allocation115_spill] sm:$0xff] }
 0x74d   :  { %6180 = vmatprep.subr.bf16.mxu0 %v9072_v56  ;;  %6212 = vmatprep.subr.bf16.mxu1 %v9073_v4  ;;  %v9123_v56 = vld [vmem:[#allocation117_spill] sm:$0xff] }
 0x750   :  { %6182 = vmatpush1.bf16.msra.mxu0 %v9074_v29  ;;  %6214 = vmatpush1.bf16.msra.mxu1 %v9075_v61  ;;  %v9085_v29 = vld [vmem:[#allocation46_spill] sm:$0xff]  ;;  %v9086_v61 = vld [vmem:[#allocation41_spill] sm:$0xff] }
 0x751   :  { %6184 = vmatprep.subr.bf16.mxu0 %v9076_v59  ;;  %6216 = vmatprep.subr.bf16.mxu1 %v9077_v31  ;;  %v9087_v59 = vld [vmem:[#allocation47_spill] sm:$0xff]  ;;  %v9088_v31 = vld [vmem:[#allocation48_spill] sm:$0xff] }
 0x754   :  { %6186 = vmatpush1.bf16.msra.mxu0 %v9078_v37  ;;  %6218 = vmatpush1.bf16.msra.mxu1 %v9079_v41  ;;  %v9089_v37 = vld [vmem:[#allocation49_spill] sm:$0xff]  ;;  %v9122_v41 = vld [vmem:[#allocation116_spill] sm:$0xff] }
 0x755   :  { %6188 = vmatprep.subr.bf16.mxu0 %v9080_v58  ;;  %6220 = vmatprep.subr.bf16.mxu1 %v9081_v53  ;;  %v9090_v58 = vld [vmem:[#allocation50_spill] sm:$0xff]  ;;  %v9091_v53 = vld [vmem:[#allocation51_spill] sm:$0xff] }
 0x758   :  { %6190 = vmatpush1.bf16.msra.mxu0 %v9082_v26  ;;  %6222 = vmatpush1.bf16.msra.mxu1 %v9083_v36  ;;  %v9092_v26 = vld [vmem:[#allocation52_spill] sm:$0xff]  ;;  %v9093_v36 = vld [vmem:[#allocation53_spill] sm:$0xff] }
 0x759   :  { %6192 = vmatprep.subr.bf16.mxu0 %v9084_v55  ;;  %6224 = vmatprep.subr.bf16.mxu1 %v9085_v29  ;;  %v9103_v29 = vld [vmem:[#allocation63_spill] sm:$0xff]  ;;  %v9104_v55 = vld [vmem:[#allocation64_spill] sm:$0xff] }
 0x75c   :  { %6194 = vmatpush1.bf16.msra.mxu0 %v9086_v61  ;;  %6226 = vmatpush1.bf16.msra.mxu1 %v9087_v59  ;;  %v9094_v61 = vld [vmem:[#allocation54_spill] sm:$0xff]  ;;  %v9095_v59 = vld [vmem:[#allocation55_spill] sm:$0xff] }
 0x75d   :  { %6228 = vmatprep.subr.bf16.mxu0 %v9088_v31  ;;  %6260 = vmatprep.subr.bf16.mxu1 %v9089_v37  ;;  %v9096_v31 = vld [vmem:[#allocation56_spill] sm:$0xff]  ;;  %v9097_v37 = vld [vmem:[#allocation57_spill] sm:$0xff] }
 0x75f   :  { %3837 = vmatmul.mubr.f32.vlgmr.msra.gmra.mrb[24].mxu0 %v3409_v21  ;;  %3908 = vmatmul.mubr.f32.vlgmr.msra.gmra.mrb[32].mxu1 %v3409_v21  ;;  %v9098_v21 = vld [vmem:[#allocation58_spill] sm:$0xff] }
 0x760   :  { %6230 = vmatpush1.bf16.msra.mxu0 %v9090_v58  ;;  %6262 = vmatpush1.bf16.msra.mxu1 %v9091_v53  ;;  %v9099_v58 = vld [vmem:[#allocation59_spill] sm:$0xff]  ;;  %v9100_v53 = vld [vmem:[#allocation60_spill] sm:$0xff] }
 0x761   :  { %6232 = vmatprep.subr.bf16.mxu0 %v9092_v26  ;;  %6264 = vmatprep.subr.bf16.mxu1 %v9093_v36  ;;  %v9101_v26 = vld [vmem:[#allocation61_spill] sm:$0xff]  ;;  %v9102_v36 = vld [vmem:[#allocation62_spill] sm:$0xff] }
 0x762   :  { %4006 = vmatprep.mubr.f32.mxu0 %v8732_v57  ;;  %4077 = vmatprep.mubr.f32.mxu1 %v8732_v57 }
 0x764   :  { %6234 = vmatpush1.bf16.msra.mxu0 %v9094_v61  ;;  %6266 = vmatpush1.bf16.msra.mxu1 %v9095_v59  ;;  %v9105_v61 = vld [vmem:[#allocation65_spill] sm:$0xff]  ;;  %v9106_v59 = vld [vmem:[#allocation66_spill] sm:$0xff] }
 0x765   :  { %6236 = vmatprep.subr.bf16.mxu0 %v9096_v31  ;;  %6268 = vmatprep.subr.bf16.mxu1 %v9097_v37  ;;  %v9107_v31 = vld [vmem:[#allocation67_spill] sm:$0xff]  ;;  %v9108_v37 = vld [vmem:[#allocation68_spill] sm:$0xff] }
 0x768   :  { %6238 = vmatpush1.bf16.msra.mxu0 %v9098_v21  ;;  %6270 = vmatpush1.bf16.msra.mxu1 %v9099_v58  ;;  %v9109_v21 = vld [vmem:[#allocation69_spill] sm:$0xff]  ;;  %v9110_v58 = vld [vmem:[#allocation70_spill] sm:$0xff] }
 0x769   :  { %6240 = vmatprep.subr.bf16.mxu0 %v9100_v53  ;;  %6272 = vmatprep.subr.bf16.mxu1 %v9101_v26  ;;  %v9111_v53 = vld [vmem:[#allocation71_spill] sm:$0xff]  ;;  %v9112_v26 = vld [vmem:[#allocation72_spill] sm:$0xff] }
 0x76c   :  { %6242 = vmatpush1.bf16.msra.mxu0 %v9102_v36  ;;  %6274 = vmatpush1.bf16.msra.mxu1 %v9103_v29  ;;  %v9113_v36 = vld [vmem:[#allocation73_spill] sm:$0xff]  ;;  %v9114_v29 = vld [vmem:[#allocation74_spill] sm:$0xff] }
 0x76d   :  { %6244 = vmatprep.subr.bf16.mxu0 %v9104_v55  ;;  %6276 = vmatprep.subr.bf16.mxu1 %v9105_v61  ;;  %v9115_v55 = vld [vmem:[#allocation75_spill] sm:$0xff]  ;;  %v9116_v61 = vld [vmem:[#allocation76_spill] sm:$0xff] }
 0x770   :  { %6246 = vmatpush1.bf16.msra.mxu0 %v9106_v59  ;;  %6278 = vmatpush1.bf16.msra.mxu1 %v9107_v31  ;;  %v9117_v59 = vld [vmem:[#allocation77_spill] sm:$0xff]  ;;  %v9118_v31 = vld [vmem:[#allocation78_spill] sm:$0xff] }
 0x771   :  { %6248 = vmatprep.subr.bf16.mxu0 %v9108_v37  ;;  %6280 = vmatprep.subr.bf16.mxu1 %v9109_v21  ;;  %v9119_v37 = vld [vmem:[#allocation79_spill] sm:$0xff]  ;;  %v9120_v21 = vld [vmem:[#allocation80_spill] sm:$0xff] }
 0x774   :  { %6250 = vmatpush1.bf16.msra.mxu0 %v9110_v58  ;;  %6282 = vmatpush1.bf16.msra.mxu1 %v9111_v53  ;;  %v9121_v58 = vld [vmem:[#allocation81_spill] sm:$0xff] }
 0x775   :  { %6252 = vmatprep.subr.bf16.mxu0 %v9112_v26  ;;  %6284 = vmatprep.subr.bf16.mxu1 %v9113_v36 }
 0x778   :  { %6254 = vmatpush1.bf16.msra.mxu0 %v9114_v29  ;;  %6286 = vmatpush1.bf16.msra.mxu1 %v9115_v55 }
 0x779   :  { %6256 = vmatprep.subr.bf16.mxu0 %v9116_v61  ;;  %6288 = vmatprep.subr.bf16.mxu1 %v9117_v59  ;;  %v9124_v59 = vld [vmem:[#allocation118_spill] sm:$0xff] }
 0x77c   :  { %6258 = vmatpush1.bf16.msra.mxu0 %v9118_v31  ;;  %6290 = vmatpush1.bf16.msra.mxu1 %v9119_v37 }
 0x77d   :  { %6292 = vmatprep.subr.bf16.mxu0 %v9120_v21  ;;  %6324 = vmatprep.subr.bf16.mxu1 %v9121_v58 }
 0x812   :  { %v3618_v53 = vpop.f32.mrb[22].mxu0  ;;  %v3689_v26 = vpop.f32.mrb[30].mxu1 }
 0x813   :  { %v3694_v36 = vadd.f32 %v3618_v53, %v9122_v41  ;;  %v3620_v4 = vpop.f32.mrb[23].mxu0  ;;  %v3691_v29 = vpop.f32.mrb[31].mxu1  ;;  %v3696_v31 = vadd.f32 %v3689_v26, %v9124_v59  ;;  %v3725_v41 = vld [vmem:[#allocation2 + $0x26] ss:$8 sm:$0xf] }
 0x814   :  { %v3695_v55 = vadd.f32 %v3620_v4, %v9123_v56  ;;  %v3697_v37 = vadd.f32 %v3691_v29, %v9125_v2  ;;  %v9127_v56 = vld [vmem:[#allocation114_spill] sm:$0xff]  ;;  %v9128_v59 = vld [vmem:[#allocation113_spill] sm:$0xff] }
 0x815   :  { %v4935_v35 = vmul.f32 -1.442695, %v3694_v36  ;;  %v4937_v45 = vmul.f32 -1.442695, %v3696_v31  ;;  %v3759_v26 = vrot.slane %v3725_v41, %v9127_v56  ;;  %v3755_v29 = vrot.slane %v3725_v41, %v9128_v59 }
 0x816   :  { %v4936_v61 = vmul.f32 -1.442695, %v3695_v55  ;;  %v3723_v36 = vld [vmem:[#allocation2 + $0x6] ss:$8 sm:$0xf] }
 0x817   :  { %6793 = vpow2.f32 %v4935_v35  ;;  %v9126_v35 = vld [vmem:[#allocation112_spill] sm:$0xff]  ;;  %v3742_v44 = vrot.slane %v3723_v36, %v8792_v51 }
 0x818   :  { %6795 = vpow2.f32 %v4936_v61  ;;  %v3751_v61 = vrot.slane %v3725_v41, %v9126_v35 }
 0x819   :  { %6797 = vtanh.f32 %v3697_v37 }
 0x81a   :  { %6799 = vpow2.f32 %v4937_v45  ;;  %v3738_v45 = vrot.slane %v3723_v36, %v9127_v56 }
 0x81c   :  { %v3770_v38 = vsel %vm575_vm1, %v3738_v45, %v3759_v26 }
 0x821   :  { %v6794_v21 = vpop.eup %6793 }
 0x822   :  { %v3707_v9 = vadd.f32 1.0, %v6794_v21  ;;  %v6796_v58 = vpop.eup %6795  ;;  %v3763_v21 = vrot.slane %v3725_v41, %v8792_v51 }
 0x823   :  { %v3708_v53 = vadd.f32 1.0, %v6796_v58  ;;  %v6798_v25 = vpop.eup %6797  ;;  %v3734_v58 = vrot.slane %v3723_v36, %v9128_v59 }
 0x824   :  { %6801 = vrcp.f32 %v3707_v9  ;;  %v6800_v4 = vpop.eup %6799  ;;  %v3730_v9 = vrot.slane %v3723_v36, %v9126_v35  ;;  %v3771_v56 = vsel %vm575_vm1, %v3742_v44, %v3763_v21 }
 0x825   :  { %6803 = vrcp.f32 %v3708_v53  ;;  %v3709_v2 = vadd.f32 1.0, %v6800_v4  ;;  %v3769_v41 = vsel %vm575_vm1, %v3734_v58, %v3755_v29 }
 0x826   :  { %v3768_v60 = vsel %vm575_vm1, %v3730_v9, %v3751_v61 }
 0x827   :  { %6805 = vrcp.f32 %v3709_v2 }
 0x82e   :  { %v6802_v55 = vpop.eup %6801 }
 0x82f   :  { %v3718_v31 = vmul.f32 %v6802_v55, %v6798_v25  ;;  %v6804_v37 = vpop.eup %6803 }
 0x830   :  { %v3717_v53 = vmul.f32 %v6804_v37, %v8131_v24 }
 0x831   :  { %v6806_v26 = vpop.eup %6805 }
 0x832   :  { %v3838_v14 = vpop.f32.mrb[24].mxu0  ;;  %v3909_v25 = vpop.f32.mrb[32].mxu1  ;;  %v8257_v55 = vadd.f32 %v3718_v31, %v3717_v53 }
 0x833   :  { %v3914_v4 = vadd.f32 %v3838_v14, %v3768_v60  ;;  %v3916_v35 = vadd.f32 %v3909_v25, %v3770_v38  ;;  %v3840_v11 = vpop.f32.mrb[25].mxu0  ;;  %v3911_v59 = vpop.f32.mrb[33].mxu1 }
 0x834   :  { %v3915_v24 = vadd.f32 %v3840_v11, %v3769_v41  ;;  %v3917_v37 = vadd.f32 %v3911_v59, %v3771_v56  ;;  %6807 = vtanh.f32 %v8257_v55  ;;  %v9129_v41 = vld [vmem:[#allocation21_spill] sm:$0xff] }
 0x835   :  { %v4938_v36 = vmul.f32 -1.442695, %v3914_v4  ;;  %v4940_v29 = vmul.f32 -1.442695, %v3916_v35  ;;  %v9132_v4 = vld [vmem:[#allocation30_spill] sm:$0xff] }
 0x836   :  { %v4939_v61 = vmul.f32 -1.442695, %v3915_v24  ;;  %v9133_v24 = vld [vmem:[#allocation24_spill] sm:$0xff] }
 0x837   :  { %6809 = vpow2.f32 %v4938_v36  ;;  %v9139_v36 = vld [vmem:[#allocation27_spill] sm:$0xff] }
 0x838   :  { %6811 = vpow2.f32 %v4939_v61  ;;  %v9140_v61 = vld [vmem:[#allocation38_spill] sm:$0xff] }
 0x839   :  { %6813 = vtanh.f32 %v3917_v37  ;;  %v9138_v37 = vld [vmem:[#allocation36_spill] sm:$0xff] }
 0x83a   :  { %6815 = vpow2.f32 %v4940_v29  ;;  %v9143_v29 = vld [vmem:[#allocation31_spill] sm:$0xff] }
 0x83e   :  { %v6808_v9 = vpop.eup %6807 }
 0x83f   :  { %v3721_v31 = vmul.f32 %v6808_v9, %v6806_v26  ;;  %v9141_v26 = vld [vmem:[#allocation29_spill] sm:$0xff]  ;;  %v9142_v9 = vld [vmem:[#allocation40_spill] sm:$0xff] }
 0x841   :  { %v6810_v45 = vpop.eup %6809  ;;  %4007 = vmatmul.mubr.f32.vlgmr.msra.gmra.mrb[26].mxu0 %v3721_v31  ;;  %4078 = vmatmul.mubr.f32.vlgmr.msra.gmra.mrb[34].mxu1 %v3721_v31  ;;  %v9144_v31 = vld [vmem:[#allocation42_spill] sm:$0xff] }
 0x842   :  { %v3927_v14 = vadd.f32 1.0, %v6810_v45  ;;  %v6812_v38 = vpop.eup %6811  ;;  %6294 = vmatpush1.bf16.msra.mxu0 %v8794_v52  ;;  %6326 = vmatpush1.bf16.msra.mxu1 %v8795_v8  ;;  %v9145_v45 = vld [vmem:[#allocation33_spill] sm:$0xff] }
 0x843   :  { %v3928_v11 = vadd.f32 1.0, %v6812_v38  ;;  %6296 = vmatprep.subr.bf16.mxu0 %v8796_v1  ;;  %6328 = vmatprep.subr.bf16.mxu1 %v8797_v50  ;;  %v6814_v60 = vpop.eup %6813  ;;  %v9147_v38 = vld [vmem:[#allocation35_spill] sm:$0xff] }
 0x844   :  { %6817 = vrcp.f32 %v3927_v14  ;;  %4148 = vmatprep.mubr.f32.mxu0 %v8732_v57  ;;  %4219 = vmatprep.mubr.f32.mxu1 %v8732_v57  ;;  %v6816_v44 = vpop.eup %6815  ;;  %v9146_v14 = vld [vmem:[#allocation43_spill] sm:$0xff] }
 0x845   :  { %6819 = vrcp.f32 %v3928_v11  ;;  %v3929_v35 = vadd.f32 1.0, %v6816_v44  ;;  %v9148_v11 = vld [vmem:[#allocation44_spill] sm:$0xff]  ;;  %v9150_v44 = vld [vmem:[#allocation45_spill] sm:$0xff] }
 0x846   :  { %6298 = vmatpush1.bf16.msra.mxu0 %v8798_v22  ;;  %6330 = vmatpush1.bf16.msra.mxu1 %v8799_v18 }
 0x847   :  { %6300 = vmatprep.subr.bf16.mxu0 %v8800_v28  ;;  %6332 = vmatprep.subr.bf16.mxu1 %v8801_v32  ;;  %6821 = vrcp.f32 %v3929_v35  ;;  %v9154_v35 = vld [vmem:[#allocation47_spill] sm:$0xff] }
 0x84a   :  { %6302 = vmatpush1.bf16.msra.mxu0 %v8802_v54  ;;  %6334 = vmatpush1.bf16.msra.mxu1 %v8803_v42 }
 0x84b   :  { %6304 = vmatprep.subr.bf16.mxu0 %v8861_v39  ;;  %6336 = vmatprep.subr.bf16.mxu1 %v8862_v46 }
 0x84e   :  { %v6818_v2 = vpop.eup %6817  ;;  %6306 = vmatpush1.bf16.msra.mxu0 %v8806_v23  ;;  %6338 = vmatpush1.bf16.msra.mxu1 %v8807_v3 }
 0x84f   :  { %v3938_v56 = vmul.f32 %v6818_v2, %v6814_v60  ;;  %v6820_v59 = vpop.eup %6819  ;;  %6308 = vmatprep.subr.bf16.mxu0 %v8863_v19  ;;  %6340 = vmatprep.subr.bf16.mxu1 %v8864_v10  ;;  %v9149_v60 = vld [vmem:[#allocation37_spill] sm:$0xff]  ;;  %v9151_v2 = vld [vmem:[#allocation39_spill] sm:$0xff] }
 0x850   :  { %v3937_v21 = vmul.f32 %v6820_v59, %v8154_v48  ;;  %v9153_v59 = vld [vmem:[#allocation41_spill] sm:$0xff] }
 0x851   :  { %v6822_v48 = vpop.eup %6821 }
 0x852   :  { %v8280_v58 = vadd.f32 %v3938_v56, %v3937_v21  ;;  %6310 = vmatpush1.bf16.msra.mxu0 %v8865_v6  ;;  %6342 = vmatpush1.bf16.msra.mxu1 %v8866_v12  ;;  %v9152_v56 = vld [vmem:[#allocation46_spill] sm:$0xff]  ;;  %v9155_v21 = vld [vmem:[#allocation48_spill] sm:$0xff] }
 0x853   :  { %6312 = vmatprep.subr.bf16.mxu0 %v8867_v33  ;;  %6344 = vmatprep.subr.bf16.mxu1 %v8868_v20 }
 0x854   :  { %6823 = vtanh.f32 %v8280_v58 }
 0x856   :  { %6314 = vmatpush1.bf16.msra.mxu0 %v8869_v27  ;;  %6346 = vmatpush1.bf16.msra.mxu1 %v8870_v16 }
 0x857   :  { %6316 = vmatprep.subr.bf16.mxu0 %v8871_v62  ;;  %6348 = vmatprep.subr.bf16.mxu1 %v8817_v5 }
 0x85a   :  { %6318 = vmatpush1.bf16.msra.mxu0 %v8818_v34  ;;  %6350 = vmatpush1.bf16.msra.mxu1 %v8819_v40 }
 0x85b   :  { %6320 = vmatprep.subr.bf16.mxu0 %v8820_v43  ;;  %6352 = vmatprep.subr.bf16.mxu1 %v8821_v0 }
 0x85e   :  { %v6824_v53 = vpop.eup %6823  ;;  %6322 = vmatpush1.bf16.msra.mxu0 %v8822_v15  ;;  %6354 = vmatpush1.bf16.msra.mxu1 %v8823_v30 }
 0x85f   :  { %6356 = vmatprep.subr.bf16.mxu0 %v8824_v7  ;;  %6388 = vmatprep.subr.bf16.mxu1 %v8825_v63  ;;  %v3941_v25 = vmul.f32 %v6824_v53, %v6822_v48  ;;  %v9130_v7 = vld [vmem:[#allocation28_spill] sm:$0xff]  ;;  %v9131_v63 = vld [vmem:[#allocation22_spill] sm:$0xff]  ;;  %v9156_v48 = vld [vmem:[#allocation49_spill] sm:$0xff] }
 0x860   :  { %v9157_v53 = vld [vmem:[#allocation50_spill] sm:$0xff] }
 0x861   :  { %4149 = vmatmul.mubr.f32.vlgmr.msra.gmra.mrb[26].mxu0 %v3941_v25  ;;  %4220 = vmatmul.mubr.f32.vlgmr.msra.gmra.mrb[34].mxu1 %v3941_v25 }
 0x862   :  { %6358 = vmatpush1.bf16.msra.mxu0 %v7195_v13  ;;  %6390 = vmatpush1.bf16.msra.mxu1 %v7219_v47  ;;  %v9134_v13 = vld [vmem:[#allocation32_spill] sm:$0xff]  ;;  %v9135_v47 = vld [vmem:[#allocation25_spill] sm:$0xff] }
 0x863   :  { %6360 = vmatprep.subr.bf16.mxu0 %v7198_v17  ;;  %6392 = vmatprep.subr.bf16.mxu1 %v7224_v49  ;;  %v9136_v17 = vld [vmem:[#allocation34_spill] sm:$0xff] }
 0x864   :  { %4368 = vmatprep.mubr.f32.mxu0 %v8732_v57  ;;  %4439 = vmatprep.mubr.f32.mxu1 %v8732_v57  ;;  %v9137_v49 = vld [vmem:[#allocation26_spill] sm:$0xff] }
 0x866   :  { %6362 = vmatpush1.bf16.msra.mxu0 %v9129_v41  ;;  %6394 = vmatpush1.bf16.msra.mxu1 %v9130_v7  ;;  %v9158_v41 = vld [vmem:[#allocation51_spill] sm:$0xff]  ;;  %v9159_v7 = vld [vmem:[#allocation52_spill] sm:$0xff] }
 0x867   :  { %6364 = vmatprep.subr.bf16.mxu0 %v9131_v63  ;;  %6396 = vmatprep.subr.bf16.mxu1 %v9132_v4  ;;  %v9160_v63 = vld [vmem:[#allocation53_spill] sm:$0xff]  ;;  %v9161_v4 = vld [vmem:[#allocation54_spill] sm:$0xff] }
 0x86a   :  { %6366 = vmatpush1.bf16.msra.mxu0 %v9133_v24  ;;  %6398 = vmatpush1.bf16.msra.mxu1 %v9134_v13  ;;  %v9162_v24 = vld [vmem:[#allocation55_spill] sm:$0xff]  ;;  %v9163_v13 = vld [vmem:[#allocation56_spill] sm:$0xff] }
 0x86b   :  { %6368 = vmatprep.subr.bf16.mxu0 %v9135_v47  ;;  %6400 = vmatprep.subr.bf16.mxu1 %v9136_v17  ;;  %v9164_v47 = vld [vmem:[#allocation57_spill] sm:$0xff]  ;;  %v9166_v17 = vld [vmem:[#allocation59_spill] sm:$0xff] }
 0x86e   :  { %6370 = vmatpush1.bf16.msra.mxu0 %v9137_v49  ;;  %6402 = vmatpush1.bf16.msra.mxu1 %v9138_v37  ;;  %v9167_v49 = vld [vmem:[#allocation60_spill] sm:$0xff]  ;;  %v9168_v37 = vld [vmem:[#allocation61_spill] sm:$0xff] }
 0x86f   :  { %6372 = vmatprep.subr.bf16.mxu0 %v9139_v36  ;;  %6404 = vmatprep.subr.bf16.mxu1 %v9140_v61  ;;  %v9169_v36 = vld [vmem:[#allocation62_spill] sm:$0xff]  ;;  %v9170_v61 = vld [vmem:[#allocation63_spill] sm:$0xff] }
 0x872   :  { %6374 = vmatpush1.bf16.msra.mxu0 %v9141_v26  ;;  %6406 = vmatpush1.bf16.msra.mxu1 %v9142_v9  ;;  %v9171_v26 = vld [vmem:[#allocation64_spill] sm:$0xff]  ;;  %v9172_v9 = vld [vmem:[#allocation65_spill] sm:$0xff] }
 0x873   :  { %6376 = vmatprep.subr.bf16.mxu0 %v9143_v29  ;;  %6408 = vmatprep.subr.bf16.mxu1 %v9144_v31  ;;  %v9173_v29 = vld [vmem:[#allocation66_spill] sm:$0xff]  ;;  %v9174_v31 = vld [vmem:[#allocation67_spill] sm:$0xff] }
 0x876   :  { %6378 = vmatpush1.bf16.msra.mxu0 %v9145_v45  ;;  %6410 = vmatpush1.bf16.msra.mxu1 %v9146_v14  ;;  %v9175_v45 = vld [vmem:[#allocation68_spill] sm:$0xff]  ;;  %v9176_v14 = vld [vmem:[#allocation69_spill] sm:$0xff] }
 0x877   :  { %6380 = vmatprep.subr.bf16.mxu0 %v9147_v38  ;;  %6412 = vmatprep.subr.bf16.mxu1 %v9148_v11  ;;  %v9177_v38 = vld [vmem:[#allocation70_spill] sm:$0xff]  ;;  %v9178_v11 = vld [vmem:[#allocation71_spill] sm:$0xff] }
 0x87a   :  { %6382 = vmatpush1.bf16.msra.mxu0 %v9149_v60  ;;  %6414 = vmatpush1.bf16.msra.mxu1 %v9150_v44  ;;  %v9179_v60 = vld [vmem:[#allocation72_spill] sm:$0xff]  ;;  %v9180_v44 = vld [vmem:[#allocation73_spill] sm:$0xff] }
 0x87b   :  { %6384 = vmatprep.subr.bf16.mxu0 %v9151_v2  ;;  %6416 = vmatprep.subr.bf16.mxu1 %v9152_v56  ;;  %v9181_v2 = vld [vmem:[#allocation74_spill] sm:$0xff]  ;;  %v9182_v56 = vld [vmem:[#allocation75_spill] sm:$0xff] }
 0x87e   :  { %6386 = vmatpush1.bf16.msra.mxu0 %v9153_v59  ;;  %6418 = vmatpush1.bf16.msra.mxu1 %v9154_v35  ;;  %v9183_v59 = vld [vmem:[#allocation76_spill] sm:$0xff]  ;;  %v9184_v35 = vld [vmem:[#allocation77_spill] sm:$0xff] }
 0x87f   :  { %6420 = vmatprep.subr.bf16.mxu0 %v9155_v21  ;;  %6452 = vmatprep.subr.bf16.mxu1 %v9156_v48  ;;  %v9185_v21 = vld [vmem:[#allocation78_spill] sm:$0xff]  ;;  %v9186_v48 = vld [vmem:[#allocation79_spill] sm:$0xff] }
 0x881   :  { %4369 = vmatmul.mubr.f32.vlgmr.msra.gmra.mrb[28].mxu0 %v3941_v25  ;;  %4440 = vmatmul.mubr.f32.vlgmr.msra.gmra.mrb[36].mxu1 %v3941_v25  ;;  %v9165_v25 = vld [vmem:[#allocation58_spill] sm:$0xff] }
 0x882   :  { %6422 = vmatpush1.bf16.msra.mxu0 %v9157_v53  ;;  %6454 = vmatpush1.bf16.msra.mxu1 %v9158_v41  ;;  %v9187_v53 = vld [vmem:[#allocation80_spill] sm:$0xff]  ;;  %v9188_v41 = vld [vmem:[#allocation81_spill] sm:$0xff] }
 0x883   :  { %6424 = vmatprep.subr.bf16.mxu0 %v9159_v7  ;;  %6456 = vmatprep.subr.bf16.mxu1 %v9160_v63 }
 0x884   :  { %4538 = vmatprep.mubr.f32.mxu0 %v8732_v57  ;;  %4609 = vmatprep.mubr.f32.mxu1 %v8732_v57 }
 0x886   :  { %6426 = vmatpush1.bf16.msra.mxu0 %v9161_v4  ;;  %6458 = vmatpush1.bf16.msra.mxu1 %v9162_v24  ;;  %v9189_v4 = vld [vmem:[#allocation116_spill] sm:$0xff] }
 0x887   :  { %6428 = vmatprep.subr.bf16.mxu0 %v9163_v13  ;;  %6460 = vmatprep.subr.bf16.mxu1 %v9164_v47 }
 0x88a   :  { %6430 = vmatpush1.bf16.msra.mxu0 %v9165_v25  ;;  %6462 = vmatpush1.bf16.msra.mxu1 %v9166_v17  ;;  %v9190_v25 = vld [vmem:[#allocation117_spill] sm:$0xff] }
 0x88b   :  { %6432 = vmatprep.subr.bf16.mxu0 %v9167_v49  ;;  %6464 = vmatprep.subr.bf16.mxu1 %v9168_v37 }
 0x88e   :  { %6434 = vmatpush1.bf16.msra.mxu0 %v9169_v36  ;;  %6466 = vmatpush1.bf16.msra.mxu1 %v9170_v61  ;;  %v9191_v36 = vld [vmem:[#allocation118_spill] sm:$0xff] }
 0x88f   :  { %6436 = vmatprep.subr.bf16.mxu0 %v9171_v26  ;;  %6468 = vmatprep.subr.bf16.mxu1 %v9172_v9  ;;  %v9192_v26 = vld [vmem:[#allocation115_spill] sm:$0xff] }
 0x892   :  { %6438 = vmatpush1.bf16.msra.mxu0 %v9173_v29  ;;  %6470 = vmatpush1.bf16.msra.mxu1 %v9174_v31 }
 0x893   :  { %6440 = vmatprep.subr.bf16.mxu0 %v9175_v45  ;;  %6472 = vmatprep.subr.bf16.mxu1 %v9176_v14 }
 0x896   :  { %6442 = vmatpush1.bf16.msra.mxu0 %v9177_v38  ;;  %6474 = vmatpush1.bf16.msra.mxu1 %v9178_v11  ;;  %v4257_v11 = vld [vmem:[#allocation2 + $0x27] ss:$8 sm:$0xf] }
 0x897   :  { %6444 = vmatprep.subr.bf16.mxu0 %v9179_v60  ;;  %6476 = vmatprep.subr.bf16.mxu1 %v9180_v44 }
 0x89a   :  { %6446 = vmatpush1.bf16.msra.mxu0 %v9181_v2  ;;  %6478 = vmatpush1.bf16.msra.mxu1 %v9182_v56  ;;  %v4255_v2 = vld [vmem:[#allocation2 + $0x7] ss:$8 sm:$0xf] }
 0x89b   :  { %6448 = vmatprep.subr.bf16.mxu0 %v9183_v59  ;;  %6480 = vmatprep.subr.bf16.mxu1 %v9184_v35  ;;  %v9193_v59 = vld [vmem:[#allocation112_spill] sm:$0xff] }
 0x89c   :  { %v4283_v35 = vrot.slane %v4257_v11, %v9193_v59 }
 0x89e   :  { %6450 = vmatpush1.bf16.msra.mxu0 %v9185_v21  ;;  %6482 = vmatpush1.bf16.msra.mxu1 %v9186_v48  ;;  %v9194_v21 = vld [vmem:[#allocation114_spill] sm:$0xff] }
 0x89f   :  { %6484 = vmatprep.subr.bf16.mxu0 %v9187_v53  ;;  %6516 = vmatprep.subr.bf16.mxu1 %v9188_v41  ;;  %v4291_v48 = vrot.slane %v4257_v11, %v9194_v21  ;;  %v9195_v53 = vld [vmem:[#allocation113_spill] sm:$0xff] }
 0x8a0   :  { %v4287_v41 = vrot.slane %v4257_v11, %v9195_v53 }
 0x934   :  { %v4150_v7 = vpop.f32.mrb[26].mxu0  ;;  %v4221_v63 = vpop.f32.mrb[34].mxu1 }
 0x935   :  { %v4226_v24 = vadd.f32 %v4150_v7, %v9189_v4  ;;  %v4152_v13 = vpop.f32.mrb[27].mxu0  ;;  %v4223_v47 = vpop.f32.mrb[35].mxu1  ;;  %v4228_v61 = vadd.f32 %v4221_v63, %v9191_v36  ;;  %v4295_v63 = vrot.slane %v4257_v11, %v8792_v51 }
 0x936   :  { %v4227_v17 = vadd.f32 %v4152_v13, %v9190_v25  ;;  %v4229_v9 = vadd.f32 %v4223_v47, %v9192_v26  ;;  %v4262_v47 = vrot.slane %v4255_v2, %v9193_v59 }
 0x937   :  { %v4941_v49 = vmul.f32 -1.442695, %v4226_v24  ;;  %v4943_v29 = vmul.f32 -1.442695, %v4228_v61  ;;  %v4274_v61 = vrot.slane %v4255_v2, %v8792_v51 }
 0x938   :  { %v4942_v37 = vmul.f32 -1.442695, %v4227_v17  ;;  %v4270_v17 = vrot.slane %v4255_v2, %v9194_v21 }
 0x939   :  { %6825 = vpow2.f32 %v4941_v49  ;;  %v4266_v49 = vrot.slane %v4255_v2, %v9195_v53 }
 0x93a   :  { %6827 = vpow2.f32 %v4942_v37 }
 0x93b   :  { %6829 = vtanh.f32 %v4229_v9  ;;  %v4300_v9 = vsel %vm575_vm1, %v4262_v47, %v4283_v35  ;;  %v4799_v47 = vld [vmem:[#allocation12 + $0x68] sm:$0xff] }
 0x93c   :  { %6831 = vpow2.f32 %v4943_v29 }
 0x943   :  { %v6826_v31 = vpop.eup %6825 }
 0x944   :  { %v4239_v45 = vadd.f32 1.0, %v6826_v31  ;;  %v6828_v14 = vpop.eup %6827  ;;  %v4302_v31 = vsel %vm575_vm1, %v4270_v17, %v4291_v48 }
 0x945   :  { %v4240_v38 = vadd.f32 1.0, %v6828_v14  ;;  %v6830_v60 = vpop.eup %6829  ;;  %v4301_v14 = vsel %vm575_vm1, %v4266_v49, %v4287_v41  ;;  %v4800_v49 = vld [vmem:[#allocation12 + $0x70] sm:$0xff] }
 0x946   :  { %6833 = vrcp.f32 %v4239_v45  ;;  %v6832_v44 = vpop.eup %6831 }
 0x947   :  { %6835 = vrcp.f32 %v4240_v38  ;;  %v4241_v13 = vadd.f32 1.0, %v6832_v44 }
 0x949   :  { %6837 = vrcp.f32 %v4241_v13 }
 0x950   :  { %v6834_v56 = vpop.eup %6833 }
 0x951   :  { %v4250_v7 = vmul.f32 %v6834_v56, %v6830_v60  ;;  %v6836_v24 = vpop.eup %6835  ;;  %v4303_v56 = vsel %vm575_vm1, %v4274_v61, %v4295_v63 }
 0x952   :  { %v4249_v37 = vmul.f32 %v6836_v24, %v8257_v55 }
 0x953   :  { %v6838_v35 = vpop.eup %6837 }
 0x954   :  { %v4370_v29 = vpop.f32.mrb[28].mxu0  ;;  %v4441_v45 = vpop.f32.mrb[36].mxu1  ;;  %v8383_v38 = vadd.f32 %v4250_v7, %v4249_v37 }
 0x955   :  { %v4446_v11 = vadd.f32 %v4370_v29, %v4300_v9  ;;  %v4448_v60 = vadd.f32 %v4441_v45, %v4302_v31  ;;  %v4372_v44 = vpop.f32.mrb[29].mxu0  ;;  %v4443_v59 = vpop.f32.mrb[37].mxu1 }
 0x956   :  { %v4447_v55 = vadd.f32 %v4372_v44, %v4301_v14  ;;  %v4449_v21 = vadd.f32 %v4443_v59, %v4303_v56  ;;  %6839 = vtanh.f32 %v8383_v38 }
 0x957   :  { %v4944_v51 = vmul.f32 -1.442695, %v4446_v11  ;;  %v4946_v53 = vmul.f32 -1.442695, %v4448_v60 }
 0x958   :  { %v4945_v2 = vmul.f32 -1.442695, %v4447_v55 }
 0x959   :  { %6841 = vpow2.f32 %v4944_v51 }
 0x95a   :  { %6843 = vpow2.f32 %v4945_v2 }
 0x95b   :  { %6845 = vtanh.f32 %v4449_v21 }
 0x95c   :  { %6847 = vpow2.f32 %v4946_v53 }
 0x960   :  { %v6840_v48 = vpop.eup %6839 }
 0x961   :  { %v4253_v41 = vmul.f32 %v6840_v48, %v6838_v35 }
 0x963   :  { %v6842_v7 = vpop.eup %6841  ;;  %4539 = vmatmul.mubr.f32.vlgmr.msra.gmra.mrb[30].mxu0 %v4253_v41  ;;  %4610 = vmatmul.mubr.f32.vlgmr.msra.gmra.mrb[38].mxu1 %v4253_v41 }
 0x964   :  { %v4459_v24 = vadd.f32 1.0, %v6842_v7  ;;  %v6844_v63 = vpop.eup %6843  ;;  %6486 = vmatpush1.bf16.msra.mxu0 %v8794_v52  ;;  %6518 = vmatpush1.bf16.msra.mxu1 %v8795_v8 }
 0x965   :  { %v4460_v13 = vadd.f32 1.0, %v6844_v63  ;;  %6488 = vmatprep.subr.bf16.mxu0 %v8796_v1  ;;  %6520 = vmatprep.subr.bf16.mxu1 %v8797_v50  ;;  %v6846_v52 = vpop.eup %6845 }
 0x966   :  { %6849 = vrcp.f32 %v4459_v24  ;;  %4680 = vmatprep.mubr.f32.mxu0 %v8732_v57  ;;  %4751 = vmatprep.mubr.f32.mxu1 %v8732_v57  ;;  %v6848_v8 = vpop.eup %6847 }
 0x967   :  { %6851 = vrcp.f32 %v4460_v13  ;;  %v4950_v13 = vld [vmem:[%s8449_s8] ss:$0 sm:$0xff] }
 0x968   :  { %6490 = vmatpush1.bf16.msra.mxu0 %v8798_v22  ;;  %6522 = vmatpush1.bf16.msra.mxu1 %v8799_v18  ;;  %v4461_v18 = vadd.f32 1.0, %v6848_v8 }
 0x969   :  { %6492 = vmatprep.subr.bf16.mxu0 %v8800_v28  ;;  %6524 = vmatprep.subr.bf16.mxu1 %v8801_v32 }
 0x96a   :  { %6853 = vrcp.f32 %v4461_v18 }
 0x96c   :  { %6494 = vmatpush1.bf16.msra.mxu0 %v8802_v54  ;;  %6526 = vmatpush1.bf16.msra.mxu1 %v8803_v42 }
 0x96d   :  { %6496 = vmatprep.subr.bf16.mxu0 %v8861_v39  ;;  %6528 = vmatprep.subr.bf16.mxu1 %v8862_v46  ;;  %v4787_v39 = vld [vmem:[#allocation12 + $0x8] sm:$0xff]  ;;  %v7048_v46 = vmov 0.0|0.0  }
 0x970   :  { %v6850_v1 = vpop.eup %6849  ;;  %6498 = vmatpush1.bf16.msra.mxu0 %v8806_v23  ;;  %6530 = vmatpush1.bf16.msra.mxu1 %v8807_v3  ;;  %v4786_v3 = vld [vmem:[#allocation12] sm:$0xff] }
 0x971   :  { %v4470_v50 = vmul.f32 %v6850_v1, %v6846_v52  ;;  %v6852_v22 = vpop.eup %6851  ;;  %6500 = vmatprep.subr.bf16.mxu0 %v8863_v19  ;;  %6532 = vmatprep.subr.bf16.mxu1 %v8864_v10  ;;  %v4791_v19 = vld [vmem:[#allocation12 + $0x28] sm:$0xff]  ;;  %v4792_v10 = vld [vmem:[#allocation12 + $0x30] sm:$0xff] }
 0x972   :  { %v4469_v28 = vmul.f32 %v6852_v22, %v8280_v58  ;;  %v4798_v58 = vld [vmem:[#allocation12 + $0x60] sm:$0xff] }
 0x973   :  { %v6566_v17 = vpack.c.bf16 %v4799_v47, %v4798_v58 }
 0x974   :  { %v4471_v32 = vadd.f32 %v4470_v50, %v4469_v28  ;;  %6502 = vmatpush1.bf16.msra.mxu0 %v8865_v6  ;;  %6534 = vmatpush1.bf16.msra.mxu1 %v8866_v12  ;;  %v6854_v54 = vpop.eup %6853  ;;  %v4794_v12 = vld [vmem:[#allocation12 + $0x40] sm:$0xff] }
 0x975   :  { %6504 = vmatprep.subr.bf16.mxu0 %v8867_v33  ;;  %6536 = vmatprep.subr.bf16.mxu1 %v8868_v20  ;;  %v4795_v33 = vld [vmem:[#allocation12 + $0x48] sm:$0xff] }
 0x976   :  { %6855 = vtanh.f32 %v4471_v32  ;;  %v6560_v20 = vpack.c.bf16 %v4795_v33, %v4794_v12 }
 0x978   :  { %6506 = vmatpush1.bf16.msra.mxu0 %v8869_v27  ;;  %6538 = vmatpush1.bf16.msra.mxu1 %v8870_v16  ;;  %v4796_v27 = vld [vmem:[#allocation12 + $0x50] sm:$0xff]  ;;  %v4797_v16 = vld [vmem:[#allocation12 + $0x58] sm:$0xff] }
 0x979   :  { %6508 = vmatprep.subr.bf16.mxu0 %v8871_v62  ;;  %6540 = vmatprep.subr.bf16.mxu1 %v8817_v5  ;;  %v6548_v5 = vpack.c.bf16 %v4787_v39, %v4786_v3  ;;  %v6563_v62 = vpack.c.bf16 %v4797_v16, %v4796_v27 }
 0x97c   :  { %6510 = vmatpush1.bf16.msra.mxu0 %v8818_v34  ;;  %6542 = vmatpush1.bf16.msra.mxu1 %v8819_v40  ;;  %v4788_v34 = vld [vmem:[#allocation12 + $0x10] sm:$0xff]  ;;  %v4789_v40 = vld [vmem:[#allocation12 + $0x18] sm:$0xff] }
 0x97d   :  { %6512 = vmatprep.subr.bf16.mxu0 %v8820_v43  ;;  %6544 = vmatprep.subr.bf16.mxu1 %v8821_v0  ;;  %v6551_v43 = vpack.c.bf16 %v4789_v40, %v4788_v34  ;;  %v4790_v0 = vld [vmem:[#allocation12 + $0x20] sm:$0xff] }
 0x980   :  { %v6856_v42 = vpop.eup %6855  ;;  %6514 = vmatpush1.bf16.msra.mxu0 %v8822_v15  ;;  %6546 = vmatpush1.bf16.msra.mxu1 %v8823_v30  ;;  %v6554_v15 = vpack.c.bf16 %v4791_v19, %v4790_v0  ;;  %v4793_v30 = vld [vmem:[#allocation12 + $0x38] sm:$0xff] }
 0x981   :  { %v4473_v23 = vmul.f32 %v6856_v42, %v6854_v54  ;;  %6547 = vmatprep.subr.bf16.mxu0 %v7048_v46  ;;  %v6557_v6 = vpack.c.bf16 %v4793_v30, %v4792_v10 }
 0x983   :  { %4681 = vmatmul.mubr.f32.vlgmr.msra.gmra.mrb[30].mxu0 %v4473_v23  ;;  %4752 = vmatmul.mubr.f32.vlgmr.msra.gmra.mrb[38].mxu1 %v4473_v23 }
 0x984   :  { %6549 = vmatpush3.bf16.msra.mxu0 %v6548_v5  ;;  %5000 = vmatprep.mubr.msk.f32.mxu0 %vm7049_vm2, %v8732_v57  ;;  %v4801_v57 = vld [vmem:[#allocation12 + $0x78] sm:$0xff] }
 0x985   :  { %6550 = vmatprep.subr.bf16.mxu0 %v7048_v46  ;;  %v6569_v37 = vpack.c.bf16 %v4801_v57, %v4800_v49 }
 0x988   :  { %6552 = vmatpush3.bf16.msra.mxu0 %v6551_v43 }
 0x989   :  { %6553 = vmatprep.subr.bf16.mxu0 %v7048_v46 }
 0x98c   :  { %6555 = vmatpush3.bf16.msra.mxu0 %v6554_v15 }
 0x98d   :  { %6556 = vmatprep.subr.bf16.mxu0 %v7048_v46 }
 0x990   :  { %6558 = vmatpush3.bf16.msra.mxu0 %v6557_v6 }
 0x991   :  { %6559 = vmatprep.subr.bf16.mxu0 %v7048_v46 }
 0x994   :  { %6561 = vmatpush3.bf16.msra.mxu0 %v6560_v20 }
 0x995   :  { %6562 = vmatprep.subr.bf16.mxu0 %v7048_v46 }
 0x998   :  { %6564 = vmatpush3.bf16.msra.mxu0 %v6563_v62 }
 0x999   :  { %6565 = vmatprep.subr.bf16.mxu0 %v7048_v46 }
 0x99c   :  { %6567 = vmatpush3.bf16.msra.mxu0 %v6566_v17 }
 0x99d   :  { %6568 = vmatprep.subr.bf16.mxu0 %v7048_v46 }
 0x9a0   :  { %6570 = vmatpush3.bf16.msra.mxu0 %v6569_v37 }
 0xa56   :  { %v4682_v61 = vpop.f32.mrb[30].mxu0  ;;  %v4753_v9 = vpop.f32.mrb[38].mxu1 }
 0xa57   :  { %v4758_v29 = vadd.f32 %v4682_v61, %v9189_v4  ;;  %v4684_v31 = vpop.f32.mrb[31].mxu0  ;;  %v4755_v45 = vpop.f32.mrb[39].mxu1  ;;  %v4760_v44 = vadd.f32 %v4753_v9, %v9191_v36 }
 0xa58   :  { %v4759_v14 = vadd.f32 %v4684_v31, %v9190_v25  ;;  %v4761_v56 = vadd.f32 %v4755_v45, %v9192_v26 }
 0xa59   :  { %v4947_v11 = vmul.f32 -1.442695, %v4758_v29  ;;  %v4949_v59 = vmul.f32 -1.442695, %v4760_v44 }
 0xa5a   :  { %v4948_v60 = vmul.f32 -1.442695, %v4759_v14 }
 0xa5b   :  { %6857 = vpow2.f32 %v4947_v11 }
 0xa5c   :  { %6859 = vpow2.f32 %v4948_v60 }
 0xa5d   :  { %6861 = vtanh.f32 %v4761_v56 }
 0xa5e   :  { %6863 = vpow2.f32 %v4949_v59 }
 0xa65   :  { %v6858_v55 = vpop.eup %6857 }
 0xa66   :  { %v4771_v21 = vadd.f32 1.0, %v6858_v55  ;;  %v6860_v51 = vpop.eup %6859 }
 0xa67   :  { %v4772_v4 = vadd.f32 1.0, %v6860_v51  ;;  %v6862_v2 = vpop.eup %6861 }
 0xa68   :  { %6865 = vrcp.f32 %v4771_v21  ;;  %v6864_v35 = vpop.eup %6863 }
 0xa69   :  { %6867 = vrcp.f32 %v4772_v4  ;;  %v4773_v41 = vadd.f32 1.0, %v6864_v35 }
 0xa6b   :  { %6869 = vrcp.f32 %v4773_v41 }
 0xa72   :  { %v6866_v25 = vpop.eup %6865 }
 0xa73   :  { %v4782_v48 = vmul.f32 %v6866_v25, %v6862_v2  ;;  %v6868_v53 = vpop.eup %6867 }
 0xa74   :  { %v4781_v7 = vmul.f32 %v6868_v53, %v8383_v38 }
 0xa75   :  { %v6870_v26 = vpop.eup %6869 }
 0xa76   :  { %v4783_v36 = vadd.f32 %v4782_v48, %v4781_v7 }
 0xa78   :  { %6871 = vtanh.f32 %v4783_v36 }
 0xa82   :  { %v6872_v24 = vpop.eup %6871 }
 0xa83   :  { %v4785_v63 = vmul.f32 %v6872_v24, %v6870_v26 }
 0xa85   :  { %5001 = vmatmul.mubr.f32.vlgmr.msra.gmra.mrb[32].mxu0 %v4785_v63 }
 0xb58   :  { %v4875_v52 = vpop.f32.mrb[32].mxu0 }
 0xb59   :  { %v4876_v8 = vadd.f32 %v4950_v13, %v4875_v52  ;;  %v5002_v1 = vpop.f32.mrb[33].mxu0 }
 0xb5b   :  { %4879 = vst [vmem:[#allocation14] sm:$0x3] %v4876_v8 }
 0xb5c   :  { %7016 = shalt.err (!%p7013_p10)
}
 0xb5d   :  { %s7017_s27 = scalar_lea.hbm %s8450_s9, 32 }
 0xb5e   :  { %p7018_p11 = scmp.ne.s32.totalorder %s8450_s9, %s7017_s27  ;;  %p7021_p12 = scmp.lt.u32.totalorder %s7017_s27, %s8450_s9 }
 0xb60   :  { %p7023_p13 = pnand %p7021_p12, %p7018_p11 }
 0xb62   :  { %7026 = shalt.err (!%p7023_p13)
}
 0xb63   :  { %4889 = dma.vmem_to_hbm [thread:$0]  %s4887_s21, 32, %s8450_s9, [#allocation5]  }
 0xb64   :  { %7035 = dma.done.wait [#allocation5], 32  }
 0xb65   :  { %7036 = vsyncadd [#allocation5], 4294967264 }
 0xb66   :  { %4893 = vsyncpa [#allocation4], 1 }
 0xb67   :  { %4894 = vsyncpa [#allocation7], 1 }
 0xb68   :  { %4895 = vsyncpa [#allocation10], 1 }
 0xb69   :  { %4896 = vsyncpa [#allocation13], 1 }
 0xb6a   :  { %4897 = vsyncpa [#allocation5], 1 }

</bundles_post_ra>
